<compile_context>
chip_gen: v6e
topology: v6e:2x2x1
jax: 0.10.0
libtpu: 0.0.40
codegen_flags: <defaults>
</compile_context>

<pallas_src>
import functools

import jax
import jax.numpy as jnp
from jax.experimental import pallas as pl
from jax.experimental.pallas import tpu as pltpu


# ----------------------------------------------------------------------------
# Fused kernel: per grid point (= one image stream) run ClsAttention for every
# batch element, then the full 3-layer GCN on the flattened (B*N, F) states.
# ----------------------------------------------------------------------------
def sent_gcn_kernel(feats_ref, waug_ref, fwA_ref, bwA_ref,
                    wc_ref, wf_ref, wb_ref, wuc_ref, wuf_ref, wub_ref,
                    gc_ref, bc_ref, gf_ref, bf_ref, gb_ref, bb_ref,
                    gu_ref, bu_ref,
                    out_ref, nodes_scr):
    B = feats_ref.shape[1]
    N = waug_ref.shape[0]          # 1 + num_classes
    BN_rows = B * N
    eps = 1e-5

    waug = waug_ref[...]           # (N, F); row 0 is zeros -> uniform softmax

    # --- ClsAttention + global mean, fused.  softmax of the zero row is
    # uniform 1/HW, so one (N,HW) @ (F,HW)^T contraction yields the node rows
    # [global_mean ; cls_feats] in one shot.
    for b in range(B):             # B is tiny; static unroll
        x = feats_ref[0, b]                                            # (F, HW)
        logits = jnp.dot(waug, x, preferred_element_type=jnp.float32)  # (N, HW)
        m = jnp.max(logits, axis=-1, keepdims=True)
        p = jnp.exp(logits - m)
        inv = pl.reciprocal(jnp.sum(p, axis=-1, keepdims=True), approx=True)
        att = p * inv                                                  # (N, HW)
        # node[n, f] = sum_hw att[n, hw] * x[f, hw]  (rhs-transposed dot -> MXU)
        node = jax.lax.dot_general(att, x, (((1,), (1,)), ((), ())),
                                   preferred_element_type=jnp.float32)  # (N, F)
        nodes_scr[pl.ds(b * N, N), :] = node

    X = nodes_scr[...]                                                 # (B*N, F)
    fwA = fwA_ref[...]             # (B*N, B*N) == kron(I_B, fw_A^T)
    bwA = bwA_ref[...]             # (B*N, B*N) == kron(I_B, bw_A^T)

    inv_cnt = 1.0 / BN_rows

    def batchnorm(y, gamma, beta):
        # training-mode BatchNorm1d: per-channel stats over (batch, nodes),
        # single-pass biased variance, eps=1e-5.
        mean = jnp.sum(y, axis=0, keepdims=True) * inv_cnt
        ex2 = jnp.sum(y * y, axis=0, keepdims=True) * inv_cnt
        var = ex2 - mean * mean
        scale = jax.lax.rsqrt(var + eps) * gamma
        return (y - mean) * scale + beta

    for l in range(3):             # three GCLayers, statically unrolled
        WcT = wc_ref[l]            # (F, S)
        WfT = wf_ref[l]            # (F, S)
        WbT = wb_ref[l]            # (F, S)
        WuC = wuc_ref[l]           # (S, F)
        WuF = wuf_ref[l]           # (S, F)
        WuB = wub_ref[l]           # (S, F)

        # condensed = relu(BN(condense(states)))
        cond = jnp.dot(X, WcT, preferred_element_type=jnp.float32)
        cond = jnp.maximum(batchnorm(cond, gc_ref[l], bc_ref[l]), 0.0)

        # fw_msg = relu(BN(fw_trans(states).bmm(fw_A)))
        fw = jnp.dot(X, WfT, preferred_element_type=jnp.float32)
        fw = jnp.dot(fwA, fw, preferred_element_type=jnp.float32)
        fw = jnp.maximum(batchnorm(fw, gf_ref[l], bf_ref[l]), 0.0)

        # bw_msg = relu(BN(bw_trans(states).bmm(bw_A)))
        bw = jnp.dot(X, WbT, preferred_element_type=jnp.float32)
        bw = jnp.dot(bwA, bw, preferred_element_type=jnp.float32)
        bw = jnp.maximum(batchnorm(bw, gb_ref[l], bb_ref[l]), 0.0)

        # updated = BN(update(cat(cond, fw, bw))); relu(updated + states)
        # The 1x1 conv over the concatenated 3S channels == sum of three
        # (B*N,S)@(S,F) matmuls -> no concatenate / lane relayout.
        upd = (jnp.dot(cond, WuC, preferred_element_type=jnp.float32)
               + jnp.dot(fw, WuF, preferred_element_type=jnp.float32)
               + jnp.dot(bw, WuB, preferred_element_type=jnp.float32))
        upd = batchnorm(upd, gu_ref[l], bu_ref[l])
        X = jnp.maximum(upd + X, 0.0)

    out_ref[0] = X


def sent_gcn_pallas(feats_pair, w_cls, fw_A, bw_A, p):
    """feats_pair: (2, B, F, h, w) -> node_states (2, B, N, F)."""
    S2, B, F, H, W = feats_pair.shape
    HW = H * W
    C = w_cls.shape[0]
    N = C + 1
    S = p['wc'].shape[1]

    feats = feats_pair.reshape(S2, B, F, HW)

    # augment class weights with a zero row -> softmax row 0 = uniform mean
    waug = jnp.concatenate([jnp.zeros((1, F), jnp.float32), w_cls], axis=0)

    # block-diagonal transposed adjacencies: per-batch bmm -> one flat matmul
    eyeB = jnp.eye(B, dtype=jnp.float32)
    fwA_blk = jnp.kron(eyeB, fw_A.T)                     # (B*N, B*N)
    bwA_blk = jnp.kron(eyeB, bw_A.T)

    # pre-transpose all GCN weights so every in-kernel dot is row-major
    wcT = jnp.swapaxes(p['wc'], 1, 2)                    # (3, F, S)
    wfT = jnp.swapaxes(p['wf'], 1, 2)
    wbT = jnp.swapaxes(p['wb'], 1, 2)
    wu = p['wu']                                         # (3, F, 3S)
    wuC = jnp.swapaxes(wu[:, :, 0:S], 1, 2)              # (3, S, F)
    wuF = jnp.swapaxes(wu[:, :, S:2 * S], 1, 2)
    wuB = jnp.swapaxes(wu[:, :, 2 * S:3 * S], 1, 2)

    def full(shape):
        return pl.BlockSpec(shape, lambda s, _n=len(shape): (0,) * _n)

    out = pl.pallas_call(
        sent_gcn_kernel,
        out_shape=jax.ShapeDtypeStruct((S2, B * N, F), jnp.float32),
        grid=(S2,),
        in_specs=[
            pl.BlockSpec((1, B, F, HW), lambda s: (s, 0, 0, 0)),
            full((N, F)),
            full((B * N, B * N)),
            full((B * N, B * N)),
            full((3, F, S)), full((3, F, S)), full((3, F, S)),
            full((3, S, F)), full((3, S, F)), full((3, S, F)),
            full((3, 1, S)), full((3, 1, S)),
            full((3, 1, S)), full((3, 1, S)),
            full((3, 1, S)), full((3, 1, S)),
            full((3, 1, F)), full((3, 1, F)),
        ],
        out_specs=pl.BlockSpec((1, B * N, F), lambda s: (s, 0, 0)),
        scratch_shapes=[pltpu.VMEM((B * N, F), jnp.float32)],
        compiler_params=pltpu.CompilerParams(
            dimension_semantics=("parallel",)),
    )(feats, waug, fwA_blk, bwA_blk,
      wcT, wfT, wbT, wuC, wuF, wuB,
      p['gc'], p['bc'], p['gf'], p['bf'], p['gb'], p['bb'],
      p['gu'], p['bu'])
    return out.reshape(S2, B, N, F)


# ----------------------------------------------------------------------------
# Plain-JAX glue: backbone stub, adjacency normalization, parameter setup.
# ----------------------------------------------------------------------------
def densenet_stub(images, w_stub):
    # TODO(synk): stand-in for densenet121.features (4x4 avg-pool + 1x1 conv).
    B, C, H, W = images.shape
    pooled = images.reshape(B, C, H // 4, 4, W // 4, 4).mean(axis=(3, 5))
    feats = jnp.einsum('bchw,fc->bfhw', pooled, w_stub)
    return jax.nn.relu(feats)


def normalize_adjacency(fw_adj, bw_adj):
    # Matches SentGCN.__init__ (inf -> 0 after pow(-0.5)); note the fw/bw mix:
    #   fw_A = D_fw^{-1/2} fw_adj D_bw^{-1/2},  bw_A = D_bw^{-1/2} bw_adj D_fw^{-1/2}
    def inv_sqrt_diag(adj):
        d = adj.sum(axis=1)
        inv = jnp.where(d > 0, d ** -0.5, 0.0)
        return jnp.diag(inv)

    inv_fw = inv_sqrt_diag(fw_adj)
    inv_bw = inv_sqrt_diag(bw_adj)
    fw_A = inv_fw @ fw_adj @ inv_bw
    bw_A = inv_bw @ bw_adj @ inv_fw
    return fw_A, bw_A


def init_params(key, num_classes, feat_size, state_size):
    ks = jax.random.split(key, 16)

    def nrm(k, shape, fan_in):
        return jax.random.normal(k, shape, jnp.float32) / jnp.sqrt(fan_in)

    params = {
        'w_stub': nrm(ks[0], (feat_size, 3), 3.0),
        'w_cls': nrm(ks[1], (num_classes, feat_size), feat_size),
        # stacked weights for the 3 GCLayers (PyTorch layout: (out, in))
        'wc': nrm(ks[2], (3, state_size, feat_size), feat_size),
        'wf': nrm(ks[3], (3, state_size, feat_size), feat_size),
        'wb': nrm(ks[4], (3, state_size, feat_size), feat_size),
        'wu': nrm(ks[5], (3, feat_size, 3 * state_size), 3 * state_size),
        # BatchNorm affine params (gamma=1, beta=0 at construction)
        'gc': jnp.ones((3, 1, state_size), jnp.float32),
        'bc': jnp.zeros((3, 1, state_size), jnp.float32),
        'gf': jnp.ones((3, 1, state_size), jnp.float32),
        'bf': jnp.zeros((3, 1, state_size), jnp.float32),
        'gb': jnp.ones((3, 1, state_size), jnp.float32),
        'bb': jnp.zeros((3, 1, state_size), jnp.float32),
        'gu': jnp.ones((3, 1, feat_size), jnp.float32),
        'bu': jnp.zeros((3, 1, feat_size), jnp.float32),
    }
    return params


@functools.partial(jax.jit, static_argnames=())
def sent_gcn_forward(images1, images2, fw_A, bw_A, params):
    B = images1.shape[0]
    # run the backbone stub on both streams at once (no cross-batch coupling)
    imgs = jnp.concatenate([images1, images2], axis=0)          # (2B, 3, H, W)
    feats = densenet_stub(imgs, params['w_stub'])               # (2B, F, h, w)
    feats = feats.reshape(2, B, *feats.shape[1:])               # (2, B, F, h, w)

    # one fused pallas_call covers ClsAttention + global mean + 3-layer GCN
    # for both image streams (grid axis of 2; BatchNorm stats remain
    # per-stream, as in the PyTorch reference which calls gcn() per stream).
    node_states = sent_gcn_pallas(feats, params['w_cls'], fw_A, bw_A, params)
    return node_states[0], node_states[1]


if __name__ == "__main__":
    num_classes = 7
    feat_size = 128          # scaled-down stand-in for 1024
    state_size = feat_size // 4
    batch = 2
    img_hw = 32              # -> 8x8 feature map from the stub
    n_nodes = num_classes + 1

    key = jax.random.PRNGKey(0)
    k_img1, k_img2, k_fw, k_bw, k_par = jax.random.split(key, 5)

    images1 = jax.random.normal(k_img1, (batch, 3, img_hw, img_hw), jnp.float32)
    images2 = jax.random.normal(k_img2, (batch, 3, img_hw, img_hw), jnp.float32)

    fw_adj = jax.random.bernoulli(k_fw, 0.4, (n_nodes, n_nodes)).astype(jnp.float32)
    bw_adj = jax.random.bernoulli(k_bw, 0.4, (n_nodes, n_nodes)).astype(jnp.float32)
    fw_A, bw_A = normalize_adjacency(fw_adj, bw_adj)

    params = init_params(k_par, num_classes, feat_size, state_size)

    node_states1, node_states2 = sent_gcn_forward(images1, images2, fw_A, bw_A, params)
    jax.block_until_ready((node_states1, node_states2))

    assert node_states1.shape == (batch, n_nodes, feat_size)
    assert node_states2.shape == (batch, n_nodes, feat_size)
    assert bool(jnp.all(jnp.isfinite(node_states1)))
    assert bool(jnp.all(jnp.isfinite(node_states2)))
    print("KERNEL_OK")
</pallas_src>

<mosaic_0001>
module attributes {stable_mosaic.version = 11 : i64} {
  func.func @sent_gcn_kernel(%arg0: i32, %arg1: memref<1x2x128x64xf32, #tpu.memory_space<vmem>>, %arg2: memref<8x128xf32, #tpu.memory_space<vmem>>, %arg3: memref<16x16xf32, #tpu.memory_space<vmem>>, %arg4: memref<16x16xf32, #tpu.memory_space<vmem>>, %arg5: memref<3x128x32xf32, #tpu.memory_space<vmem>>, %arg6: memref<3x128x32xf32, #tpu.memory_space<vmem>>, %arg7: memref<3x128x32xf32, #tpu.memory_space<vmem>>, %arg8: memref<3x32x128xf32, #tpu.memory_space<vmem>>, %arg9: memref<3x32x128xf32, #tpu.memory_space<vmem>>, %arg10: memref<3x32x128xf32, #tpu.memory_space<vmem>>, %arg11: memref<3x1x32xf32, #tpu.memory_space<vmem>>, %arg12: memref<3x1x32xf32, #tpu.memory_space<vmem>>, %arg13: memref<3x1x32xf32, #tpu.memory_space<vmem>>, %arg14: memref<3x1x32xf32, #tpu.memory_space<vmem>>, %arg15: memref<3x1x32xf32, #tpu.memory_space<vmem>>, %arg16: memref<3x1x32xf32, #tpu.memory_space<vmem>>, %arg17: memref<3x1x128xf32, #tpu.memory_space<vmem>>, %arg18: memref<3x1x128xf32, #tpu.memory_space<vmem>>, %arg19: memref<1x16x128xf32, #tpu.memory_space<vmem>>, %arg20: memref<16x128xf32, #tpu.memory_space<vmem>>) attributes {dimension_semantics = [#tpu.dimension_semantics<parallel>], iteration_bounds = array<i64: 2>, scalar_prefetch = 0 : i64, scratch_operands = 1 : i64, tpu.core_type = #tpu.core_type<tc>, window_params = [{transform_indices = @transform_0, window_bounds = array<i64: 1, 2, 128, 64>}, {pipeline_mode = #tpu.pipeline_mode<synchronous>, transform_indices = @transform_1, window_bounds = array<i64: 8, 128>}, {pipeline_mode = #tpu.pipeline_mode<synchronous>, transform_indices = @transform_2, window_bounds = array<i64: 16, 16>}, {pipeline_mode = #tpu.pipeline_mode<synchronous>, transform_indices = @transform_3, window_bounds = array<i64: 16, 16>}, {pipeline_mode = #tpu.pipeline_mode<synchronous>, transform_indices = @transform_4, window_bounds = array<i64: 3, 128, 32>}, {pipeline_mode = #tpu.pipeline_mode<synchronous>, transform_indices = @transform_5, window_bounds = array<i64: 3, 128, 32>}, {pipeline_mode = #tpu.pipeline_mode<synchronous>, transform_indices = @transform_6, window_bounds = array<i64: 3, 128, 32>}, {pipeline_mode = #tpu.pipeline_mode<synchronous>, transform_indices = @transform_7, window_bounds = array<i64: 3, 32, 128>}, {pipeline_mode = #tpu.pipeline_mode<synchronous>, transform_indices = @transform_8, window_bounds = array<i64: 3, 32, 128>}, {pipeline_mode = #tpu.pipeline_mode<synchronous>, transform_indices = @transform_9, window_bounds = array<i64: 3, 32, 128>}, {pipeline_mode = #tpu.pipeline_mode<synchronous>, transform_indices = @transform_10, window_bounds = array<i64: 3, 1, 32>}, {pipeline_mode = #tpu.pipeline_mode<synchronous>, transform_indices = @transform_11, window_bounds = array<i64: 3, 1, 32>}, {pipeline_mode = #tpu.pipeline_mode<synchronous>, transform_indices = @transform_12, window_bounds = array<i64: 3, 1, 32>}, {pipeline_mode = #tpu.pipeline_mode<synchronous>, transform_indices = @transform_13, window_bounds = array<i64: 3, 1, 32>}, {pipeline_mode = #tpu.pipeline_mode<synchronous>, transform_indices = @transform_14, window_bounds = array<i64: 3, 1, 32>}, {pipeline_mode = #tpu.pipeline_mode<synchronous>, transform_indices = @transform_15, window_bounds = array<i64: 3, 1, 32>}, {pipeline_mode = #tpu.pipeline_mode<synchronous>, transform_indices = @transform_16, window_bounds = array<i64: 3, 1, 128>}, {pipeline_mode = #tpu.pipeline_mode<synchronous>, transform_indices = @transform_17, window_bounds = array<i64: 3, 1, 128>}, {transform_indices = @transform_18, window_bounds = array<i64: 1, 16, 128>}]} {
    %c0 = arith.constant 0 : index
    %c0_0 = arith.constant 0 : index
    %0 = vector.load %arg2[%c0, %c0_0] : memref<8x128xf32, #tpu.memory_space<vmem>>, vector<8x128xf32>
    %c0_1 = arith.constant 0 : index
    %c0_2 = arith.constant 0 : index
    %c0_3 = arith.constant 0 : index
    %c0_4 = arith.constant 0 : index
    %1 = vector.load %arg1[%c0_1, %c0_2, %c0_3, %c0_4] : memref<1x2x128x64xf32, #tpu.memory_space<vmem>>, vector<1x1x128x64xf32>
    %2 = vector.shape_cast %1 : vector<1x1x128x64xf32> to vector<128x64xf32>
    %cst = arith.constant dense<0.000000e+00> : vector<8x64xf32>
    %3 = tpu.matmul %0, %2, %cst {dimension_numbers = #tpu.dot_dimension_numbers<[1], [0], [0], [1], [0, 0, 1, 1], [], []>} : vector<8x128xf32>, vector<128x64xf32>, vector<8x64xf32> -> vector<8x64xf32>
    %cst_5 = arith.constant dense<0xFF800000> : vector<8xf32>
    %4 = vector.multi_reduction <maximumf>, %3, %cst_5 [1] : vector<8x64xf32> to vector<8xf32>
    %5 = vector.shape_cast %4 : vector<8xf32> to vector<8x1xf32>
    %6 = vector.broadcast %5 : vector<8x1xf32> to vector<8x64xf32>
    %7 = arith.subf %3, %6 : vector<8x64xf32>
    %8 = math.exp %7 : vector<8x64xf32>
    %cst_6 = arith.constant dense<0.000000e+00> : vector<8xf32>
    %9 = vector.multi_reduction <add>, %8, %cst_6 [1] : vector<8x64xf32> to vector<8xf32>
    %10 = vector.shape_cast %9 : vector<8xf32> to vector<8x1xf32>
    %11 = tpu.reciprocal %10 {approx = true} : vector<8x1xf32> -> vector<8x1xf32>
    %12 = vector.broadcast %11 : vector<8x1xf32> to vector<8x64xf32>
    %13 = arith.mulf %8, %12 : vector<8x64xf32>
    %cst_7 = arith.constant dense<0.000000e+00> : vector<8x128xf32>
    %14 = tpu.matmul %13, %2, %cst_7 {dimension_numbers = #tpu.dot_dimension_numbers<[1], [1], [0], [0], [0, 0, 1, 0], [], []>} : vector<8x64xf32>, vector<128x64xf32>, vector<8x128xf32> -> vector<8x128xf32>
    %c0_8 = arith.constant 0 : index
    %c0_9 = arith.constant 0 : index
    %15 = vector.load %arg20[%c0_8, %c0_9] : memref<16x128xf32, #tpu.memory_space<vmem>>, vector<8x128xf32>
    tpu.vector_store %arg20[%c0_8, %c0_9], %14 {strides = array<i32>} : memref<16x128xf32, #tpu.memory_space<vmem>>, vector<8x128xf32>,
    %c0_10 = arith.constant 0 : index
    %c1 = arith.constant 1 : index
    %c0_11 = arith.constant 0 : index
    %c0_12 = arith.constant 0 : index
    %16 = vector.load %arg1[%c0_10, %c1, %c0_11, %c0_12] : memref<1x2x128x64xf32, #tpu.memory_space<vmem>>, vector<1x1x128x64xf32>
    %17 = vector.shape_cast %16 : vector<1x1x128x64xf32> to vector<128x64xf32>
    %cst_13 = arith.constant dense<0.000000e+00> : vector<8x64xf32>
    %18 = tpu.matmul %0, %17, %cst_13 {dimension_numbers = #tpu.dot_dimension_numbers<[1], [0], [0], [1], [0, 0, 1, 1], [], []>} : vector<8x128xf32>, vector<128x64xf32>, vector<8x64xf32> -> vector<8x64xf32>
    %cst_14 = arith.constant dense<0xFF800000> : vector<8xf32>
    %19 = vector.multi_reduction <maximumf>, %18, %cst_14 [1] : vector<8x64xf32> to vector<8xf32>
    %20 = vector.shape_cast %19 : vector<8xf32> to vector<8x1xf32>
    %21 = vector.broadcast %20 : vector<8x1xf32> to vector<8x64xf32>
    %22 = arith.subf %18, %21 : vector<8x64xf32>
    %23 = math.exp %22 : vector<8x64xf32>
    %cst_15 = arith.constant dense<0.000000e+00> : vector<8xf32>
    %24 = vector.multi_reduction <add>, %23, %cst_15 [1] : vector<8x64xf32> to vector<8xf32>
    %25 = vector.shape_cast %24 : vector<8xf32> to vector<8x1xf32>
    %26 = tpu.reciprocal %25 {approx = true} : vector<8x1xf32> -> vector<8x1xf32>
    %27 = vector.broadcast %26 : vector<8x1xf32> to vector<8x64xf32>
    %28 = arith.mulf %23, %27 : vector<8x64xf32>
    %cst_16 = arith.constant dense<0.000000e+00> : vector<8x128xf32>
    %29 = tpu.matmul %28, %17, %cst_16 {dimension_numbers = #tpu.dot_dimension_numbers<[1], [1], [0], [0], [0, 0, 1, 0], [], []>} : vector<8x64xf32>, vector<128x64xf32>, vector<8x128xf32> -> vector<8x128xf32>
    %c8 = arith.constant 8 : index
    %c0_17 = arith.constant 0 : index
    %30 = vector.load %arg20[%c8, %c0_17] : memref<16x128xf32, #tpu.memory_space<vmem>>, vector<8x128xf32>
    tpu.vector_store %arg20[%c8, %c0_17], %29 {strides = array<i32>} : memref<16x128xf32, #tpu.memory_space<vmem>>, vector<8x128xf32>,
    %c0_18 = arith.constant 0 : index
    %c0_19 = arith.constant 0 : index
    %31 = vector.load %arg20[%c0_18, %c0_19] : memref<16x128xf32, #tpu.memory_space<vmem>>, vector<16x128xf32>
    %c0_20 = arith.constant 0 : index
    %c0_21 = arith.constant 0 : index
    %32 = vector.load %arg3[%c0_20, %c0_21] : memref<16x16xf32, #tpu.memory_space<vmem>>, vector<16x16xf32>
    %c0_22 = arith.constant 0 : index
    %c0_23 = arith.constant 0 : index
    %33 = vector.load %arg4[%c0_22, %c0_23] : memref<16x16xf32, #tpu.memory_space<vmem>>, vector<16x16xf32>
    %c0_24 = arith.constant 0 : index
    %c0_25 = arith.constant 0 : index
    %c0_26 = arith.constant 0 : index
    %34 = vector.load %arg5[%c0_24, %c0_25, %c0_26] : memref<3x128x32xf32, #tpu.memory_space<vmem>>, vector<1x128x32xf32>
    %35 = vector.shape_cast %34 : vector<1x128x32xf32> to vector<128x32xf32>
    %c0_27 = arith.constant 0 : index
    %c0_28 = arith.constant 0 : index
    %c0_29 = arith.constant 0 : index
    %36 = vector.load %arg6[%c0_27, %c0_28, %c0_29] : memref<3x128x32xf32, #tpu.memory_space<vmem>>, vector<1x128x32xf32>
    %37 = vector.shape_cast %36 : vector<1x128x32xf32> to vector<128x32xf32>
    %c0_30 = arith.constant 0 : index
    %c0_31 = arith.constant 0 : index
    %c0_32 = arith.constant 0 : index
    %38 = vector.load %arg7[%c0_30, %c0_31, %c0_32] : memref<3x128x32xf32, #tpu.memory_space<vmem>>, vector<1x128x32xf32>
    %39 = vector.shape_cast %38 : vector<1x128x32xf32> to vector<128x32xf32>
    %c0_33 = arith.constant 0 : index
    %c0_34 = arith.constant 0 : index
    %c0_35 = arith.constant 0 : index
    %40 = vector.load %arg8[%c0_33, %c0_34, %c0_35] : memref<3x32x128xf32, #tpu.memory_space<vmem>>, vector<1x32x128xf32>
    %41 = vector.shape_cast %40 : vector<1x32x128xf32> to vector<32x128xf32>
    %c0_36 = arith.constant 0 : index
    %c0_37 = arith.constant 0 : index
    %c0_38 = arith.constant 0 : index
    %42 = vector.load %arg9[%c0_36, %c0_37, %c0_38] : memref<3x32x128xf32, #tpu.memory_space<vmem>>, vector<1x32x128xf32>
    %43 = vector.shape_cast %42 : vector<1x32x128xf32> to vector<32x128xf32>
    %c0_39 = arith.constant 0 : index
    %c0_40 = arith.constant 0 : index
    %c0_41 = arith.constant 0 : index
    %44 = vector.load %arg10[%c0_39, %c0_40, %c0_41] : memref<3x32x128xf32, #tpu.memory_space<vmem>>, vector<1x32x128xf32>
    %45 = vector.shape_cast %44 : vector<1x32x128xf32> to vector<32x128xf32>
    %cst_42 = arith.constant dense<0.000000e+00> : vector<16x32xf32>
    %46 = tpu.matmul %31, %35, %cst_42 {dimension_numbers = #tpu.dot_dimension_numbers<[1], [0], [0], [1], [0, 0, 1, 1], [], []>} : vector<16x128xf32>, vector<128x32xf32>, vector<16x32xf32> -> vector<16x32xf32>
    %c0_43 = arith.constant 0 : index
    %c0_44 = arith.constant 0 : index
    %c0_45 = arith.constant 0 : index
    %47 = vector.load %arg11[%c0_43, %c0_44, %c0_45] : memref<3x1x32xf32, #tpu.memory_space<vmem>>, vector<1x1x32xf32>
    %48 = vector.shape_cast %47 : vector<1x1x32xf32> to vector<1x32xf32>
    %c0_46 = arith.constant 0 : index
    %c0_47 = arith.constant 0 : index
    %c0_48 = arith.constant 0 : index
    %49 = vector.load %arg12[%c0_46, %c0_47, %c0_48] : memref<3x1x32xf32, #tpu.memory_space<vmem>>, vector<1x1x32xf32>
    %50 = vector.shape_cast %49 : vector<1x1x32xf32> to vector<1x32xf32>
    %cst_49 = arith.constant dense<0.000000e+00> : vector<32xf32>
    %51 = vector.multi_reduction <add>, %46, %cst_49 [0] : vector<16x32xf32> to vector<32xf32>
    %52 = vector.shape_cast %51 : vector<32xf32> to vector<1x32xf32>
    %cst_50 = arith.constant 6.250000e-02 : f32
    %53 = vector.broadcast %cst_50 : f32 to vector<1x32xf32>
    %54 = arith.mulf %52, %53 : vector<1x32xf32>
    %55 = arith.mulf %46, %46 : vector<16x32xf32>
    %cst_51 = arith.constant dense<0.000000e+00> : vector<32xf32>
    %56 = vector.multi_reduction <add>, %55, %cst_51 [0] : vector<16x32xf32> to vector<32xf32>
    %57 = vector.shape_cast %56 : vector<32xf32> to vector<1x32xf32>
    %cst_52 = arith.constant 6.250000e-02 : f32
    %58 = vector.broadcast %cst_52 : f32 to vector<1x32xf32>
    %59 = arith.mulf %57, %58 : vector<1x32xf32>
    %60 = arith.mulf %54, %54 : vector<1x32xf32>
    %61 = arith.subf %59, %60 : vector<1x32xf32>
    %cst_53 = arith.constant 9.99999974E-6 : f32
    %62 = vector.broadcast %cst_53 : f32 to vector<1x32xf32>
    %63 = arith.addf %61, %62 : vector<1x32xf32>
    %64 = math.rsqrt %63 : vector<1x32xf32>
    %65 = arith.mulf %64, %48 : vector<1x32xf32>
    %66 = vector.broadcast %54 : vector<1x32xf32> to vector<16x32xf32>
    %67 = arith.subf %46, %66 : vector<16x32xf32>
    %68 = vector.broadcast %65 : vector<1x32xf32> to vector<16x32xf32>
    %69 = arith.mulf %67, %68 : vector<16x32xf32>
    %70 = vector.broadcast %50 : vector<1x32xf32> to vector<16x32xf32>
    %71 = arith.addf %69, %70 : vector<16x32xf32>
    %cst_54 = arith.constant 0.000000e+00 : f32
    %72 = vector.broadcast %cst_54 : f32 to vector<16x32xf32>
    %73 = arith.maximumf %71, %72 : vector<16x32xf32>
    %cst_55 = arith.constant dense<0.000000e+00> : vector<16x32xf32>
    %74 = tpu.matmul %31, %37, %cst_55 {dimension_numbers = #tpu.dot_dimension_numbers<[1], [0], [0], [1], [0, 0, 1, 1], [], []>} : vector<16x128xf32>, vector<128x32xf32>, vector<16x32xf32> -> vector<16x32xf32>
    %cst_56 = arith.constant dense<0.000000e+00> : vector<16x32xf32>
    %75 = tpu.matmul %32, %74, %cst_56 {dimension_numbers = #tpu.dot_dimension_numbers<[1], [0], [0], [1], [0, 0, 1, 1], [], []>} : vector<16x16xf32>, vector<16x32xf32>, vector<16x32xf32> -> vector<16x32xf32>
    %c0_57 = arith.constant 0 : index
    %c0_58 = arith.constant 0 : index
    %c0_59 = arith.constant 0 : index
    %76 = vector.load %arg13[%c0_57, %c0_58, %c0_59] : memref<3x1x32xf32, #tpu.memory_space<vmem>>, vector<1x1x32xf32>
    %77 = vector.shape_cast %76 : vector<1x1x32xf32> to vector<1x32xf32>
    %c0_60 = arith.constant 0 : index
    %c0_61 = arith.constant 0 : index
    %c0_62 = arith.constant 0 : index
    %78 = vector.load %arg14[%c0_60, %c0_61, %c0_62] : memref<3x1x32xf32, #tpu.memory_space<vmem>>, vector<1x1x32xf32>
    %79 = vector.shape_cast %78 : vector<1x1x32xf32> to vector<1x32xf32>
    %cst_63 = arith.constant dense<0.000000e+00> : vector<32xf32>
    %80 = vector.multi_reduction <add>, %75, %cst_63 [0] : vector<16x32xf32> to vector<32xf32>
    %81 = vector.shape_cast %80 : vector<32xf32> to vector<1x32xf32>
    %cst_64 = arith.constant 6.250000e-02 : f32
    %82 = vector.broadcast %cst_64 : f32 to vector<1x32xf32>
    %83 = arith.mulf %81, %82 : vector<1x32xf32>
    %84 = arith.mulf %75, %75 : vector<16x32xf32>
    %cst_65 = arith.constant dense<0.000000e+00> : vector<32xf32>
    %85 = vector.multi_reduction <add>, %84, %cst_65 [0] : vector<16x32xf32> to vector<32xf32>
    %86 = vector.shape_cast %85 : vector<32xf32> to vector<1x32xf32>
    %cst_66 = arith.constant 6.250000e-02 : f32
    %87 = vector.broadcast %cst_66 : f32 to vector<1x32xf32>
    %88 = arith.mulf %86, %87 : vector<1x32xf32>
    %89 = arith.mulf %83, %83 : vector<1x32xf32>
    %90 = arith.subf %88, %89 : vector<1x32xf32>
    %cst_67 = arith.constant 9.99999974E-6 : f32
    %91 = vector.broadcast %cst_67 : f32 to vector<1x32xf32>
    %92 = arith.addf %90, %91 : vector<1x32xf32>
    %93 = math.rsqrt %92 : vector<1x32xf32>
    %94 = arith.mulf %93, %77 : vector<1x32xf32>
    %95 = vector.broadcast %83 : vector<1x32xf32> to vector<16x32xf32>
    %96 = arith.subf %75, %95 : vector<16x32xf32>
    %97 = vector.broadcast %94 : vector<1x32xf32> to vector<16x32xf32>
    %98 = arith.mulf %96, %97 : vector<16x32xf32>
    %99 = vector.broadcast %79 : vector<1x32xf32> to vector<16x32xf32>
    %100 = arith.addf %98, %99 : vector<16x32xf32>
    %cst_68 = arith.constant 0.000000e+00 : f32
    %101 = vector.broadcast %cst_68 : f32 to vector<16x32xf32>
    %102 = arith.maximumf %100, %101 : vector<16x32xf32>
    %cst_69 = arith.constant dense<0.000000e+00> : vector<16x32xf32>
    %103 = tpu.matmul %31, %39, %cst_69 {dimension_numbers = #tpu.dot_dimension_numbers<[1], [0], [0], [1], [0, 0, 1, 1], [], []>} : vector<16x128xf32>, vector<128x32xf32>, vector<16x32xf32> -> vector<16x32xf32>
    %cst_70 = arith.constant dense<0.000000e+00> : vector<16x32xf32>
    %104 = tpu.matmul %33, %103, %cst_70 {dimension_numbers = #tpu.dot_dimension_numbers<[1], [0], [0], [1], [0, 0, 1, 1], [], []>} : vector<16x16xf32>, vector<16x32xf32>, vector<16x32xf32> -> vector<16x32xf32>
    %c0_71 = arith.constant 0 : index
    %c0_72 = arith.constant 0 : index
    %c0_73 = arith.constant 0 : index
    %105 = vector.load %arg15[%c0_71, %c0_72, %c0_73] : memref<3x1x32xf32, #tpu.memory_space<vmem>>, vector<1x1x32xf32>
    %106 = vector.shape_cast %105 : vector<1x1x32xf32> to vector<1x32xf32>
    %c0_74 = arith.constant 0 : index
    %c0_75 = arith.constant 0 : index
    %c0_76 = arith.constant 0 : index
    %107 = vector.load %arg16[%c0_74, %c0_75, %c0_76] : memref<3x1x32xf32, #tpu.memory_space<vmem>>, vector<1x1x32xf32>
    %108 = vector.shape_cast %107 : vector<1x1x32xf32> to vector<1x32xf32>
    %cst_77 = arith.constant dense<0.000000e+00> : vector<32xf32>
    %109 = vector.multi_reduction <add>, %104, %cst_77 [0] : vector<16x32xf32> to vector<32xf32>
    %110 = vector.shape_cast %109 : vector<32xf32> to vector<1x32xf32>
    %cst_78 = arith.constant 6.250000e-02 : f32
    %111 = vector.broadcast %cst_78 : f32 to vector<1x32xf32>
    %112 = arith.mulf %110, %111 : vector<1x32xf32>
    %113 = arith.mulf %104, %104 : vector<16x32xf32>
    %cst_79 = arith.constant dense<0.000000e+00> : vector<32xf32>
    %114 = vector.multi_reduction <add>, %113, %cst_79 [0] : vector<16x32xf32> to vector<32xf32>
    %115 = vector.shape_cast %114 : vector<32xf32> to vector<1x32xf32>
    %cst_80 = arith.constant 6.250000e-02 : f32
    %116 = vector.broadcast %cst_80 : f32 to vector<1x32xf32>
    %117 = arith.mulf %115, %116 : vector<1x32xf32>
    %118 = arith.mulf %112, %112 : vector<1x32xf32>
    %119 = arith.subf %117, %118 : vector<1x32xf32>
    %cst_81 = arith.constant 9.99999974E-6 : f32
    %120 = vector.broadcast %cst_81 : f32 to vector<1x32xf32>
    %121 = arith.addf %119, %120 : vector<1x32xf32>
    %122 = math.rsqrt %121 : vector<1x32xf32>
    %123 = arith.mulf %122, %106 : vector<1x32xf32>
    %124 = vector.broadcast %112 : vector<1x32xf32> to vector<16x32xf32>
    %125 = arith.subf %104, %124 : vector<16x32xf32>
    %126 = vector.broadcast %123 : vector<1x32xf32> to vector<16x32xf32>
    %127 = arith.mulf %125, %126 : vector<16x32xf32>
    %128 = vector.broadcast %108 : vector<1x32xf32> to vector<16x32xf32>
    %129 = arith.addf %127, %128 : vector<16x32xf32>
    %cst_82 = arith.constant 0.000000e+00 : f32
    %130 = vector.broadcast %cst_82 : f32 to vector<16x32xf32>
    %131 = arith.maximumf %129, %130 : vector<16x32xf32>
    %cst_83 = arith.constant dense<0.000000e+00> : vector<16x128xf32>
    %132 = tpu.matmul %73, %41, %cst_83 {dimension_numbers = #tpu.dot_dimension_numbers<[1], [0], [0], [1], [0, 0, 1, 1], [], []>} : vector<16x32xf32>, vector<32x128xf32>, vector<16x128xf32> -> vector<16x128xf32>
    %cst_84 = arith.constant dense<0.000000e+00> : vector<16x128xf32>
    %133 = tpu.matmul %102, %43, %cst_84 {dimension_numbers = #tpu.dot_dimension_numbers<[1], [0], [0], [1], [0, 0, 1, 1], [], []>} : vector<16x32xf32>, vector<32x128xf32>, vector<16x128xf32> -> vector<16x128xf32>
    %134 = arith.addf %132, %133 : vector<16x128xf32>
    %cst_85 = arith.constant dense<0.000000e+00> : vector<16x128xf32>
    %135 = tpu.matmul %131, %45, %cst_85 {dimension_numbers = #tpu.dot_dimension_numbers<[1], [0], [0], [1], [0, 0, 1, 1], [], []>} : vector<16x32xf32>, vector<32x128xf32>, vector<16x128xf32> -> vector<16x128xf32>
    %136 = arith.addf %134, %135 : vector<16x128xf32>
    %c0_86 = arith.constant 0 : index
    %c0_87 = arith.constant 0 : index
    %c0_88 = arith.constant 0 : index
    %137 = vector.load %arg17[%c0_86, %c0_87, %c0_88] : memref<3x1x128xf32, #tpu.memory_space<vmem>>, vector<1x1x128xf32>
    %138 = vector.shape_cast %137 : vector<1x1x128xf32> to vector<1x128xf32>
    %c0_89 = arith.constant 0 : index
    %c0_90 = arith.constant 0 : index
    %c0_91 = arith.constant 0 : index
    %139 = vector.load %arg18[%c0_89, %c0_90, %c0_91] : memref<3x1x128xf32, #tpu.memory_space<vmem>>, vector<1x1x128xf32>
    %140 = vector.shape_cast %139 : vector<1x1x128xf32> to vector<1x128xf32>
    %cst_92 = arith.constant dense<0.000000e+00> : vector<128xf32>
    %141 = vector.multi_reduction <add>, %136, %cst_92 [0] : vector<16x128xf32> to vector<128xf32>
    %142 = vector.shape_cast %141 : vector<128xf32> to vector<1x128xf32>
    %cst_93 = arith.constant 6.250000e-02 : f32
    %143 = vector.broadcast %cst_93 : f32 to vector<1x128xf32>
    %144 = arith.mulf %142, %143 : vector<1x128xf32>
    %145 = arith.mulf %136, %136 : vector<16x128xf32>
    %cst_94 = arith.constant dense<0.000000e+00> : vector<128xf32>
    %146 = vector.multi_reduction <add>, %145, %cst_94 [0] : vector<16x128xf32> to vector<128xf32>
    %147 = vector.shape_cast %146 : vector<128xf32> to vector<1x128xf32>
    %cst_95 = arith.constant 6.250000e-02 : f32
    %148 = vector.broadcast %cst_95 : f32 to vector<1x128xf32>
    %149 = arith.mulf %147, %148 : vector<1x128xf32>
    %150 = arith.mulf %144, %144 : vector<1x128xf32>
    %151 = arith.subf %149, %150 : vector<1x128xf32>
    %cst_96 = arith.constant 9.99999974E-6 : f32
    %152 = vector.broadcast %cst_96 : f32 to vector<1x128xf32>
    %153 = arith.addf %151, %152 : vector<1x128xf32>
    %154 = math.rsqrt %153 : vector<1x128xf32>
    %155 = arith.mulf %154, %138 : vector<1x128xf32>
    %156 = vector.broadcast %144 : vector<1x128xf32> to vector<16x128xf32>
    %157 = arith.subf %136, %156 : vector<16x128xf32>
    %158 = vector.broadcast %155 : vector<1x128xf32> to vector<16x128xf32>
    %159 = arith.mulf %157, %158 : vector<16x128xf32>
    %160 = vector.broadcast %140 : vector<1x128xf32> to vector<16x128xf32>
    %161 = arith.addf %159, %160 : vector<16x128xf32>
    %162 = arith.addf %161, %31 : vector<16x128xf32>
    %cst_97 = arith.constant 0.000000e+00 : f32
    %163 = vector.broadcast %cst_97 : f32 to vector<16x128xf32>
    %164 = arith.maximumf %162, %163 : vector<16x128xf32>
    %c1_98 = arith.constant 1 : index
    %c0_99 = arith.constant 0 : index
    %c0_100 = arith.constant 0 : index
    %165 = vector.load %arg5[%c1_98, %c0_99, %c0_100] : memref<3x128x32xf32, #tpu.memory_space<vmem>>, vector<1x128x32xf32>
    %166 = vector.shape_cast %165 : vector<1x128x32xf32> to vector<128x32xf32>
    %c1_101 = arith.constant 1 : index
    %c0_102 = arith.constant 0 : index
    %c0_103 = arith.constant 0 : index
    %167 = vector.load %arg6[%c1_101, %c0_102, %c0_103] : memref<3x128x32xf32, #tpu.memory_space<vmem>>, vector<1x128x32xf32>
    %168 = vector.shape_cast %167 : vector<1x128x32xf32> to vector<128x32xf32>
    %c1_104 = arith.constant 1 : index
    %c0_105 = arith.constant 0 : index
    %c0_106 = arith.constant 0 : index
    %169 = vector.load %arg7[%c1_104, %c0_105, %c0_106] : memref<3x128x32xf32, #tpu.memory_space<vmem>>, vector<1x128x32xf32>
    %170 = vector.shape_cast %169 : vector<1x128x32xf32> to vector<128x32xf32>
    %c1_107 = arith.constant 1 : index
    %c0_108 = arith.constant 0 : index
    %c0_109 = arith.constant 0 : index
    %171 = vector.load %arg8[%c1_107, %c0_108, %c0_109] : memref<3x32x128xf32, #tpu.memory_space<vmem>>, vector<1x32x128xf32>
    %172 = vector.shape_cast %171 : vector<1x32x128xf32> to vector<32x128xf32>
    %c1_110 = arith.constant 1 : index
    %c0_111 = arith.constant 0 : index
    %c0_112 = arith.constant 0 : index
    %173 = vector.load %arg9[%c1_110, %c0_111, %c0_112] : memref<3x32x128xf32, #tpu.memory_space<vmem>>, vector<1x32x128xf32>
    %174 = vector.shape_cast %173 : vector<1x32x128xf32> to vector<32x128xf32>
    %c1_113 = arith.constant 1 : index
    %c0_114 = arith.constant 0 : index
    %c0_115 = arith.constant 0 : index
    %175 = vector.load %arg10[%c1_113, %c0_114, %c0_115] : memref<3x32x128xf32, #tpu.memory_space<vmem>>, vector<1x32x128xf32>
    %176 = vector.shape_cast %175 : vector<1x32x128xf32> to vector<32x128xf32>
    %cst_116 = arith.constant dense<0.000000e+00> : vector<16x32xf32>
    %177 = tpu.matmul %164, %166, %cst_116 {dimension_numbers = #tpu.dot_dimension_numbers<[1], [0], [0], [1], [0, 0, 1, 1], [], []>} : vector<16x128xf32>, vector<128x32xf32>, vector<16x32xf32> -> vector<16x32xf32>
    %c1_117 = arith.constant 1 : index
    %c0_118 = arith.constant 0 : index
    %c0_119 = arith.constant 0 : index
    %178 = vector.load %arg11[%c1_117, %c0_118, %c0_119] : memref<3x1x32xf32, #tpu.memory_space<vmem>>, vector<1x1x32xf32>
    %179 = vector.shape_cast %178 : vector<1x1x32xf32> to vector<1x32xf32>
    %c1_120 = arith.constant 1 : index
    %c0_121 = arith.constant 0 : index
    %c0_122 = arith.constant 0 : index
    %180 = vector.load %arg12[%c1_120, %c0_121, %c0_122] : memref<3x1x32xf32, #tpu.memory_space<vmem>>, vector<1x1x32xf32>
    %181 = vector.shape_cast %180 : vector<1x1x32xf32> to vector<1x32xf32>
    %cst_123 = arith.constant dense<0.000000e+00> : vector<32xf32>
    %182 = vector.multi_reduction <add>, %177, %cst_123 [0] : vector<16x32xf32> to vector<32xf32>
    %183 = vector.shape_cast %182 : vector<32xf32> to vector<1x32xf32>
    %cst_124 = arith.constant 6.250000e-02 : f32
    %184 = vector.broadcast %cst_124 : f32 to vector<1x32xf32>
    %185 = arith.mulf %183, %184 : vector<1x32xf32>
    %186 = arith.mulf %177, %177 : vector<16x32xf32>
    %cst_125 = arith.constant dense<0.000000e+00> : vector<32xf32>
    %187 = vector.multi_reduction <add>, %186, %cst_125 [0] : vector<16x32xf32> to vector<32xf32>
    %188 = vector.shape_cast %187 : vector<32xf32> to vector<1x32xf32>
    %cst_126 = arith.constant 6.250000e-02 : f32
    %189 = vector.broadcast %cst_126 : f32 to vector<1x32xf32>
    %190 = arith.mulf %188, %189 : vector<1x32xf32>
    %191 = arith.mulf %185, %185 : vector<1x32xf32>
    %192 = arith.subf %190, %191 : vector<1x32xf32>
    %cst_127 = arith.constant 9.99999974E-6 : f32
    %193 = vector.broadcast %cst_127 : f32 to vector<1x32xf32>
    %194 = arith.addf %192, %193 : vector<1x32xf32>
    %195 = math.rsqrt %194 : vector<1x32xf32>
    %196 = arith.mulf %195, %179 : vector<1x32xf32>
    %197 = vector.broadcast %185 : vector<1x32xf32> to vector<16x32xf32>
    %198 = arith.subf %177, %197 : vector<16x32xf32>
    %199 = vector.broadcast %196 : vector<1x32xf32> to vector<16x32xf32>
    %200 = arith.mulf %198, %199 : vector<16x32xf32>
    %201 = vector.broadcast %181 : vector<1x32xf32> to vector<16x32xf32>
    %202 = arith.addf %200, %201 : vector<16x32xf32>
    %cst_128 = arith.constant 0.000000e+00 : f32
    %203 = vector.broadcast %cst_128 : f32 to vector<16x32xf32>
    %204 = arith.maximumf %202, %203 : vector<16x32xf32>
    %cst_129 = arith.constant dense<0.000000e+00> : vector<16x32xf32>
    %205 = tpu.matmul %164, %168, %cst_129 {dimension_numbers = #tpu.dot_dimension_numbers<[1], [0], [0], [1], [0, 0, 1, 1], [], []>} : vector<16x128xf32>, vector<128x32xf32>, vector<16x32xf32> -> vector<16x32xf32>
    %cst_130 = arith.constant dense<0.000000e+00> : vector<16x32xf32>
    %206 = tpu.matmul %32, %205, %cst_130 {dimension_numbers = #tpu.dot_dimension_numbers<[1], [0], [0], [1], [0, 0, 1, 1], [], []>} : vector<16x16xf32>, vector<16x32xf32>, vector<16x32xf32> -> vector<16x32xf32>
    %c1_131 = arith.constant 1 : index
    %c0_132 = arith.constant 0 : index
    %c0_133 = arith.constant 0 : index
    %207 = vector.load %arg13[%c1_131, %c0_132, %c0_133] : memref<3x1x32xf32, #tpu.memory_space<vmem>>, vector<1x1x32xf32>
    %208 = vector.shape_cast %207 : vector<1x1x32xf32> to vector<1x32xf32>
    %c1_134 = arith.constant 1 : index
    %c0_135 = arith.constant 0 : index
    %c0_136 = arith.constant 0 : index
    %209 = vector.load %arg14[%c1_134, %c0_135, %c0_136] : memref<3x1x32xf32, #tpu.memory_space<vmem>>, vector<1x1x32xf32>
    %210 = vector.shape_cast %209 : vector<1x1x32xf32> to vector<1x32xf32>
    %cst_137 = arith.constant dense<0.000000e+00> : vector<32xf32>
    %211 = vector.multi_reduction <add>, %206, %cst_137 [0] : vector<16x32xf32> to vector<32xf32>
    %212 = vector.shape_cast %211 : vector<32xf32> to vector<1x32xf32>
    %cst_138 = arith.constant 6.250000e-02 : f32
    %213 = vector.broadcast %cst_138 : f32 to vector<1x32xf32>
    %214 = arith.mulf %212, %213 : vector<1x32xf32>
    %215 = arith.mulf %206, %206 : vector<16x32xf32>
    %cst_139 = arith.constant dense<0.000000e+00> : vector<32xf32>
    %216 = vector.multi_reduction <add>, %215, %cst_139 [0] : vector<16x32xf32> to vector<32xf32>
    %217 = vector.shape_cast %216 : vector<32xf32> to vector<1x32xf32>
    %cst_140 = arith.constant 6.250000e-02 : f32
    %218 = vector.broadcast %cst_140 : f32 to vector<1x32xf32>
    %219 = arith.mulf %217, %218 : vector<1x32xf32>
    %220 = arith.mulf %214, %214 : vector<1x32xf32>
    %221 = arith.subf %219, %220 : vector<1x32xf32>
    %cst_141 = arith.constant 9.99999974E-6 : f32
    %222 = vector.broadcast %cst_141 : f32 to vector<1x32xf32>
    %223 = arith.addf %221, %222 : vector<1x32xf32>
    %224 = math.rsqrt %223 : vector<1x32xf32>
    %225 = arith.mulf %224, %208 : vector<1x32xf32>
    %226 = vector.broadcast %214 : vector<1x32xf32> to vector<16x32xf32>
    %227 = arith.subf %206, %226 : vector<16x32xf32>
    %228 = vector.broadcast %225 : vector<1x32xf32> to vector<16x32xf32>
    %229 = arith.mulf %227, %228 : vector<16x32xf32>
    %230 = vector.broadcast %210 : vector<1x32xf32> to vector<16x32xf32>
    %231 = arith.addf %229, %230 : vector<16x32xf32>
    %cst_142 = arith.constant 0.000000e+00 : f32
    %232 = vector.broadcast %cst_142 : f32 to vector<16x32xf32>
    %233 = arith.maximumf %231, %232 : vector<16x32xf32>
    %cst_143 = arith.constant dense<0.000000e+00> : vector<16x32xf32>
    %234 = tpu.matmul %164, %170, %cst_143 {dimension_numbers = #tpu.dot_dimension_numbers<[1], [0], [0], [1], [0, 0, 1, 1], [], []>} : vector<16x128xf32>, vector<128x32xf32>, vector<16x32xf32> -> vector<16x32xf32>
    %cst_144 = arith.constant dense<0.000000e+00> : vector<16x32xf32>
    %235 = tpu.matmul %33, %234, %cst_144 {dimension_numbers = #tpu.dot_dimension_numbers<[1], [0], [0], [1], [0, 0, 1, 1], [], []>} : vector<16x16xf32>, vector<16x32xf32>, vector<16x32xf32> -> vector<16x32xf32>
    %c1_145 = arith.constant 1 : index
    %c0_146 = arith.constant 0 : index
    %c0_147 = arith.constant 0 : index
    %236 = vector.load %arg15[%c1_145, %c0_146, %c0_147] : memref<3x1x32xf32, #tpu.memory_space<vmem>>, vector<1x1x32xf32>
    %237 = vector.shape_cast %236 : vector<1x1x32xf32> to vector<1x32xf32>
    %c1_148 = arith.constant 1 : index
    %c0_149 = arith.constant 0 : index
    %c0_150 = arith.constant 0 : index
    %238 = vector.load %arg16[%c1_148, %c0_149, %c0_150] : memref<3x1x32xf32, #tpu.memory_space<vmem>>, vector<1x1x32xf32>
    %239 = vector.shape_cast %238 : vector<1x1x32xf32> to vector<1x32xf32>
    %cst_151 = arith.constant dense<0.000000e+00> : vector<32xf32>
    %240 = vector.multi_reduction <add>, %235, %cst_151 [0] : vector<16x32xf32> to vector<32xf32>
    %241 = vector.shape_cast %240 : vector<32xf32> to vector<1x32xf32>
    %cst_152 = arith.constant 6.250000e-02 : f32
    %242 = vector.broadcast %cst_152 : f32 to vector<1x32xf32>
    %243 = arith.mulf %241, %242 : vector<1x32xf32>
    %244 = arith.mulf %235, %235 : vector<16x32xf32>
    %cst_153 = arith.constant dense<0.000000e+00> : vector<32xf32>
    %245 = vector.multi_reduction <add>, %244, %cst_153 [0] : vector<16x32xf32> to vector<32xf32>
    %246 = vector.shape_cast %245 : vector<32xf32> to vector<1x32xf32>
    %cst_154 = arith.constant 6.250000e-02 : f32
    %247 = vector.broadcast %cst_154 : f32 to vector<1x32xf32>
    %248 = arith.mulf %246, %247 : vector<1x32xf32>
    %249 = arith.mulf %243, %243 : vector<1x32xf32>
    %250 = arith.subf %248, %249 : vector<1x32xf32>
    %cst_155 = arith.constant 9.99999974E-6 : f32
    %251 = vector.broadcast %cst_155 : f32 to vector<1x32xf32>
    %252 = arith.addf %250, %251 : vector<1x32xf32>
    %253 = math.rsqrt %252 : vector<1x32xf32>
    %254 = arith.mulf %253, %237 : vector<1x32xf32>
    %255 = vector.broadcast %243 : vector<1x32xf32> to vector<16x32xf32>
    %256 = arith.subf %235, %255 : vector<16x32xf32>
    %257 = vector.broadcast %254 : vector<1x32xf32> to vector<16x32xf32>
    %258 = arith.mulf %256, %257 : vector<16x32xf32>
    %259 = vector.broadcast %239 : vector<1x32xf32> to vector<16x32xf32>
    %260 = arith.addf %258, %259 : vector<16x32xf32>
    %cst_156 = arith.constant 0.000000e+00 : f32
    %261 = vector.broadcast %cst_156 : f32 to vector<16x32xf32>
    %262 = arith.maximumf %260, %261 : vector<16x32xf32>
    %cst_157 = arith.constant dense<0.000000e+00> : vector<16x128xf32>
    %263 = tpu.matmul %204, %172, %cst_157 {dimension_numbers = #tpu.dot_dimension_numbers<[1], [0], [0], [1], [0, 0, 1, 1], [], []>} : vector<16x32xf32>, vector<32x128xf32>, vector<16x128xf32> -> vector<16x128xf32>
    %cst_158 = arith.constant dense<0.000000e+00> : vector<16x128xf32>
    %264 = tpu.matmul %233, %174, %cst_158 {dimension_numbers = #tpu.dot_dimension_numbers<[1], [0], [0], [1], [0, 0, 1, 1], [], []>} : vector<16x32xf32>, vector<32x128xf32>, vector<16x128xf32> -> vector<16x128xf32>
    %265 = arith.addf %263, %264 : vector<16x128xf32>
    %cst_159 = arith.constant dense<0.000000e+00> : vector<16x128xf32>
    %266 = tpu.matmul %262, %176, %cst_159 {dimension_numbers = #tpu.dot_dimension_numbers<[1], [0], [0], [1], [0, 0, 1, 1], [], []>} : vector<16x32xf32>, vector<32x128xf32>, vector<16x128xf32> -> vector<16x128xf32>
    %267 = arith.addf %265, %266 : vector<16x128xf32>
    %c1_160 = arith.constant 1 : index
    %c0_161 = arith.constant 0 : index
    %c0_162 = arith.constant 0 : index
    %268 = vector.load %arg17[%c1_160, %c0_161, %c0_162] : memref<3x1x128xf32, #tpu.memory_space<vmem>>, vector<1x1x128xf32>
    %269 = vector.shape_cast %268 : vector<1x1x128xf32> to vector<1x128xf32>
    %c1_163 = arith.constant 1 : index
    %c0_164 = arith.constant 0 : index
    %c0_165 = arith.constant 0 : index
    %270 = vector.load %arg18[%c1_163, %c0_164, %c0_165] : memref<3x1x128xf32, #tpu.memory_space<vmem>>, vector<1x1x128xf32>
    %271 = vector.shape_cast %270 : vector<1x1x128xf32> to vector<1x128xf32>
    %cst_166 = arith.constant dense<0.000000e+00> : vector<128xf32>
    %272 = vector.multi_reduction <add>, %267, %cst_166 [0] : vector<16x128xf32> to vector<128xf32>
    %273 = vector.shape_cast %272 : vector<128xf32> to vector<1x128xf32>
    %cst_167 = arith.constant 6.250000e-02 : f32
    %274 = vector.broadcast %cst_167 : f32 to vector<1x128xf32>
    %275 = arith.mulf %273, %274 : vector<1x128xf32>
    %276 = arith.mulf %267, %267 : vector<16x128xf32>
    %cst_168 = arith.constant dense<0.000000e+00> : vector<128xf32>
    %277 = vector.multi_reduction <add>, %276, %cst_168 [0] : vector<16x128xf32> to vector<128xf32>
    %278 = vector.shape_cast %277 : vector<128xf32> to vector<1x128xf32>
    %cst_169 = arith.constant 6.250000e-02 : f32
    %279 = vector.broadcast %cst_169 : f32 to vector<1x128xf32>
    %280 = arith.mulf %278, %279 : vector<1x128xf32>
    %281 = arith.mulf %275, %275 : vector<1x128xf32>
    %282 = arith.subf %280, %281 : vector<1x128xf32>
    %cst_170 = arith.constant 9.99999974E-6 : f32
    %283 = vector.broadcast %cst_170 : f32 to vector<1x128xf32>
    %284 = arith.addf %282, %283 : vector<1x128xf32>
    %285 = math.rsqrt %284 : vector<1x128xf32>
    %286 = arith.mulf %285, %269 : vector<1x128xf32>
    %287 = vector.broadcast %275 : vector<1x128xf32> to vector<16x128xf32>
    %288 = arith.subf %267, %287 : vector<16x128xf32>
    %289 = vector.broadcast %286 : vector<1x128xf32> to vector<16x128xf32>
    %290 = arith.mulf %288, %289 : vector<16x128xf32>
    %291 = vector.broadcast %271 : vector<1x128xf32> to vector<16x128xf32>
    %292 = arith.addf %290, %291 : vector<16x128xf32>
    %293 = arith.addf %292, %164 : vector<16x128xf32>
    %cst_171 = arith.constant 0.000000e+00 : f32
    %294 = vector.broadcast %cst_171 : f32 to vector<16x128xf32>
    %295 = arith.maximumf %293, %294 : vector<16x128xf32>
    %c2 = arith.constant 2 : index
    %c0_172 = arith.constant 0 : index
    %c0_173 = arith.constant 0 : index
    %296 = vector.load %arg5[%c2, %c0_172, %c0_173] : memref<3x128x32xf32, #tpu.memory_space<vmem>>, vector<1x128x32xf32>
    %297 = vector.shape_cast %296 : vector<1x128x32xf32> to vector<128x32xf32>
    %c2_174 = arith.constant 2 : index
    %c0_175 = arith.constant 0 : index
    %c0_176 = arith.constant 0 : index
    %298 = vector.load %arg6[%c2_174, %c0_175, %c0_176] : memref<3x128x32xf32, #tpu.memory_space<vmem>>, vector<1x128x32xf32>
    %299 = vector.shape_cast %298 : vector<1x128x32xf32> to vector<128x32xf32>
    %c2_177 = arith.constant 2 : index
    %c0_178 = arith.constant 0 : index
    %c0_179 = arith.constant 0 : index
    %300 = vector.load %arg7[%c2_177, %c0_178, %c0_179] : memref<3x128x32xf32, #tpu.memory_space<vmem>>, vector<1x128x32xf32>
    %301 = vector.shape_cast %300 : vector<1x128x32xf32> to vector<128x32xf32>
    %c2_180 = arith.constant 2 : index
    %c0_181 = arith.constant 0 : index
    %c0_182 = arith.constant 0 : index
    %302 = vector.load %arg8[%c2_180, %c0_181, %c0_182] : memref<3x32x128xf32, #tpu.memory_space<vmem>>, vector<1x32x128xf32>
    %303 = vector.shape_cast %302 : vector<1x32x128xf32> to vector<32x128xf32>
    %c2_183 = arith.constant 2 : index
    %c0_184 = arith.constant 0 : index
    %c0_185 = arith.constant 0 : index
    %304 = vector.load %arg9[%c2_183, %c0_184, %c0_185] : memref<3x32x128xf32, #tpu.memory_space<vmem>>, vector<1x32x128xf32>
    %305 = vector.shape_cast %304 : vector<1x32x128xf32> to vector<32x128xf32>
    %c2_186 = arith.constant 2 : index
    %c0_187 = arith.constant 0 : index
    %c0_188 = arith.constant 0 : index
    %306 = vector.load %arg10[%c2_186, %c0_187, %c0_188] : memref<3x32x128xf32, #tpu.memory_space<vmem>>, vector<1x32x128xf32>
    %307 = vector.shape_cast %306 : vector<1x32x128xf32> to vector<32x128xf32>
    %cst_189 = arith.constant dense<0.000000e+00> : vector<16x32xf32>
    %308 = tpu.matmul %295, %297, %cst_189 {dimension_numbers = #tpu.dot_dimension_numbers<[1], [0], [0], [1], [0, 0, 1, 1], [], []>} : vector<16x128xf32>, vector<128x32xf32>, vector<16x32xf32> -> vector<16x32xf32>
    %c2_190 = arith.constant 2 : index
    %c0_191 = arith.constant 0 : index
    %c0_192 = arith.constant 0 : index
    %309 = vector.load %arg11[%c2_190, %c0_191, %c0_192] : memref<3x1x32xf32, #tpu.memory_space<vmem>>, vector<1x1x32xf32>
    %310 = vector.shape_cast %309 : vector<1x1x32xf32> to vector<1x32xf32>
    %c2_193 = arith.constant 2 : index
    %c0_194 = arith.constant 0 : index
    %c0_195 = arith.constant 0 : index
    %311 = vector.load %arg12[%c2_193, %c0_194, %c0_195] : memref<3x1x32xf32, #tpu.memory_space<vmem>>, vector<1x1x32xf32>
    %312 = vector.shape_cast %311 : vector<1x1x32xf32> to vector<1x32xf32>
    %cst_196 = arith.constant dense<0.000000e+00> : vector<32xf32>
    %313 = vector.multi_reduction <add>, %308, %cst_196 [0] : vector<16x32xf32> to vector<32xf32>
    %314 = vector.shape_cast %313 : vector<32xf32> to vector<1x32xf32>
    %cst_197 = arith.constant 6.250000e-02 : f32
    %315 = vector.broadcast %cst_197 : f32 to vector<1x32xf32>
    %316 = arith.mulf %314, %315 : vector<1x32xf32>
    %317 = arith.mulf %308, %308 : vector<16x32xf32>
    %cst_198 = arith.constant dense<0.000000e+00> : vector<32xf32>
    %318 = vector.multi_reduction <add>, %317, %cst_198 [0] : vector<16x32xf32> to vector<32xf32>
    %319 = vector.shape_cast %318 : vector<32xf32> to vector<1x32xf32>
    %cst_199 = arith.constant 6.250000e-02 : f32
    %320 = vector.broadcast %cst_199 : f32 to vector<1x32xf32>
    %321 = arith.mulf %319, %320 : vector<1x32xf32>
    %322 = arith.mulf %316, %316 : vector<1x32xf32>
    %323 = arith.subf %321, %322 : vector<1x32xf32>
    %cst_200 = arith.constant 9.99999974E-6 : f32
    %324 = vector.broadcast %cst_200 : f32 to vector<1x32xf32>
    %325 = arith.addf %323, %324 : vector<1x32xf32>
    %326 = math.rsqrt %325 : vector<1x32xf32>
    %327 = arith.mulf %326, %310 : vector<1x32xf32>
    %328 = vector.broadcast %316 : vector<1x32xf32> to vector<16x32xf32>
    %329 = arith.subf %308, %328 : vector<16x32xf32>
    %330 = vector.broadcast %327 : vector<1x32xf32> to vector<16x32xf32>
    %331 = arith.mulf %329, %330 : vector<16x32xf32>
    %332 = vector.broadcast %312 : vector<1x32xf32> to vector<16x32xf32>
    %333 = arith.addf %331, %332 : vector<16x32xf32>
    %cst_201 = arith.constant 0.000000e+00 : f32
    %334 = vector.broadcast %cst_201 : f32 to vector<16x32xf32>
    %335 = arith.maximumf %333, %334 : vector<16x32xf32>
    %cst_202 = arith.constant dense<0.000000e+00> : vector<16x32xf32>
    %336 = tpu.matmul %295, %299, %cst_202 {dimension_numbers = #tpu.dot_dimension_numbers<[1], [0], [0], [1], [0, 0, 1, 1], [], []>} : vector<16x128xf32>, vector<128x32xf32>, vector<16x32xf32> -> vector<16x32xf32>
    %cst_203 = arith.constant dense<0.000000e+00> : vector<16x32xf32>
    %337 = tpu.matmul %32, %336, %cst_203 {dimension_numbers = #tpu.dot_dimension_numbers<[1], [0], [0], [1], [0, 0, 1, 1], [], []>} : vector<16x16xf32>, vector<16x32xf32>, vector<16x32xf32> -> vector<16x32xf32>
    %c2_204 = arith.constant 2 : index
    %c0_205 = arith.constant 0 : index
    %c0_206 = arith.constant 0 : index
    %338 = vector.load %arg13[%c2_204, %c0_205, %c0_206] : memref<3x1x32xf32, #tpu.memory_space<vmem>>, vector<1x1x32xf32>
    %339 = vector.shape_cast %338 : vector<1x1x32xf32> to vector<1x32xf32>
    %c2_207 = arith.constant 2 : index
    %c0_208 = arith.constant 0 : index
    %c0_209 = arith.constant 0 : index
    %340 = vector.load %arg14[%c2_207, %c0_208, %c0_209] : memref<3x1x32xf32, #tpu.memory_space<vmem>>, vector<1x1x32xf32>
    %341 = vector.shape_cast %340 : vector<1x1x32xf32> to vector<1x32xf32>
    %cst_210 = arith.constant dense<0.000000e+00> : vector<32xf32>
    %342 = vector.multi_reduction <add>, %337, %cst_210 [0] : vector<16x32xf32> to vector<32xf32>
    %343 = vector.shape_cast %342 : vector<32xf32> to vector<1x32xf32>
    %cst_211 = arith.constant 6.250000e-02 : f32
    %344 = vector.broadcast %cst_211 : f32 to vector<1x32xf32>
    %345 = arith.mulf %343, %344 : vector<1x32xf32>
    %346 = arith.mulf %337, %337 : vector<16x32xf32>
    %cst_212 = arith.constant dense<0.000000e+00> : vector<32xf32>
    %347 = vector.multi_reduction <add>, %346, %cst_212 [0] : vector<16x32xf32> to vector<32xf32>
    %348 = vector.shape_cast %347 : vector<32xf32> to vector<1x32xf32>
    %cst_213 = arith.constant 6.250000e-02 : f32
    %349 = vector.broadcast %cst_213 : f32 to vector<1x32xf32>
    %350 = arith.mulf %348, %349 : vector<1x32xf32>
    %351 = arith.mulf %345, %345 : vector<1x32xf32>
    %352 = arith.subf %350, %351 : vector<1x32xf32>
    %cst_214 = arith.constant 9.99999974E-6 : f32
    %353 = vector.broadcast %cst_214 : f32 to vector<1x32xf32>
    %354 = arith.addf %352, %353 : vector<1x32xf32>
    %355 = math.rsqrt %354 : vector<1x32xf32>
    %356 = arith.mulf %355, %339 : vector<1x32xf32>
    %357 = vector.broadcast %345 : vector<1x32xf32> to vector<16x32xf32>
    %358 = arith.subf %337, %357 : vector<16x32xf32>
    %359 = vector.broadcast %356 : vector<1x32xf32> to vector<16x32xf32>
    %360 = arith.mulf %358, %359 : vector<16x32xf32>
    %361 = vector.broadcast %341 : vector<1x32xf32> to vector<16x32xf32>
    %362 = arith.addf %360, %361 : vector<16x32xf32>
    %cst_215 = arith.constant 0.000000e+00 : f32
    %363 = vector.broadcast %cst_215 : f32 to vector<16x32xf32>
    %364 = arith.maximumf %362, %363 : vector<16x32xf32>
    %cst_216 = arith.constant dense<0.000000e+00> : vector<16x32xf32>
    %365 = tpu.matmul %295, %301, %cst_216 {dimension_numbers = #tpu.dot_dimension_numbers<[1], [0], [0], [1], [0, 0, 1, 1], [], []>} : vector<16x128xf32>, vector<128x32xf32>, vector<16x32xf32> -> vector<16x32xf32>
    %cst_217 = arith.constant dense<0.000000e+00> : vector<16x32xf32>
    %366 = tpu.matmul %33, %365, %cst_217 {dimension_numbers = #tpu.dot_dimension_numbers<[1], [0], [0], [1], [0, 0, 1, 1], [], []>} : vector<16x16xf32>, vector<16x32xf32>, vector<16x32xf32> -> vector<16x32xf32>
    %c2_218 = arith.constant 2 : index
    %c0_219 = arith.constant 0 : index
    %c0_220 = arith.constant 0 : index
    %367 = vector.load %arg15[%c2_218, %c0_219, %c0_220] : memref<3x1x32xf32, #tpu.memory_space<vmem>>, vector<1x1x32xf32>
    %368 = vector.shape_cast %367 : vector<1x1x32xf32> to vector<1x32xf32>
    %c2_221 = arith.constant 2 : index
    %c0_222 = arith.constant 0 : index
    %c0_223 = arith.constant 0 : index
    %369 = vector.load %arg16[%c2_221, %c0_222, %c0_223] : memref<3x1x32xf32, #tpu.memory_space<vmem>>, vector<1x1x32xf32>
    %370 = vector.shape_cast %369 : vector<1x1x32xf32> to vector<1x32xf32>
    %cst_224 = arith.constant dense<0.000000e+00> : vector<32xf32>
    %371 = vector.multi_reduction <add>, %366, %cst_224 [0] : vector<16x32xf32> to vector<32xf32>
    %372 = vector.shape_cast %371 : vector<32xf32> to vector<1x32xf32>
    %cst_225 = arith.constant 6.250000e-02 : f32
    %373 = vector.broadcast %cst_225 : f32 to vector<1x32xf32>
    %374 = arith.mulf %372, %373 : vector<1x32xf32>
    %375 = arith.mulf %366, %366 : vector<16x32xf32>
    %cst_226 = arith.constant dense<0.000000e+00> : vector<32xf32>
    %376 = vector.multi_reduction <add>, %375, %cst_226 [0] : vector<16x32xf32> to vector<32xf32>
    %377 = vector.shape_cast %376 : vector<32xf32> to vector<1x32xf32>
    %cst_227 = arith.constant 6.250000e-02 : f32
    %378 = vector.broadcast %cst_227 : f32 to vector<1x32xf32>
    %379 = arith.mulf %377, %378 : vector<1x32xf32>
    %380 = arith.mulf %374, %374 : vector<1x32xf32>
    %381 = arith.subf %379, %380 : vector<1x32xf32>
    %cst_228 = arith.constant 9.99999974E-6 : f32
    %382 = vector.broadcast %cst_228 : f32 to vector<1x32xf32>
    %383 = arith.addf %381, %382 : vector<1x32xf32>
    %384 = math.rsqrt %383 : vector<1x32xf32>
    %385 = arith.mulf %384, %368 : vector<1x32xf32>
    %386 = vector.broadcast %374 : vector<1x32xf32> to vector<16x32xf32>
    %387 = arith.subf %366, %386 : vector<16x32xf32>
    %388 = vector.broadcast %385 : vector<1x32xf32> to vector<16x32xf32>
    %389 = arith.mulf %387, %388 : vector<16x32xf32>
    %390 = vector.broadcast %370 : vector<1x32xf32> to vector<16x32xf32>
    %391 = arith.addf %389, %390 : vector<16x32xf32>
    %cst_229 = arith.constant 0.000000e+00 : f32
    %392 = vector.broadcast %cst_229 : f32 to vector<16x32xf32>
    %393 = arith.maximumf %391, %392 : vector<16x32xf32>
    %cst_230 = arith.constant dense<0.000000e+00> : vector<16x128xf32>
    %394 = tpu.matmul %335, %303, %cst_230 {dimension_numbers = #tpu.dot_dimension_numbers<[1], [0], [0], [1], [0, 0, 1, 1], [], []>} : vector<16x32xf32>, vector<32x128xf32>, vector<16x128xf32> -> vector<16x128xf32>
    %cst_231 = arith.constant dense<0.000000e+00> : vector<16x128xf32>
    %395 = tpu.matmul %364, %305, %cst_231 {dimension_numbers = #tpu.dot_dimension_numbers<[1], [0], [0], [1], [0, 0, 1, 1], [], []>} : vector<16x32xf32>, vector<32x128xf32>, vector<16x128xf32> -> vector<16x128xf32>
    %396 = arith.addf %394, %395 : vector<16x128xf32>
    %cst_232 = arith.constant dense<0.000000e+00> : vector<16x128xf32>
    %397 = tpu.matmul %393, %307, %cst_232 {dimension_numbers = #tpu.dot_dimension_numbers<[1], [0], [0], [1], [0, 0, 1, 1], [], []>} : vector<16x32xf32>, vector<32x128xf32>, vector<16x128xf32> -> vector<16x128xf32>
    %398 = arith.addf %396, %397 : vector<16x128xf32>
    %c2_233 = arith.constant 2 : index
    %c0_234 = arith.constant 0 : index
    %c0_235 = arith.constant 0 : index
    %399 = vector.load %arg17[%c2_233, %c0_234, %c0_235] : memref<3x1x128xf32, #tpu.memory_space<vmem>>, vector<1x1x128xf32>
    %400 = vector.shape_cast %399 : vector<1x1x128xf32> to vector<1x128xf32>
    %c2_236 = arith.constant 2 : index
    %c0_237 = arith.constant 0 : index
    %c0_238 = arith.constant 0 : index
    %401 = vector.load %arg18[%c2_236, %c0_237, %c0_238] : memref<3x1x128xf32, #tpu.memory_space<vmem>>, vector<1x1x128xf32>
    %402 = vector.shape_cast %401 : vector<1x1x128xf32> to vector<1x128xf32>
    %cst_239 = arith.constant dense<0.000000e+00> : vector<128xf32>
    %403 = vector.multi_reduction <add>, %398, %cst_239 [0] : vector<16x128xf32> to vector<128xf32>
    %404 = vector.shape_cast %403 : vector<128xf32> to vector<1x128xf32>
    %cst_240 = arith.constant 6.250000e-02 : f32
    %405 = vector.broadcast %cst_240 : f32 to vector<1x128xf32>
    %406 = arith.mulf %404, %405 : vector<1x128xf32>
    %407 = arith.mulf %398, %398 : vector<16x128xf32>
    %cst_241 = arith.constant dense<0.000000e+00> : vector<128xf32>
    %408 = vector.multi_reduction <add>, %407, %cst_241 [0] : vector<16x128xf32> to vector<128xf32>
    %409 = vector.shape_cast %408 : vector<128xf32> to vector<1x128xf32>
    %cst_242 = arith.constant 6.250000e-02 : f32
    %410 = vector.broadcast %cst_242 : f32 to vector<1x128xf32>
    %411 = arith.mulf %409, %410 : vector<1x128xf32>
    %412 = arith.mulf %406, %406 : vector<1x128xf32>
    %413 = arith.subf %411, %412 : vector<1x128xf32>
    %cst_243 = arith.constant 9.99999974E-6 : f32
    %414 = vector.broadcast %cst_243 : f32 to vector<1x128xf32>
    %415 = arith.addf %413, %414 : vector<1x128xf32>
    %416 = math.rsqrt %415 : vector<1x128xf32>
    %417 = arith.mulf %416, %400 : vector<1x128xf32>
    %418 = vector.broadcast %406 : vector<1x128xf32> to vector<16x128xf32>
    %419 = arith.subf %398, %418 : vector<16x128xf32>
    %420 = vector.broadcast %417 : vector<1x128xf32> to vector<16x128xf32>
    %421 = arith.mulf %419, %420 : vector<16x128xf32>
    %422 = vector.broadcast %402 : vector<1x128xf32> to vector<16x128xf32>
    %423 = arith.addf %421, %422 : vector<16x128xf32>
    %424 = arith.addf %423, %295 : vector<16x128xf32>
    %cst_244 = arith.constant 0.000000e+00 : f32
    %425 = vector.broadcast %cst_244 : f32 to vector<16x128xf32>
    %426 = arith.maximumf %424, %425 : vector<16x128xf32>
    %c0_245 = arith.constant 0 : index
    %c0_246 = arith.constant 0 : index
    %c0_247 = arith.constant 0 : index
    %427 = vector.load %arg19[%c0_245, %c0_246, %c0_247] : memref<1x16x128xf32, #tpu.memory_space<vmem>>, vector<1x16x128xf32>
    %428 = vector.shape_cast %427 : vector<1x16x128xf32> to vector<16x128xf32>
    %429 = vector.shape_cast %426 : vector<16x128xf32> to vector<1x16x128xf32>
    tpu.vector_store %arg19[%c0_245, %c0_246, %c0_247], %429 {strides = array<i32>} : memref<1x16x128xf32, #tpu.memory_space<vmem>>, vector<1x16x128xf32>,
    return
  }
  func.func @transform_0(%arg0: i32) -> (i32, i32, i32, i32) {
    %c0_i32 = arith.constant 0 : i32
    %c0_i32_0 = arith.constant 0 : i32
    %c0_i32_1 = arith.constant 0 : i32
    %c0_i32_2 = arith.constant 0 : i32
    return %arg0, %c0_i32, %c0_i32_0, %c0_i32_1 : i32, i32, i32, i32
  }
  func.func @transform_1(%arg0: i32) -> (i32, i32) {
    %c0_i32 = arith.constant 0 : i32
    %c0_i32_0 = arith.constant 0 : i32
    %c0_i32_1 = arith.constant 0 : i32
    return %c0_i32, %c0_i32_0 : i32, i32
  }
  func.func @transform_2(%arg0: i32) -> (i32, i32) {
    %c0_i32 = arith.constant 0 : i32
    %c0_i32_0 = arith.constant 0 : i32
    %c0_i32_1 = arith.constant 0 : i32
    return %c0_i32, %c0_i32_0 : i32, i32
  }
  func.func @transform_3(%arg0: i32) -> (i32, i32) {
    %c0_i32 = arith.constant 0 : i32
    %c0_i32_0 = arith.constant 0 : i32
    %c0_i32_1 = arith.constant 0 : i32
    return %c0_i32, %c0_i32_0 : i32, i32
  }
  func.func @transform_4(%arg0: i32) -> (i32, i32, i32) {
    %c0_i32 = arith.constant 0 : i32
    %c0_i32_0 = arith.constant 0 : i32
    %c0_i32_1 = arith.constant 0 : i32
    %c0_i32_2 = arith.constant 0 : i32
    return %c0_i32, %c0_i32_0, %c0_i32_1 : i32, i32, i32
  }
  func.func @transform_5(%arg0: i32) -> (i32, i32, i32) {
    %c0_i32 = arith.constant 0 : i32
    %c0_i32_0 = arith.constant 0 : i32
    %c0_i32_1 = arith.constant 0 : i32
    %c0_i32_2 = arith.constant 0 : i32
    return %c0_i32, %c0_i32_0, %c0_i32_1 : i32, i32, i32
  }
  func.func @transform_6(%arg0: i32) -> (i32, i32, i32) {
    %c0_i32 = arith.constant 0 : i32
    %c0_i32_0 = arith.constant 0 : i32
    %c0_i32_1 = arith.constant 0 : i32
    %c0_i32_2 = arith.constant 0 : i32
    return %c0_i32, %c0_i32_0, %c0_i32_1 : i32, i32, i32
  }
  func.func @transform_7(%arg0: i32) -> (i32, i32, i32) {
    %c0_i32 = arith.constant 0 : i32
    %c0_i32_0 = arith.constant 0 : i32
    %c0_i32_1 = arith.constant 0 : i32
    %c0_i32_2 = arith.constant 0 : i32
    return %c0_i32, %c0_i32_0, %c0_i32_1 : i32, i32, i32
  }
  func.func @transform_8(%arg0: i32) -> (i32, i32, i32) {
    %c0_i32 = arith.constant 0 : i32
    %c0_i32_0 = arith.constant 0 : i32
    %c0_i32_1 = arith.constant 0 : i32
    %c0_i32_2 = arith.constant 0 : i32
    return %c0_i32, %c0_i32_0, %c0_i32_1 : i32, i32, i32
  }
  func.func @transform_9(%arg0: i32) -> (i32, i32, i32) {
    %c0_i32 = arith.constant 0 : i32
    %c0_i32_0 = arith.constant 0 : i32
    %c0_i32_1 = arith.constant 0 : i32
    %c0_i32_2 = arith.constant 0 : i32
    return %c0_i32, %c0_i32_0, %c0_i32_1 : i32, i32, i32
  }
  func.func @transform_10(%arg0: i32) -> (i32, i32, i32) {
    %c0_i32 = arith.constant 0 : i32
    %c0_i32_0 = arith.constant 0 : i32
    %c0_i32_1 = arith.constant 0 : i32
    %c0_i32_2 = arith.constant 0 : i32
    return %c0_i32, %c0_i32_0, %c0_i32_1 : i32, i32, i32
  }
  func.func @transform_11(%arg0: i32) -> (i32, i32, i32) {
    %c0_i32 = arith.constant 0 : i32
    %c0_i32_0 = arith.constant 0 : i32
    %c0_i32_1 = arith.constant 0 : i32
    %c0_i32_2 = arith.constant 0 : i32
    return %c0_i32, %c0_i32_0, %c0_i32_1 : i32, i32, i32
  }
  func.func @transform_12(%arg0: i32) -> (i32, i32, i32) {
    %c0_i32 = arith.constant 0 : i32
    %c0_i32_0 = arith.constant 0 : i32
    %c0_i32_1 = arith.constant 0 : i32
    %c0_i32_2 = arith.constant 0 : i32
    return %c0_i32, %c0_i32_0, %c0_i32_1 : i32, i32, i32
  }
  func.func @transform_13(%arg0: i32) -> (i32, i32, i32) {
    %c0_i32 = arith.constant 0 : i32
    %c0_i32_0 = arith.constant 0 : i32
    %c0_i32_1 = arith.constant 0 : i32
    %c0_i32_2 = arith.constant 0 : i32
    return %c0_i32, %c0_i32_0, %c0_i32_1 : i32, i32, i32
  }
  func.func @transform_14(%arg0: i32) -> (i32, i32, i32) {
    %c0_i32 = arith.constant 0 : i32
    %c0_i32_0 = arith.constant 0 : i32
    %c0_i32_1 = arith.constant 0 : i32
    %c0_i32_2 = arith.constant 0 : i32
    return %c0_i32, %c0_i32_0, %c0_i32_1 : i32, i32, i32
  }
  func.func @transform_15(%arg0: i32) -> (i32, i32, i32) {
    %c0_i32 = arith.constant 0 : i32
    %c0_i32_0 = arith.constant 0 : i32
    %c0_i32_1 = arith.constant 0 : i32
    %c0_i32_2 = arith.constant 0 : i32
    return %c0_i32, %c0_i32_0, %c0_i32_1 : i32, i32, i32
  }
  func.func @transform_16(%arg0: i32) -> (i32, i32, i32) {
    %c0_i32 = arith.constant 0 : i32
    %c0_i32_0 = arith.constant 0 : i32
    %c0_i32_1 = arith.constant 0 : i32
    %c0_i32_2 = arith.constant 0 : i32
    return %c0_i32, %c0_i32_0, %c0_i32_1 : i32, i32, i32
  }
  func.func @transform_17(%arg0: i32) -> (i32, i32, i32) {
    %c0_i32 = arith.constant 0 : i32
    %c0_i32_0 = arith.constant 0 : i32
    %c0_i32_1 = arith.constant 0 : i32
    %c0_i32_2 = arith.constant 0 : i32
    return %c0_i32, %c0_i32_0, %c0_i32_1 : i32, i32, i32
  }
  func.func @transform_18(%arg0: i32) -> (i32, i32, i32) {
    %c0_i32 = arith.constant 0 : i32
    %c0_i32_0 = arith.constant 0 : i32
    %c0_i32_1 = arith.constant 0 : i32
    return %arg0, %c0_i32, %c0_i32_0 : i32, i32, i32
  }
}

</mosaic_0001>

<bundles_post_ra>
// kernel: sent_gcn_forward.1
= control target key start
LH: loop header
LB: loop body
LE: loop exit
PB: predicated region body
PF: predicated region fallthrough
CT: control target
= control target key end

     0   :  { %s5016_s27 = smov 0   ;;  %s6146_s0 = inlined_call_operand.vmem [shape: f32[2,2,128,64], index: 0, kind: input, shape index: {}]   ;;  %s6147_s1 = inlined_call_operand.vmem [shape: f32[8,128], index: 1, kind: input, shape index: {}]   ;;  %s6148_s2 = inlined_call_operand.vmem [shape: f32[16,16], index: 2, kind: input, shape index: {}]   ;;  %s6149_s3 = inlined_call_operand.vmem [shape: f32[16,16], index: 3, kind: input, shape index: {}]   ;;  %s6150_s4 = inlined_call_operand.vmem [shape: f32[3,128,32], index: 4, kind: input, shape index: {}]   ;;  %s6151_s5 = inlined_call_operand.vmem [shape: f32[3,128,32], index: 5, kind: input, shape index: {}]   ;;  %s6152_s6 = inlined_call_operand.vmem [shape: f32[3,128,32], index: 6, kind: input, shape index: {}]   ;;  %s6153_s7 = inlined_call_operand.vmem [shape: f32[3,32,128], index: 7, kind: input, shape index: {}]   ;;  %s6154_s8 = inlined_call_operand.vmem [shape: f32[3,32,128], index: 8, kind: input, shape index: {}]   ;;  %s6155_s9 = inlined_call_operand.vmem [shape: f32[3,32,128], index: 9, kind: input, shape index: {}]   ;;  %s6156_s10 = inlined_call_operand.vmem [shape: f32[3,1,32], index: 10, kind: input, shape index: {}]   ;;  %s6157_s11 = inlined_call_operand.vmem [shape: f32[3,1,32], index: 11, kind: input, shape index: {}]   ;;  %s6158_s12 = inlined_call_operand.vmem [shape: f32[3,1,32], index: 12, kind: input, shape index: {}]   ;;  %s6159_s13 = inlined_call_operand.vmem [shape: f32[3,1,32], index: 13, kind: input, shape index: {}]   ;;  %s6160_s14 = inlined_call_operand.vmem [shape: f32[3,1,32], index: 14, kind: input, shape index: {}]   ;;  %s6161_s15 = inlined_call_operand.vmem [shape: f32[3,1,32], index: 15, kind: input, shape index: {}]   ;;  %s6162_s16 = inlined_call_operand.vmem [shape: f32[3,1,128], index: 16, kind: input, shape index: {}]   ;;  %s6163_s17 = inlined_call_operand.vmem [shape: f32[3,1,128], index: 17, kind: input, shape index: {}]   ;;  %s6164_s18 = inlined_call_operand.vmem [shape: f32[2,16,128], index: 18, kind: output, shape index: {}]  }
   0x1   :  { %6166 = sst [smem:[#allocation3_spill]] %s6146_s0 }
   0x2   :  { %6167 = sst [smem:[#allocation4_spill]] %s6147_s1 }
   0x3   :  { %6168 = sst [smem:[#allocation5_spill]] %s6148_s2 }
   0x4 LB: > { %s3720_s28 = sadd.s32 4294967295, %s4917_s27   ;;  %p3724_p0 = scmp.ge.s32.totalorder %s4917_s27, 1  ;;  %s4917_s27 = sphi %s5016_s27, %s28_s27  }
   0x5   : > { %p512_p1 = scmp.lt.s32.totalorder %s4917_s27, 3 }
   0x7   : > { %p513_p2 = pnand %p3724_p0, %p512_p1 }
   0x8   : > { %p566_p3 = scmp.lt.s32.totalorder (!%p513_p2), %s3720_s28, 1  ;;  %s6169_s19 = sld [smem:[#allocation3_spill]] (!%p513_p2) }
   0x9   : > { %516 = sbr.rel (%p513_p2) target bundleno = 2965 (0xb95), region = 92  ;;  %s6170_s22 = sld [smem:[#allocation4_spill]] (!%p513_p2) }
   0xa   : > { %s6171_s0 = sld [smem:[#allocation5_spill]] (!%p513_p2) }
   0xe   : > { %v4919_v0 = vmov 0.0   ;;  %vm4920_vm0 = vmmov 0   ;;  %s6173_s28 = smov (!%p566_p3, %s3720_s28), 1  ;;  %vm663_vm1 = vcmask 523264   ;;  %v1038_v56 = vld [vmem:[%s6150_s4 + $0x78] sm:$0xff]  ;;  %v1037_v57 = vld [vmem:[%s6150_s4 + $0x70] sm:$0xff] }
   0xf   : > { %4269 = vmatprep.subr.mxu0 %v4919_v0  ;;  %4301 = vmatprep.mubr.msk.f32.mxu0 %vm4920_vm0, %v4919_v0  ;;  %s3959_s29 = sshll.u32 %s6173_s28, 8  ;;  %v576_v17 = vld [vmem:[%s6170_s22] sm:$0xff]  ;;  %v1036_v58 = vld [vmem:[%s6150_s4 + $0x68] sm:$0xff]  ;;  %v1034_v60 = vld [vmem:[%s6150_s4 + $0x58] sm:$0xff]  ;;  %vm1281_vm2 = vcmask 130048   ;;  %vm1160_vm3 = vcmask 261120  }
  0x10   : > { %4304 = vmatprep.subr.mxu1 %v4919_v0  ;;  %4336 = vmatprep.mubr.msk.f32.mxu1 %vm4920_vm0, %v4919_v0  ;;  %s5036_s1 = scalar_lea.vmem %s6169_s19, %s3959_s29  ;;  %v1035_v59 = vld [vmem:[%s6150_s4 + $0x60] sm:$0xff]  ;;  %v1033_v61 = vld [vmem:[%s6150_s4 + $0x50] sm:$0xff]  ;;  %v1032_v62 = vld [vmem:[%s6150_s4 + $0x48] sm:$0xff]  ;;  %s3960_s20 = sshll.u32 %s6173_s28, 4 }
  0x11   : > { %v5039_v1 = vld [vmem:[%s5036_s1 + $0x78] sm:$0xff]  ;;  %v5042_v2 = vld [vmem:[%s5036_s1 + $0x70] sm:$0xff]  ;;  %v5047_v3 = vld [vmem:[%s5036_s1 + $0x68] sm:$0xff]  ;;  %s575_s2 = scalar_lea.vmem %s6164_s18, %s3960_s20 }
  0x12   : > { %4270 = vmatpush3.msra.mxu0 %v5039_v1  ;;  %v5052_v4 = vld [vmem:[%s5036_s1 + $0x60] sm:$0xff]  ;;  %v5057_v5 = vld [vmem:[%s5036_s1 + $0x58] sm:$0xff]  ;;  %v5062_v6 = vld [vmem:[%s5036_s1 + $0x50] sm:$0xff]  ;;  %4305 = vmatpush3.xpose.msk.msra.mxu1 %vm663_vm1, %v5039_v1 }
  0x13   : > { %4271 = vmatprep.subr.mxu0 %v4919_v0  ;;  %v5067_v7 = vld [vmem:[%s5036_s1 + $0x48] sm:$0xff]  ;;  %v5072_v8 = vld [vmem:[%s5036_s1 + $0x40] sm:$0xff]  ;;  %v5077_v9 = vld [vmem:[%s5036_s1 + $0x38] sm:$0xff]  ;;  %4306 = vmatprep.subr.mxu1 %v4919_v0 }
  0x14   : > { %4272 = vmatpush3.msra.mxu0 %v5042_v2  ;;  %v5082_v10 = vld [vmem:[%s5036_s1 + $0x30] sm:$0xff]  ;;  %v5087_v11 = vld [vmem:[%s5036_s1 + $0x28] sm:$0xff]  ;;  %v5092_v12 = vld [vmem:[%s5036_s1 + $0x20] sm:$0xff] }
  0x15   : > { %4273 = vmatprep.subr.mxu0 %v4919_v0  ;;  %v5097_v13 = vld [vmem:[%s5036_s1 + $0x18] sm:$0xff]  ;;  %v5102_v14 = vld [vmem:[%s5036_s1 + $0x10] sm:$0xff]  ;;  %v5107_v15 = vld [vmem:[%s5036_s1 + $0x8] sm:$0xff] }
  0x16   : > { %4274 = vmatpush3.msra.mxu0 %v5047_v3  ;;  %v5112_v16 = vld [vmem:[%s5036_s1] sm:$0xff]  ;;  %v3761_v18 = vld [vmem:[%s5036_s1 + $0xf8] sm:$0xff]  ;;  %v3760_v19 = vld [vmem:[%s5036_s1 + $0xf0] sm:$0xff]  ;;  %4307 = vmatpush3.xpose.msk.msra.mxu1 %vm663_vm1, %v5042_v2 }
  0x17   : > { %4275 = vmatprep.subr.mxu0 %v4919_v0  ;;  %v3759_v20 = vld [vmem:[%s5036_s1 + $0xe8] sm:$0xff]  ;;  %v3758_v21 = vld [vmem:[%s5036_s1 + $0xe0] sm:$0xff]  ;;  %v3757_v22 = vld [vmem:[%s5036_s1 + $0xd8] sm:$0xff]  ;;  %4308 = vmatprep.subr.mxu1 %v4919_v0 }
  0x18   : > { %4276 = vmatpush3.msra.mxu0 %v5052_v4  ;;  %v3756_v23 = vld [vmem:[%s5036_s1 + $0xd0] sm:$0xff]  ;;  %v3755_v24 = vld [vmem:[%s5036_s1 + $0xc8] sm:$0xff]  ;;  %v3754_v25 = vld [vmem:[%s5036_s1 + $0xc0] sm:$0xff] }
  0x19   : > { %4277 = vmatprep.subr.mxu0 %v4919_v0  ;;  %v3753_v26 = vld [vmem:[%s5036_s1 + $0xb8] sm:$0xff]  ;;  %v5141_v27 = vld [vmem:[%s5036_s1 + $0xb0] sm:$0xff]  ;;  %v5145_v28 = vld [vmem:[%s5036_s1 + $0xa8] sm:$0xff] }
  0x1a   : > { %4278 = vmatpush3.msra.mxu0 %v5057_v5  ;;  %v5150_v29 = vld [vmem:[%s5036_s1 + $0xa0] sm:$0xff]  ;;  %v5155_v30 = vld [vmem:[%s5036_s1 + $0x98] sm:$0xff]  ;;  %v5160_v31 = vld [vmem:[%s5036_s1 + $0x90] sm:$0xff]  ;;  %4309 = vmatpush3.xpose.msk.msra.mxu1 %vm663_vm1, %v5047_v3 }
  0x1b   : > { %4279 = vmatprep.subr.mxu0 %v4919_v0  ;;  %v5165_v32 = vld [vmem:[%s5036_s1 + $0x88] sm:$0xff]  ;;  %v5170_v33 = vld [vmem:[%s5036_s1 + $0x80] sm:$0xff]  ;;  %4310 = vmatprep.subr.mxu1 %v4919_v0  ;;  %v1029_v1 = vld [vmem:[%s6150_s4 + $0x30] sm:$0xff] }
  0x1c   : > { %4280 = vmatpush3.msra.mxu0 %v5062_v6  ;;  %v1031_v63 = vld [vmem:[%s6150_s4 + $0x40] sm:$0xff]  ;;  %v1028_v2 = vld [vmem:[%s6150_s4 + $0x28] sm:$0xff] }
  0x1d   : > { %4281 = vmatprep.subr.mxu0 %v4919_v0  ;;  %v1027_v3 = vld [vmem:[%s6150_s4 + $0x20] sm:$0xff] }
  0x1e   : > { %4282 = vmatpush3.msra.mxu0 %v5067_v7  ;;  %4311 = vmatpush3.xpose.msk.msra.mxu1 %vm663_vm1, %v5052_v4  ;;  %v1026_v4 = vld [vmem:[%s6150_s4 + $0x18] sm:$0xff] }
  0x1f   : > { %4283 = vmatprep.subr.mxu0 %v4919_v0  ;;  %4312 = vmatprep.subr.mxu1 %v4919_v0 }
  0x20   : > { %4284 = vmatpush3.msra.mxu0 %v5072_v8 }
  0x21   : > { %4285 = vmatprep.subr.mxu0 %v4919_v0 }
  0x22   : > { %4286 = vmatpush3.msra.mxu0 %v5077_v9  ;;  %4313 = vmatpush3.xpose.msk.msra.mxu1 %vm663_vm1, %v5057_v5  ;;  %v1025_v5 = vld [vmem:[%s6150_s4 + $0x10] sm:$0xff] }
  0x23   : > { %4287 = vmatprep.subr.mxu0 %v4919_v0  ;;  %4314 = vmatprep.subr.mxu1 %v4919_v0 }
  0x24   : > { %4288 = vmatpush3.msra.mxu0 %v5082_v10 }
  0x25   : > { %4289 = vmatprep.subr.mxu0 %v4919_v0 }
  0x26   : > { %4290 = vmatpush3.msra.mxu0 %v5087_v11  ;;  %4315 = vmatpush3.xpose.msk.msra.mxu1 %vm663_vm1, %v5062_v6  ;;  %v1024_v6 = vld [vmem:[%s6150_s4 + $0x8] sm:$0xff] }
  0x27   : > { %4291 = vmatprep.subr.mxu0 %v4919_v0  ;;  %4316 = vmatprep.subr.mxu1 %v4919_v0 }
  0x28   : > { %4292 = vmatpush3.msra.mxu0 %v5092_v12 }
  0x29   : > { %4293 = vmatprep.subr.mxu0 %v4919_v0 }
  0x2a   : > { %4294 = vmatpush3.msra.mxu0 %v5097_v13  ;;  %4317 = vmatpush3.xpose.msk.msra.mxu1 %vm663_vm1, %v5067_v7  ;;  %v1023_v7 = vld [vmem:[%s6150_s4] sm:$0xff] }
  0x2b   : > { %4295 = vmatprep.subr.mxu0 %v4919_v0  ;;  %4318 = vmatprep.subr.mxu1 %v4919_v0 }
  0x2c   : > { %4296 = vmatpush3.msra.mxu0 %v5102_v14 }
  0x2d   : > { %4297 = vmatprep.subr.mxu0 %v4919_v0 }
  0x2e   : > { %4298 = vmatpush3.msra.mxu0 %v5107_v15  ;;  %4319 = vmatpush3.xpose.msk.msra.mxu1 %vm663_vm1, %v5072_v8  ;;  %v1054_v8 = vld [vmem:[%s6151_s5 + $0x78] sm:$0xff] }
  0x2f   : > { %4299 = vmatprep.subr.mxu0 %v4919_v0  ;;  %4320 = vmatprep.subr.mxu1 %v4919_v0 }
  0x30   : > { %4300 = vmatpush3.msra.mxu0 %v5112_v16 }
  0x31   : > { %4302 = vmatmul.mubr.f32.vlgmr.msra.gmra.mxu0 %v576_v17  ;;  %4339 = vmatprep.subr.mxu0 %v4919_v0 }
  0x32   : > { %4340 = vmatpush3.msra.mxu0 %v3761_v18  ;;  %4371 = vmatprep.mubr.msk.f32.mxu0 %vm4920_vm0, %v4919_v0 }
  0x33   : > { %4341 = vmatprep.subr.mxu0 %v4919_v0  ;;  %4321 = vmatpush3.xpose.msk.msra.mxu1 %vm663_vm1, %v5077_v9 }
  0x34   : > { %4342 = vmatpush3.msra.mxu0 %v3760_v19  ;;  %4322 = vmatprep.subr.mxu1 %v4919_v0 }
  0x35   : > { %4343 = vmatprep.subr.mxu0 %v4919_v0 }
  0x36   : > { %4344 = vmatpush3.msra.mxu0 %v3759_v20 }
  0x37   : > { %4345 = vmatprep.subr.mxu0 %v4919_v0  ;;  %4323 = vmatpush3.xpose.msk.msra.mxu1 %vm663_vm1, %v5082_v10 }
  0x38   : > { %4346 = vmatpush3.msra.mxu0 %v3758_v21  ;;  %4324 = vmatprep.subr.mxu1 %v4919_v0 }
  0x39   : > { %4347 = vmatprep.subr.mxu0 %v4919_v0 }
  0x3a   : > { %4348 = vmatpush3.msra.mxu0 %v3757_v22 }
  0x3b   : > { %4349 = vmatprep.subr.mxu0 %v4919_v0  ;;  %4325 = vmatpush3.xpose.msk.msra.mxu1 %vm663_vm1, %v5087_v11 }
  0x3c   : > { %4350 = vmatpush3.msra.mxu0 %v3756_v23  ;;  %4326 = vmatprep.subr.mxu1 %v4919_v0 }
  0x3d   : > { %4351 = vmatprep.subr.mxu0 %v4919_v0 }
  0x3e   : > { %4352 = vmatpush3.msra.mxu0 %v3755_v24 }
  0x3f   : > { %4353 = vmatprep.subr.mxu0 %v4919_v0  ;;  %4327 = vmatpush3.xpose.msk.msra.mxu1 %vm663_vm1, %v5092_v12  ;;  %v1053_v12 = vld [vmem:[%s6151_s5 + $0x70] sm:$0xff] }
  0x40   : > { %4354 = vmatpush3.msra.mxu0 %v3754_v25  ;;  %4328 = vmatprep.subr.mxu1 %v4919_v0 }
  0x41   : > { %4355 = vmatprep.subr.mxu0 %v4919_v0 }
  0x42   : > { %4356 = vmatpush3.msra.mxu0 %v3753_v26 }
  0x43   : > { %4357 = vmatprep.subr.mxu0 %v4919_v0  ;;  %4329 = vmatpush3.xpose.msk.msra.mxu1 %vm663_vm1, %v5097_v13 }
  0x44   : > { %4358 = vmatpush3.msra.mxu0 %v5141_v27  ;;  %4330 = vmatprep.subr.mxu1 %v4919_v0 }
  0x45   : > { %4359 = vmatprep.subr.mxu0 %v4919_v0 }
  0x46   : > { %4360 = vmatpush3.msra.mxu0 %v5145_v28 }
  0x47   : > { %4361 = vmatprep.subr.mxu0 %v4919_v0  ;;  %4331 = vmatpush3.xpose.msk.msra.mxu1 %vm663_vm1, %v5102_v14  ;;  %v1052_v14 = vld [vmem:[%s6151_s5 + $0x68] sm:$0xff] }
  0x48   : > { %4362 = vmatpush3.msra.mxu0 %v5150_v29  ;;  %4332 = vmatprep.subr.mxu1 %v4919_v0 }
  0x49   : > { %4363 = vmatprep.subr.mxu0 %v4919_v0 }
  0x4a   : > { %4364 = vmatpush3.msra.mxu0 %v5155_v30 }
  0x4b   : > { %4365 = vmatprep.subr.mxu0 %v4919_v0  ;;  %4333 = vmatpush3.xpose.msk.msra.mxu1 %vm663_vm1, %v5107_v15  ;;  %v1051_v15 = vld [vmem:[%s6151_s5 + $0x60] sm:$0xff] }
  0x4c   : > { %4366 = vmatpush3.msra.mxu0 %v5160_v31  ;;  %4334 = vmatprep.subr.mxu1 %v4919_v0 }
  0x4d   : > { %4367 = vmatprep.subr.mxu0 %v4919_v0 }
  0x4e   : > { %4368 = vmatpush3.msra.mxu0 %v5165_v32 }
  0x4f   : > { %4369 = vmatprep.subr.mxu0 %v4919_v0  ;;  %4335 = vmatpush3.xpose.msk.msra.mxu1 %vm663_vm1, %v5112_v16  ;;  %v1050_v16 = vld [vmem:[%s6151_s5 + $0x58] sm:$0xff] }
  0x50   : > { %4370 = vmatpush3.msra.mxu0 %v5170_v33  ;;  %4409 = vmatprep.subr.mxu1 %v1038_v56 }
  0x51   : > { %4372 = vmatmul.mubr.f32.vlgmr.msra.gmra.mxu0 %v576_v17  ;;  %4374 = vmatprep.subr.mxu0 %v4919_v0  ;;  %v1049_v17 = vld [vmem:[%s6151_s5 + $0x50] sm:$0xff] }
  0x52   : > { %4406 = vmatprep.mubr.msk.f32.mxu0 %vm4920_vm0, %v4919_v0  ;;  %4375 = vmatpush3.xpose.msk.msra.mxu0 %vm663_vm1, %v3761_v18  ;;  %v1048_v18 = vld [vmem:[%s6151_s5 + $0x48] sm:$0xff] }
  0x53   : > { %4376 = vmatprep.subr.mxu0 %v4919_v0 }
  0x56   : > { %4377 = vmatpush3.xpose.msk.msra.mxu0 %vm663_vm1, %v3760_v19  ;;  %v1047_v19 = vld [vmem:[%s6151_s5 + $0x40] sm:$0xff] }
  0x57   : > { %4378 = vmatprep.subr.mxu0 %v4919_v0 }
  0x5a   : > { %4379 = vmatpush3.xpose.msk.msra.mxu0 %vm663_vm1, %v3759_v20  ;;  %v1046_v20 = vld [vmem:[%s6151_s5 + $0x38] sm:$0xff] }
  0x5b   : > { %4380 = vmatprep.subr.mxu0 %v4919_v0 }
  0x5e   : > { %4381 = vmatpush3.xpose.msk.msra.mxu0 %vm663_vm1, %v3758_v21  ;;  %v1045_v21 = vld [vmem:[%s6151_s5 + $0x30] sm:$0xff] }
  0x5f   : > { %4382 = vmatprep.subr.mxu0 %v4919_v0 }
  0x62   : > { %4383 = vmatpush3.xpose.msk.msra.mxu0 %vm663_vm1, %v3757_v22  ;;  %v1044_v22 = vld [vmem:[%s6151_s5 + $0x28] sm:$0xff] }
  0x63   : > { %4384 = vmatprep.subr.mxu0 %v4919_v0 }
  0x66   : > { %4385 = vmatpush3.xpose.msk.msra.mxu0 %vm663_vm1, %v3756_v23  ;;  %v1043_v23 = vld [vmem:[%s6151_s5 + $0x20] sm:$0xff] }
  0x67   : > { %4386 = vmatprep.subr.mxu0 %v4919_v0 }
  0x6a   : > { %4387 = vmatpush3.xpose.msk.msra.mxu0 %vm663_vm1, %v3755_v24  ;;  %v1042_v24 = vld [vmem:[%s6151_s5 + $0x18] sm:$0xff] }
  0x6b   : > { %4388 = vmatprep.subr.mxu0 %v4919_v0 }
  0x6e   : > { %4389 = vmatpush3.xpose.msk.msra.mxu0 %vm663_vm1, %v3754_v25  ;;  %v1041_v25 = vld [vmem:[%s6151_s5 + $0x10] sm:$0xff] }
  0x6f   : > { %4390 = vmatprep.subr.mxu0 %v4919_v0 }
  0x72   : > { %4391 = vmatpush3.xpose.msk.msra.mxu0 %vm663_vm1, %v3753_v26  ;;  %v1040_v26 = vld [vmem:[%s6151_s5 + $0x8] sm:$0xff] }
  0x73   : > { %4392 = vmatprep.subr.mxu0 %v4919_v0 }
  0x76   : > { %4393 = vmatpush3.xpose.msk.msra.mxu0 %vm663_vm1, %v5141_v27  ;;  %v1039_v27 = vld [vmem:[%s6151_s5] sm:$0xff] }
  0x77   : > { %4394 = vmatprep.subr.mxu0 %v4919_v0 }
  0x7a   : > { %4395 = vmatpush3.xpose.msk.msra.mxu0 %vm663_vm1, %v5145_v28  ;;  %v1070_v28 = vld [vmem:[%s6152_s6 + $0x78] sm:$0xff] }
  0x7b   : > { %4396 = vmatprep.subr.mxu0 %v4919_v0 }
  0x7e   : > { %4397 = vmatpush3.xpose.msk.msra.mxu0 %vm663_vm1, %v5150_v29  ;;  %v1069_v29 = vld [vmem:[%s6152_s6 + $0x70] sm:$0xff] }
  0x7f   : > { %4398 = vmatprep.subr.mxu0 %v4919_v0 }
  0x82   : > { %4399 = vmatpush3.xpose.msk.msra.mxu0 %vm663_vm1, %v5155_v30  ;;  %v1068_v30 = vld [vmem:[%s6152_s6 + $0x68] sm:$0xff] }
  0x83   : > { %4400 = vmatprep.subr.mxu0 %v4919_v0 }
  0x86   : > { %4401 = vmatpush3.xpose.msk.msra.mxu0 %vm663_vm1, %v5160_v31  ;;  %v1067_v31 = vld [vmem:[%s6152_s6 + $0x60] sm:$0xff] }
  0x87   : > { %4402 = vmatprep.subr.mxu0 %v4919_v0 }
  0x8a   : > { %4403 = vmatpush3.xpose.msk.msra.mxu0 %vm663_vm1, %v5165_v32  ;;  %v1066_v32 = vld [vmem:[%s6152_s6 + $0x58] sm:$0xff] }
  0x8b   : > { %4404 = vmatprep.subr.mxu0 %v4919_v0  ;;  %v1030_v0 = vld [vmem:[%s6150_s4 + $0x38] sm:$0xff] }
  0x8e   : > { %4405 = vmatpush3.xpose.msk.msra.mxu0 %vm663_vm1, %v5170_v33  ;;  %v1065_v33 = vld [vmem:[%s6152_s6 + $0x50] sm:$0xff] }
  0xf1   : > { %v659_v34 = vpop.f32.mrf.mxu0 }
  0xf2   : > { %v664_v35 = vsel %vm663_vm1, %v659_v34, -inf }
  0xf3   : > { %665 = vmax.xlane.f32.xlu0 %v664_v35  ;;  %v4303_v36 = vpop.f32.mrf.mxu0  ;;  %v1063_v35 = vld [vmem:[%s6152_s6 + $0x40] sm:$0xff] }
  0xf4   : > { %v1062_v36 = vld [vmem:[%s6152_s6 + $0x38] sm:$0xff] }
 0x111   : > { %v880_v37 = vpop.f32.mrf.mxu0 }
 0x112   : > { %v884_v38 = vsel %vm663_vm1, %v880_v37, -inf }
 0x113   : > { %885 = vmax.xlane.f32.xlu0 %v884_v38  ;;  %v4373_v39 = vpop.f32.mrf.mxu0  ;;  %v1060_v38 = vld [vmem:[%s6152_s6 + $0x28] sm:$0xff] }
 0x114   : > { %v1059_v39 = vld [vmem:[%s6152_s6 + $0x20] sm:$0xff] }
 0x17c   : > { %v666_v40 = vpop.xlane.xlu0 %665 }
 0x17d   : > { %v667_v41 = vsub.f32 %v659_v34, %v666_v40  ;;  %v1064_v34 = vld [vmem:[%s6152_s6 + $0x48] sm:$0xff]  ;;  %v1058_v40 = vld [vmem:[%s6152_s6 + $0x18] sm:$0xff] }
 0x17f   : > { %v668_v42 = vmul.f32 1.442695, %v667_v41  ;;  %v1057_v41 = vld [vmem:[%s6152_s6 + $0x10] sm:$0xff] }
 0x181   : > { %4875 = vpow2.f32 %v668_v42  ;;  %v1056_v42 = vld [vmem:[%s6152_s6 + $0x8] sm:$0xff] }
 0x18e   : > { %v4876_v43 = vpop.eup %4875 }
 0x18f   : > { %v670_v44 = vsel %vm663_vm1, %v4876_v43, 0.0 }
 0x190   : > { %671 = vadd.xlane.f32.xlu1 %v670_v44  ;;  %v5426_v44 = vld [vmem:[%s6171_s0] sm:$0xff] }
 0x19c   : > { %v886_v45 = vpop.xlane.xlu0 %885 }
 0x19d   : > { %v887_v46 = vsub.f32 %v880_v37, %v886_v45  ;;  %v1061_v37 = vld [vmem:[%s6152_s6 + $0x30] sm:$0xff] }
 0x19f   : > { %v888_v47 = vmul.f32 1.442695, %v887_v46 }
 0x1a1   : > { %4877 = vpow2.f32 %v888_v47 }
 0x1ae   : > { %v4878_v48 = vpop.eup %4877 }
 0x1af   : > { %v890_v49 = vsel %vm663_vm1, %v4878_v48, 0.0 }
 0x1b0   : > { %891 = vadd.xlane.f32.xlu1 %v890_v49 }
 0x219   : > { %v672_v50 = vpop.xlane.xlu1 %671 }
 0x21a   : > { %4879 = vrcp.f32 %v672_v50 }
 0x227   : > { %v4880_v51 = vpop.eup %4879 }
 0x228   : > { %v674_v52 = vmul.f32 %v4880_v51, %v4876_v43  ;;  %v1055_v43 = vld [vmem:[%s6152_s6] sm:$0xff] }
 0x22a   : > { %4337 = vmatmul.mubr.msk.f32.vlgmr.msra.gmra.mxu1 %vm663_vm1, %v674_v52 }
 0x22b   : > { %4410 = vmatpush3.msra.mxu1 %v1038_v56 }
 0x22c   : > { %4411 = vmatprep.subr.mxu1 %v1037_v57 }
 0x22d   : > { %4412 = vmatpush3.msra.mxu1 %v1037_v57 }
 0x22e   : > { %4413 = vmatprep.subr.mxu1 %v1036_v58 }
 0x22f   : > { %4414 = vmatpush3.msra.mxu1 %v1036_v58 }
 0x230   : > { %4415 = vmatprep.subr.mxu1 %v1035_v59 }
 0x231   : > { %4416 = vmatpush3.msra.mxu1 %v1035_v59 }
 0x232   : > { %4417 = vmatprep.subr.mxu1 %v1034_v60 }
 0x233   : > { %4418 = vmatpush3.msra.mxu1 %v1034_v60 }
 0x234   : > { %4419 = vmatprep.subr.mxu1 %v1033_v61 }
 0x235   : > { %4420 = vmatpush3.msra.mxu1 %v1033_v61 }
 0x236   : > { %4421 = vmatprep.subr.mxu1 %v1032_v62 }
 0x237   : > { %4422 = vmatpush3.msra.mxu1 %v1032_v62 }
 0x238   : > { %4423 = vmatprep.subr.mxu1 %v1031_v63 }
 0x239   : > { %v892_v53 = vpop.xlane.xlu1 %891  ;;  %4424 = vmatpush3.msra.mxu1 %v1031_v63 }
 0x23a   : > { %4881 = vrcp.f32 %v892_v53  ;;  %4425 = vmatprep.subr.mxu1 %v1030_v0 }
 0x23b   : > { %4426 = vmatpush3.msra.mxu1 %v1030_v0 }
 0x23c   : > { %4427 = vmatprep.subr.mxu1 %v1029_v1 }
 0x23d   : > { %4428 = vmatpush3.msra.mxu1 %v1029_v1 }
 0x23e   : > { %4429 = vmatprep.subr.mxu1 %v1028_v2 }
 0x23f   : > { %4430 = vmatpush3.msra.mxu1 %v1028_v2 }
 0x240   : > { %4431 = vmatprep.subr.mxu1 %v1027_v3 }
 0x241   : > { %4432 = vmatpush3.msra.mxu1 %v1027_v3 }
 0x242   : > { %4433 = vmatprep.subr.mxu1 %v1026_v4 }
 0x243   : > { %4434 = vmatpush3.msra.mxu1 %v1026_v4 }
 0x244   : > { %4435 = vmatprep.subr.mxu1 %v1025_v5 }
 0x245   : > { %4436 = vmatpush3.msra.mxu1 %v1025_v5 }
 0x246   : > { %4437 = vmatprep.subr.mxu1 %v1024_v6 }
 0x247   : > { %v4882_v54 = vpop.eup %4881  ;;  %4438 = vmatpush3.msra.mxu1 %v1024_v6 }
 0x248   : > { %v894_v55 = vmul.f32 %v4882_v54, %v4878_v48  ;;  %4439 = vmatprep.subr.mxu1 %v1023_v7 }
 0x249   : > { %4440 = vmatpush3.msra.mxu1 %v1023_v7 }
 0x24a   : > { %4407 = vmatmul.mubr.msk.f32.vlgmr.msra.gmra.mxu0 %vm663_vm1, %v894_v55  ;;  %4444 = vmatprep.subr.mxu1 %v1054_v8 }
 0x24b   : > { %4483 = vmatprep.mubr.msk.f32.mxu0 %vm1281_vm2, %v5426_v44 }
 0x2ea   : > { %v5320_v9 = vpop.f32.mrf.mxu1 }
 0x2eb   : > { %4441 = vmatprep.mubr.f32.mxu1 %v5320_v9 }
 0x2ec   : > { %v4338_v10 = vpop.f32.mrf.mxu1 }
 0x30a   : > { %v5323_v11 = vpop.f32.mrf.mxu0 }
 0x30b   : > { %4442 = vmatmul.mubr.f32.vlgmr.msra.gmra.mxu1 %v5323_v11 }
 0x30c   : > { %4445 = vmatpush3.msra.mxu1 %v1054_v8  ;;  %v4408_v13 = vpop.f32.mrf.mxu0  ;;  %4476 = vmatprep.mubr.f32.mxu1 %v5320_v9 }
 0x30d   : > { %4446 = vmatprep.subr.mxu1 %v1053_v12 }
 0x30e   : > { %4447 = vmatpush3.msra.mxu1 %v1053_v12  ;;  %v1190_v12 = vlaneseq }
 0x30f   : > { %4448 = vmatprep.subr.mxu1 %v1052_v14 }
 0x310   : > { %4449 = vmatpush3.msra.mxu1 %v1052_v14  ;;  %v1191_v14 = vshrl.u32 %v1190_v12, 7 }
 0x311   : > { %4450 = vmatprep.subr.mxu1 %v1051_v15 }
 0x312   : > { %4451 = vmatpush3.msra.mxu1 %v1051_v15 }
 0x313   : > { %4452 = vmatprep.subr.mxu1 %v1050_v16 }
 0x314   : > { %4453 = vmatpush3.msra.mxu1 %v1050_v16  ;;  %v5437_v16 = vld [vmem:[%s6171_s0 + $0x8] sm:$0xff] }
 0x315   : > { %4454 = vmatprep.subr.mxu1 %v1049_v17 }
 0x316   : > { %4455 = vmatpush3.msra.mxu1 %v1049_v17  ;;  %v5442_v17 = vld [vmem:[%s6149_s3] sm:$0xff] }
 0x317   : > { %4456 = vmatprep.subr.mxu1 %v1048_v18 }
 0x318   : > { %4457 = vmatpush3.msra.mxu1 %v1048_v18  ;;  %v1158_v18 = vld [vmem:[%s6156_s10] sm:$0x1] }
 0x319   : > { %4458 = vmatprep.subr.mxu1 %v1047_v19 }
 0x31a   : > { %4459 = vmatpush3.msra.mxu1 %v1047_v19  ;;  %v5449_v19 = vsub.s32 0, %v1191_v14 }
 0x31b   : > { %4460 = vmatprep.subr.mxu1 %v1046_v20 }
 0x31c   : > { %4461 = vmatpush3.msra.mxu1 %v1046_v20 }
 0x31d   : > { %4462 = vmatprep.subr.mxu1 %v1045_v21 }
 0x31e   : > { %4463 = vmatpush3.msra.mxu1 %v1045_v21 }
 0x31f   : > { %4464 = vmatprep.subr.mxu1 %v1044_v22 }
 0x320   : > { %4465 = vmatpush3.msra.mxu1 %v1044_v22 }
 0x321   : > { %4466 = vmatprep.subr.mxu1 %v1043_v23 }
 0x322   : > { %4467 = vmatpush3.msra.mxu1 %v1043_v23 }
 0x323   : > { %4468 = vmatprep.subr.mxu1 %v1042_v24 }
 0x324   : > { %4469 = vmatpush3.msra.mxu1 %v1042_v24 }
 0x325   : > { %4470 = vmatprep.subr.mxu1 %v1041_v25 }
 0x326   : > { %4471 = vmatpush3.msra.mxu1 %v1041_v25 }
 0x327   : > { %4472 = vmatprep.subr.mxu1 %v1040_v26 }
 0x328   : > { %4473 = vmatpush3.msra.mxu1 %v1040_v26 }
 0x329   : > { %4474 = vmatprep.subr.mxu1 %v1039_v27 }
 0x32a   : > { %4475 = vmatpush3.msra.mxu1 %v1039_v27  ;;  %v5461_v27 = vld [vmem:[%s6149_s3 + $0x8] sm:$0xff] }
 0x32b   : > { %4477 = vmatmul.mubr.f32.vlgmr.msra.gmra.mxu1 %v5323_v11  ;;  %4486 = vmatprep.subr.mxu1 %v1070_v28 }
 0x32c   : > { %4487 = vmatpush3.msra.mxu1 %v1070_v28  ;;  %4518 = vmatprep.mubr.f32.mxu1 %v5320_v9  ;;  %v1078_v28 = vld [vmem:[%s6154_s8 + $0x18] sm:$0xff] }
 0x32d   : > { %4488 = vmatprep.subr.mxu1 %v1069_v29 }
 0x32e   : > { %4489 = vmatpush3.msra.mxu1 %v1069_v29  ;;  %v1077_v29 = vld [vmem:[%s6154_s8 + $0x10] sm:$0xff] }
 0x32f   : > { %4490 = vmatprep.subr.mxu1 %v1068_v30 }
 0x330   : > { %4491 = vmatpush3.msra.mxu1 %v1068_v30  ;;  %v1076_v30 = vld [vmem:[%s6154_s8 + $0x8] sm:$0xff] }
 0x331   : > { %4492 = vmatprep.subr.mxu1 %v1067_v31 }
 0x332   : > { %4493 = vmatpush3.msra.mxu1 %v1067_v31  ;;  %v1075_v31 = vld [vmem:[%s6154_s8] sm:$0xff] }
 0x333   : > { %4494 = vmatprep.subr.mxu1 %v1066_v32 }
 0x334   : > { %4495 = vmatpush3.msra.mxu1 %v1066_v32  ;;  %v5480_v32 = vld [vmem:[%s6153_s7 + $0x18] sm:$0xff] }
 0x335   : > { %4496 = vmatprep.subr.mxu1 %v1065_v33 }
 0x336   : > { %4497 = vmatpush3.msra.mxu1 %v1065_v33 }
 0x337   : > { %4498 = vmatprep.subr.mxu1 %v1064_v34 }
 0x338   : > { %4499 = vmatpush3.msra.mxu1 %v1064_v34 }
 0x339   : > { %4500 = vmatprep.subr.mxu1 %v1063_v35 }
 0x33a   : > { %4501 = vmatpush3.msra.mxu1 %v1063_v35 }
 0x33b   : > { %4502 = vmatprep.subr.mxu1 %v1062_v36 }
 0x33c   : > { %4503 = vmatpush3.msra.mxu1 %v1062_v36 }
 0x33d   : > { %4504 = vmatprep.subr.mxu1 %v1061_v37 }
 0x33e   : > { %4505 = vmatpush3.msra.mxu1 %v1061_v37 }
 0x33f   : > { %4506 = vmatprep.subr.mxu1 %v1060_v38 }
 0x340   : > { %4507 = vmatpush3.msra.mxu1 %v1060_v38 }
 0x341   : > { %4508 = vmatprep.subr.mxu1 %v1059_v39 }
 0x342   : > { %4509 = vmatpush3.msra.mxu1 %v1059_v39 }
 0x343   : > { %4510 = vmatprep.subr.mxu1 %v1058_v40 }
 0x344   : > { %4511 = vmatpush3.msra.mxu1 %v1058_v40 }
 0x345   : > { %4512 = vmatprep.subr.mxu1 %v1057_v41 }
 0x346   : > { %4513 = vmatpush3.msra.mxu1 %v1057_v41 }
 0x347   : > { %4514 = vmatprep.subr.mxu1 %v1056_v42 }
 0x348   : > { %4515 = vmatpush3.msra.mxu1 %v1056_v42 }
 0x349   : > { %4516 = vmatprep.subr.mxu1 %v1055_v43 }
 0x34a   : > { %4517 = vmatpush3.msra.mxu1 %v1055_v43 }
 0x34b   : > { %4519 = vmatmul.mubr.f32.vlgmr.msra.gmra.mxu1 %v5323_v11 }
 0x3cb   : > { %v4443_v45 = vpop.f32.mrf.mxu1 }
 0x3cc   : > { %v1172_v46 = vmul.f32 %v4443_v45, %v4443_v45  ;;  %v1162_v48 = vsel %vm1160_vm3, %v4443_v45, 0.0 }
 0x3cd   : > { %v1149_v47 = vpop.f32.mrf.mxu1 }
 0x3ce   : > { %v1161_v49 = vsel %vm1160_vm3, %v1149_v47, 0.0  ;;  %v1171_v50 = vmul.f32 %v1149_v47, %v1149_v47  ;;  %v1174_v52 = vsel %vm1160_vm3, %v1172_v46, 0.0 }
 0x3cf   : > { %v1163_v51 = vadd.f32 %v1162_v48, %v1161_v49 }
 0x3d0   : > { %v1173_v53 = vsel %vm1160_vm3, %v1171_v50, 0.0 }
 0x3d1   : > { %v1164_v54 = vrot.slane %v1163_v51, 4  ;;  %v1175_v55 = vadd.f32 %v1174_v52, %v1173_v53 }
 0x3d3   : > { %v1165_v56 = vadd.f32 %v1164_v54, %v1163_v51  ;;  %v1176_v57 = vrot.slane %v1175_v55, 4 }
 0x3d5   : > { %v1166_v58 = vrot.slane %v1165_v56, 2  ;;  %v1177_v59 = vadd.f32 %v1176_v57, %v1175_v55 }
 0x3d7   : > { %v1167_v60 = vadd.f32 %v1166_v58, %v1165_v56  ;;  %v1178_v61 = vrot.slane %v1177_v59, 2 }
 0x3d9   : > { %v1168_v62 = vrot.slane %v1167_v60, 1  ;;  %v1179_v63 = vadd.f32 %v1178_v61, %v1177_v59 }
 0x3db   : > { %v1169_v0 = vadd.f32 %v1168_v62, %v1167_v60  ;;  %v1180_v1 = vrot.slane %v1179_v63, 1 }
 0x3dd   : > { %v1170_v2 = vmul.f32 0.0625, %v1169_v0  ;;  %v1181_v3 = vadd.f32 %v1180_v1, %v1179_v63 }
 0x3df   : > { %v1182_v4 = vmul.f32 0.0625, %v1181_v3  ;;  %v1183_v5 = vmul.f32 %v1170_v2, %v1170_v2  ;;  %v1188_v6 = vsub.f32 %v1149_v47, %v1170_v2  ;;  %v1189_v7 = vsub.f32 %v4443_v45, %v1170_v2 }
 0x3e1   : > { %v1184_v8 = vsub.f32 %v1182_v4, %v1183_v5  ;;  %v1363_v4 = vld [vmem:[%s6158_s12] sm:$0x1] }
 0x3e3   : > { %v1185_v10 = vadd.f32 1e-05, %v1184_v8 }
 0x3e5   : > { %4883 = vrsqrt.f32 %v1185_v10 }
 0x3eb   : > { %v4478_v13 = vpop.f32.mrf.mxu1 }
 0x3ec   : > { %4479 = vmatprep.subr.mxu0 %v4478_v13 }
 0x3ed   : > { %v1272_v15 = vpop.f32.mrf.mxu1  ;;  %4480 = vmatpush3.msra.mxu0 %v4478_v13 }
 0x3ee   : > { %4481 = vmatprep.subr.mxu0 %v1272_v15 }
 0x3ef   : > { %4482 = vmatpush3.msra.mxu0 %v1272_v15 }
 0x3f0   : > { %4484 = vmatmul.mubr.msk.f32.vlgmr.msra.gmra.mxu0 %vm1281_vm2, %v5437_v16 }
 0x3f1   : > { %4525 = vmatprep.mubr.msk.f32.mxu0 %vm1281_vm2, %v5442_v17 }
 0x3f2   : > { %v4884_v20 = vpop.eup %4883 }
 0x3f3   : > { %v1187_v21 = vmul.f32 %v4884_v20, %v1158_v18  ;;  %v3779_v18 = vld [vmem:[%s6157_s11] ss:$0 sm:$0xff] }
 0x3f5   : > { %v1193_v22 = vrot.slane %v1187_v21, %v5449_v19 }
 0x3f7   : > { %v5454_v23 = vmul.f32 %v1193_v22, %v1188_v6  ;;  %v5456_v24 = vmul.f32 %v1193_v22, %v1189_v7 }
 0x40b   : > { %v4520_v25 = vpop.f32.mrf.mxu1 }
 0x40c   : > { %4521 = vmatprep.subr.mxu0 %v4520_v25 }
 0x40d   : > { %v1476_v26 = vpop.f32.mrf.mxu1  ;;  %4522 = vmatpush3.msra.mxu0 %v4520_v25 }
 0x40e   : > { %4523 = vmatprep.subr.mxu0 %v1476_v26 }
 0x40f   : > { %4524 = vmatpush3.msra.mxu0 %v1476_v26  ;;  %v3782_v26 = vld [vmem:[%s6159_s13] ss:$0 sm:$0xff] }
 0x410   : > { %4526 = vmatmul.mubr.msk.f32.vlgmr.msra.gmra.mxu0 %vm1281_vm2, %v5461_v27  ;;  %4528 = vmatprep.subr.mxu0 %v1078_v28 }
 0x411   : > { %4529 = vmatpush3.msra.mxu0 %v1078_v28 }
 0x412   : > { %4530 = vmatprep.subr.mxu0 %v1077_v29 }
 0x413   : > { %4531 = vmatpush3.msra.mxu0 %v1077_v29 }
 0x414   : > { %4532 = vmatprep.subr.mxu0 %v1076_v30 }
 0x415   : > { %4533 = vmatpush3.msra.mxu0 %v1076_v30 }
 0x416   : > { %4534 = vmatprep.subr.mxu0 %v1075_v31 }
 0x417   : > { %4535 = vmatpush3.msra.mxu0 %v1075_v31 }
 0x418   : > { %4539 = vmatprep.subr.mxu0 %v5480_v32 }
 0x4b0   : > { %v4485_v33 = vpop.f32.mrf.mxu0 }
 0x4b1   : > { %v1366_v34 = vsel %vm1160_vm3, %v4485_v33, 0.0  ;;  %v1376_v35 = vmul.f32 %v4485_v33, %v4485_v33 }
 0x4b2   : > { %v1354_v36 = vpop.f32.mrf.mxu0 }
 0x4b3   : > { %v1378_v37 = vsel %vm1160_vm3, %v1376_v35, 0.0  ;;  %v1365_v38 = vsel %vm1160_vm3, %v1354_v36, 0.0  ;;  %v1375_v39 = vmul.f32 %v1354_v36, %v1354_v36 }
 0x4b4   : > { %v1367_v40 = vadd.f32 %v1366_v34, %v1365_v38  ;;  %v1202_v34 = vadd.f32 %v3779_v18, %v5454_v23 }
 0x4b5   : > { %v1377_v41 = vsel %vm1160_vm3, %v1375_v39, 0.0 }
 0x4b6   : > { %v1368_v42 = vrot.slane %v1367_v40, 4  ;;  %v1379_v43 = vadd.f32 %v1378_v37, %v1377_v41 }
 0x4b8   : > { %v1369_v45 = vadd.f32 %v1368_v42, %v1367_v40  ;;  %v1380_v46 = vrot.slane %v1379_v43, 4 }
 0x4ba   : > { %v1370_v47 = vrot.slane %v1369_v45, 2  ;;  %v1381_v48 = vadd.f32 %v1380_v46, %v1379_v43  ;;  %v1204_v46 = vmax.f32 %v1202_v34, 0.0  ;;  %v3799_v34 = vld [vmem:[%s6150_s4 + $0xb0] sm:$0xff] }
 0x4bc   : > { %v1371_v49 = vadd.f32 %v1370_v47, %v1369_v45  ;;  %v1382_v50 = vrot.slane %v1381_v48, 2  ;;  %v1073_v45 = vld [vmem:[%s6153_s7 + $0x10] sm:$0xff] }
 0x4be   : > { %v1372_v51 = vrot.slane %v1371_v49, 1  ;;  %v1383_v52 = vadd.f32 %v1382_v50, %v1381_v48  ;;  %v1072_v48 = vld [vmem:[%s6153_s7 + $0x8] sm:$0xff] }
 0x4c0   : > { %v1373_v53 = vadd.f32 %v1372_v51, %v1371_v49  ;;  %v1384_v54 = vrot.slane %v1383_v52, 1  ;;  %v1203_v49 = vadd.f32 %v3779_v18, %v5456_v24  ;;  %v1071_v51 = vld [vmem:[%s6153_s7] sm:$0xff]  ;;  %v1081_v24 = vld [vmem:[%s6155_s9 + $0x10] sm:$0xff]  ;;  %v3804_v18 = vld [vmem:[%s6150_s4 + $0xd8] sm:$0xff] }
 0x4c2   : > { %v1374_v55 = vmul.f32 0.0625, %v1373_v53  ;;  %v1385_v56 = vadd.f32 %v1384_v54, %v1383_v52  ;;  %v1205_v53 = vmax.f32 %v1203_v49, 0.0  ;;  %v1080_v54 = vld [vmem:[%s6155_s9 + $0x8] sm:$0xff] }
 0x4c4   : > { %v1386_v57 = vmul.f32 0.0625, %v1385_v56  ;;  %v1387_v58 = vmul.f32 %v1374_v55, %v1374_v55  ;;  %v1392_v15 = vsub.f32 %v1354_v36, %v1374_v55  ;;  %v1393_v20 = vsub.f32 %v4485_v33, %v1374_v55  ;;  %v1079_v55 = vld [vmem:[%s6155_s9] sm:$0xff] }
 0x4c5   : > { %v1566_v56 = vld [vmem:[%s6160_s14] sm:$0x1] }
 0x4c6   : > { %v1388_v59 = vsub.f32 %v1386_v57, %v1387_v58 }
 0x4c8   : > { %v1389_v60 = vadd.f32 1e-05, %v1388_v59 }
 0x4ca   : > { %4885 = vrsqrt.f32 %v1389_v60 }
 0x4d0   : > { %v5487_v61 = vpop.f32.mrf.mxu0 }
 0x4d1   : > { %v1579_v62 = vmul.f32 %v5487_v61, %v5487_v61  ;;  %v1569_v0 = vsel %vm1160_vm3, %v5487_v61, 0.0 }
 0x4d2   : > { %v5491_v63 = vpop.f32.mrf.mxu0 }
 0x4d3   : > { %v1568_v1 = vsel %vm1160_vm3, %v5491_v63, 0.0  ;;  %v1578_v2 = vmul.f32 %v5491_v63, %v5491_v63  ;;  %v1581_v5 = vsel %vm1160_vm3, %v1579_v62, 0.0 }
 0x4d4   : > { %v1570_v3 = vadd.f32 %v1569_v0, %v1568_v1  ;;  %v3785_v0 = vld [vmem:[%s6161_s15] ss:$0 sm:$0xff] }
 0x4d5   : > { %v1580_v6 = vsel %vm1160_vm3, %v1578_v2, 0.0 }
 0x4d6   : > { %v1571_v7 = vrot.slane %v1570_v3, 4  ;;  %v1582_v8 = vadd.f32 %v1581_v5, %v1580_v6 }
 0x4d7   : > { %v4886_v10 = vpop.eup %4885 }
 0x4d8   : > { %v1391_v12 = vmul.f32 %v4886_v10, %v1363_v4  ;;  %v1572_v13 = vadd.f32 %v1571_v7, %v1570_v3  ;;  %v1583_v14 = vrot.slane %v1582_v8, 4  ;;  %v3823_v7 = vld [vmem:[%s6151_s5 + $0xf0] sm:$0xff]  ;;  %v3822_v10 = vld [vmem:[%s6151_s5 + $0xe8] sm:$0xff] }
 0x4da   : > { %v1397_v21 = vrot.slane %v1391_v12, %v5449_v19  ;;  %v1573_v22 = vrot.slane %v1572_v13, 2  ;;  %v1584_v25 = vadd.f32 %v1583_v14, %v1582_v8  ;;  %v3807_v8 = vld [vmem:[%s6150_s4 + $0xf0] sm:$0xff]  ;;  %v3806_v12 = vld [vmem:[%s6150_s4 + $0xe8] sm:$0xff]  ;;  %v3805_v14 = vld [vmem:[%s6150_s4 + $0xe0] sm:$0xff] }
 0x4dc   : > { %v1398_v28 = vmul.f32 %v1397_v21, %v1392_v15  ;;  %v1399_v29 = vmul.f32 %v1397_v21, %v1393_v20  ;;  %v1574_v30 = vadd.f32 %v1573_v22, %v1572_v13  ;;  %v1585_v31 = vrot.slane %v1584_v25, 2  ;;  %v3821_v13 = vld [vmem:[%s6151_s5 + $0xe0] sm:$0xff]  ;;  %v3820_v15 = vld [vmem:[%s6151_s5 + $0xd8] sm:$0xff]  ;;  %v3819_v20 = vld [vmem:[%s6151_s5 + $0xd0] sm:$0xff] }
 0x4dd   : > { %v3803_v21 = vld [vmem:[%s6150_s4 + $0xd0] sm:$0xff]  ;;  %v3818_v22 = vld [vmem:[%s6151_s5 + $0xc8] sm:$0xff] }
 0x4de   : > { %v1406_v35 = vadd.f32 %v3782_v26, %v1398_v28  ;;  %v1407_v36 = vadd.f32 %v3782_v26, %v1399_v29  ;;  %v1575_v37 = vrot.slane %v1574_v30, 1  ;;  %v1586_v38 = vadd.f32 %v1585_v31, %v1584_v25  ;;  %v3802_v25 = vld [vmem:[%s6150_s4 + $0xc8] sm:$0xff]  ;;  %v3817_v26 = vld [vmem:[%s6151_s5 + $0xc0] sm:$0xff]  ;;  %v3816_v29 = vld [vmem:[%s6151_s5 + $0xb8] sm:$0xff] }
 0x4df   : > { %v3801_v28 = vld [vmem:[%s6150_s4 + $0xc0] sm:$0xff]  ;;  %v3815_v31 = vld [vmem:[%s6151_s5 + $0xb0] sm:$0xff] }
 0x4e0   : > { %v1409_v39 = vmax.f32 %v1407_v36, 0.0  ;;  %v1576_v33 = vadd.f32 %v1575_v37, %v1574_v30  ;;  %v1587_v40 = vrot.slane %v1586_v38, 1  ;;  %v1408_v41 = vmax.f32 %v1406_v35, 0.0  ;;  %v3800_v30 = vld [vmem:[%s6150_s4 + $0xb8] sm:$0xff]  ;;  %v3814_v35 = vld [vmem:[%s6151_s5 + $0xa8] sm:$0xff]  ;;  %v3813_v37 = vld [vmem:[%s6151_s5 + $0xa0] sm:$0xff] }
 0x4e1   : > { %v3798_v36 = vld [vmem:[%s6150_s4 + $0xa8] sm:$0xff] }
 0x4e2   : > { %v1577_v42 = vmul.f32 0.0625, %v1576_v33  ;;  %v1588_v43 = vadd.f32 %v1587_v40, %v1586_v38  ;;  %4536 = vmatprep.mubr.msk.f32.mxu0 %vm1160_vm3, %v1408_v41  ;;  %v3797_v38 = vld [vmem:[%s6150_s4 + $0xa0] sm:$0xff]  ;;  %v3796_v33 = vld [vmem:[%s6150_s4 + $0x98] sm:$0xff]  ;;  %v3811_v40 = vld [vmem:[%s6151_s5 + $0x90] sm:$0xff] }
 0x4e3   : > { %4537 = vmatmul.mubr.msk.f32.vlgmr.msra.gmra.mxu0 %vm1160_vm3, %v1409_v39  ;;  %v3812_v39 = vld [vmem:[%s6151_s5 + $0x98] sm:$0xff]  ;;  %v3795_v41 = vld [vmem:[%s6150_s4 + $0x90] sm:$0xff] }
 0x4e4   : > { %v1589_v23 = vmul.f32 0.0625, %v1588_v43  ;;  %v1590_v47 = vmul.f32 %v1577_v42, %v1577_v42  ;;  %4540 = vmatpush3.msra.mxu0 %v5480_v32  ;;  %4547 = vmatprep.mubr.msk.f32.mxu0 %vm1160_vm3, %v1204_v46  ;;  %v1082_v32 = vld [vmem:[%s6155_s9 + $0x18] sm:$0xff]  ;;  %v1595_v59 = vsub.f32 %v5491_v63, %v1577_v42  ;;  %v1596_v60 = vsub.f32 %v5487_v61, %v1577_v42  ;;  %v3810_v42 = vld [vmem:[%s6151_s5 + $0x88] sm:$0xff]  ;;  %v3793_v46 = vld [vmem:[%s6150_s4 + $0x80] sm:$0xff] }
 0x4e5   : > { %4541 = vmatprep.subr.mxu0 %v1073_v45  ;;  %v3824_v61 = vld [vmem:[%s6151_s5 + $0xf8] sm:$0xff]  ;;  %v3794_v43 = vld [vmem:[%s6150_s4 + $0x88] sm:$0xff] }
 0x4e6   : > { %v1591_v50 = vsub.f32 %v1589_v23, %v1590_v47  ;;  %4542 = vmatpush3.msra.mxu0 %v1073_v45  ;;  %4596 = vmatprep.subr.mxu1 %v3824_v61  ;;  %v3808_v63 = vld [vmem:[%s6150_s4 + $0xf8] sm:$0xff]  ;;  %v3809_v45 = vld [vmem:[%s6151_s5 + $0x80] sm:$0xff] }
 0x4e7   : > { %4543 = vmatprep.subr.mxu0 %v1072_v48  ;;  %4597 = vmatpush3.msra.mxu1 %v3824_v61  ;;  %v3840_v23 = vld [vmem:[%s6152_s6 + $0xf8] sm:$0xff] }
 0x4e8   : > { %v1592_v52 = vadd.f32 1e-05, %v1591_v50  ;;  %4544 = vmatpush3.msra.mxu0 %v1072_v48  ;;  %4598 = vmatprep.subr.mxu1 %v3823_v7 }
 0x4e9   : > { %4545 = vmatprep.subr.mxu0 %v1071_v51  ;;  %4599 = vmatpush3.msra.mxu1 %v3823_v7 }
 0x4ea   : > { %4887 = vrsqrt.f32 %v1592_v52  ;;  %4546 = vmatpush3.msra.mxu0 %v1071_v51  ;;  %4600 = vmatprep.subr.mxu1 %v3822_v10 }
 0x4eb   : > { %4548 = vmatmul.mubr.msk.f32.vlgmr.msra.gmra.mxu0 %vm1160_vm3, %v1205_v53  ;;  %4550 = vmatprep.subr.mxu0 %v1082_v32 }
 0x4ec   : > { %4551 = vmatpush3.msra.mxu0 %v1082_v32  ;;  %4601 = vmatpush3.msra.mxu1 %v3822_v10 }
 0x4ed   : > { %4552 = vmatprep.subr.mxu0 %v1081_v24  ;;  %4602 = vmatprep.subr.mxu1 %v3821_v13 }
 0x4ee   : > { %4553 = vmatpush3.msra.mxu0 %v1081_v24  ;;  %4603 = vmatpush3.msra.mxu1 %v3821_v13 }
 0x4ef   : > { %4554 = vmatprep.subr.mxu0 %v1080_v54  ;;  %4604 = vmatprep.subr.mxu1 %v3820_v15 }
 0x4f0   : > { %4555 = vmatpush3.msra.mxu0 %v1080_v54  ;;  %4605 = vmatpush3.msra.mxu1 %v3820_v15 }
 0x4f1   : > { %4556 = vmatprep.subr.mxu0 %v1079_v55  ;;  %4606 = vmatprep.subr.mxu1 %v3819_v20 }
 0x4f2   : > { %4557 = vmatpush3.msra.mxu0 %v1079_v55  ;;  %4607 = vmatpush3.msra.mxu1 %v3819_v20 }
 0x4f3   : > { %4561 = vmatprep.subr.mxu0 %v3808_v63  ;;  %4608 = vmatprep.subr.mxu1 %v3818_v22 }
 0x4f4   : > { %4609 = vmatpush3.msra.mxu1 %v3818_v22 }
 0x4f5   : > { %4610 = vmatprep.subr.mxu1 %v3817_v26 }
 0x4f6   : > { %4611 = vmatpush3.msra.mxu1 %v3817_v26 }
 0x4f7   : > { %v4888_v57 = vpop.eup %4887  ;;  %4612 = vmatprep.subr.mxu1 %v3816_v29 }
 0x4f8   : > { %v1594_v58 = vmul.f32 %v4888_v57, %v1566_v56  ;;  %4613 = vmatpush3.msra.mxu1 %v3816_v29 }
 0x4f9   : > { %4614 = vmatprep.subr.mxu1 %v3815_v31 }
 0x4fa   : > { %v1600_v62 = vrot.slane %v1594_v58, %v5449_v19  ;;  %4615 = vmatpush3.msra.mxu1 %v3815_v31 }
 0x4fb   : > { %4616 = vmatprep.subr.mxu1 %v3814_v35 }
 0x4fc   : > { %v1601_v1 = vmul.f32 %v1600_v62, %v1595_v59  ;;  %v1602_v2 = vmul.f32 %v1600_v62, %v1596_v60  ;;  %4617 = vmatpush3.msra.mxu1 %v3814_v35 }
 0x4fd   : > { %4618 = vmatprep.subr.mxu1 %v3813_v37 }
 0x4fe   : > { %v1609_v3 = vadd.f32 %v3785_v0, %v1601_v1  ;;  %v1610_v4 = vadd.f32 %v3785_v0, %v1602_v2  ;;  %4619 = vmatpush3.msra.mxu1 %v3813_v37  ;;  %v3839_v37 = vld [vmem:[%s6152_s6 + $0xf0] sm:$0xff] }
 0x4ff   : > { %4620 = vmatprep.subr.mxu1 %v3812_v39 }
 0x500   : > { %v1612_v5 = vmax.f32 %v1610_v4, 0.0  ;;  %v1611_v6 = vmax.f32 %v1609_v3, 0.0  ;;  %4621 = vmatpush3.msra.mxu1 %v3812_v39  ;;  %v3835_v39 = vld [vmem:[%s6152_s6 + $0xd0] sm:$0xff] }
 0x501   : > { %4622 = vmatprep.subr.mxu1 %v3811_v40 }
 0x502   : > { %4558 = vmatprep.mubr.msk.f32.mxu0 %vm1160_vm3, %v1611_v6  ;;  %4623 = vmatpush3.msra.mxu1 %v3811_v40  ;;  %v3832_v40 = vld [vmem:[%s6152_s6 + $0xb8] sm:$0xff] }
 0x503   : > { %4559 = vmatmul.mubr.msk.f32.vlgmr.msra.gmra.mxu0 %vm1160_vm3, %v1612_v5  ;;  %4624 = vmatprep.subr.mxu1 %v3810_v42 }
 0x504   : > { %4562 = vmatpush3.msra.mxu0 %v3808_v63  ;;  %4625 = vmatpush3.msra.mxu1 %v3810_v42  ;;  %v3830_v42 = vld [vmem:[%s6152_s6 + $0xa8] sm:$0xff] }
 0x505   : > { %4563 = vmatprep.subr.mxu0 %v3807_v8  ;;  %4626 = vmatprep.subr.mxu1 %v3809_v45 }
 0x506   : > { %4564 = vmatpush3.msra.mxu0 %v3807_v8  ;;  %4627 = vmatpush3.msra.mxu1 %v3809_v45  ;;  %v3828_v45 = vld [vmem:[%s6152_s6 + $0x98] sm:$0xff] }
 0x507   : > { %4565 = vmatprep.subr.mxu0 %v3806_v12  ;;  %4638 = vmatprep.subr.mxu1 %v3840_v23 }
 0x508   : > { %4566 = vmatpush3.msra.mxu0 %v3806_v12 }
 0x509   : > { %4567 = vmatprep.subr.mxu0 %v3805_v14 }
 0x50a   : > { %4568 = vmatpush3.msra.mxu0 %v3805_v14  ;;  %v1858_v14 = vld [vmem:[%s6162_s16] sm:$0x1] }
 0x50b   : > { %4569 = vmatprep.subr.mxu0 %v3804_v18 }
 0x50c   : > { %4570 = vmatpush3.msra.mxu0 %v3804_v18 }
 0x50d   : > { %4571 = vmatprep.subr.mxu0 %v3803_v21 }
 0x50e   : > { %4572 = vmatpush3.msra.mxu0 %v3803_v21 }
 0x50f   : > { %4573 = vmatprep.subr.mxu0 %v3802_v25 }
 0x510   : > { %4574 = vmatpush3.msra.mxu0 %v3802_v25  ;;  %v3792_v25 = vld [vmem:[%s6163_s17] ss:$0 sm:$0xff] }
 0x511   : > { %4575 = vmatprep.subr.mxu0 %v3801_v28 }
 0x512   : > { %4576 = vmatpush3.msra.mxu0 %v3801_v28 }
 0x513   : > { %4577 = vmatprep.subr.mxu0 %v3800_v30 }
 0x514   : > { %4578 = vmatpush3.msra.mxu0 %v3800_v30 }
 0x515   : > { %4579 = vmatprep.subr.mxu0 %v3799_v34 }
 0x516   : > { %4580 = vmatpush3.msra.mxu0 %v3799_v34 }
 0x517   : > { %4581 = vmatprep.subr.mxu0 %v3798_v36 }
 0x518   : > { %4582 = vmatpush3.msra.mxu0 %v3798_v36 }
 0x519   : > { %4583 = vmatprep.subr.mxu0 %v3797_v38 }
 0x51a   : > { %4584 = vmatpush3.msra.mxu0 %v3797_v38  ;;  %v3836_v38 = vld [vmem:[%s6152_s6 + $0xd8] sm:$0xff] }
 0x51b   : > { %4585 = vmatprep.subr.mxu0 %v3796_v33 }
 0x51c   : > { %4586 = vmatpush3.msra.mxu0 %v3796_v33  ;;  %v3833_v33 = vld [vmem:[%s6152_s6 + $0xc0] sm:$0xff] }
 0x51d   : > { %4587 = vmatprep.subr.mxu0 %v3795_v41 }
 0x51e   : > { %4588 = vmatpush3.msra.mxu0 %v3795_v41  ;;  %v3831_v41 = vld [vmem:[%s6152_s6 + $0xb0] sm:$0xff] }
 0x51f   : > { %4589 = vmatprep.subr.mxu0 %v3794_v43 }
 0x520   : > { %4590 = vmatpush3.msra.mxu0 %v3794_v43  ;;  %v3829_v43 = vld [vmem:[%s6152_s6 + $0xa0] sm:$0xff] }
 0x521   : > { %4591 = vmatprep.subr.mxu0 %v3793_v46 }
 0x522   : > { %4592 = vmatpush3.msra.mxu0 %v3793_v46  ;;  %v3827_v46 = vld [vmem:[%s6152_s6 + $0x90] sm:$0xff] }
 0x5a3   : > { %v4538_v47 = vpop.f32.mrf.mxu0 }
 0x5a5   : > { %v1685_v48 = vpop.f32.mrf.mxu0 }
 0x5ab   : > { %v4549_v49 = vpop.f32.mrf.mxu0 }
 0x5ac   : > { %v1772_v51 = vadd.f32 %v4549_v49, %v4538_v47  ;;  %v3825_v47 = vld [vmem:[%s6152_s6 + $0x80] sm:$0xff] }
 0x5ad   : > { %v1766_v50 = vpop.f32.mrf.mxu0 }
 0x5ae   : > { %v1767_v32 = vadd.f32 %v1766_v50, %v1685_v48 }
 0x5c3   : > { %v4560_v52 = vpop.f32.mrf.mxu0 }
 0x5c4   : > { %v1857_v53 = vadd.f32 %v4560_v52, %v1772_v51  ;;  %v3848_v52 = vld [vmem:[%s6154_s8 + $0x38] sm:$0xff] }
 0x5c5   : > { %v1847_v24 = vpop.f32.mrf.mxu0 }
 0x5c6   : > { %v1856_v54 = vadd.f32 %v1847_v24, %v1767_v32  ;;  %v1869_v55 = vmul.f32 %v1857_v53, %v1857_v53  ;;  %v5736_v32 = vld [vmem:[%s6153_s7 + $0x38] sm:$0xff] }
 0x5c8   : > { %v1860_v56 = vadd.f32 %v1857_v53, %v1856_v54  ;;  %v1868_v57 = vmul.f32 %v1856_v54, %v1856_v54 }
 0x5ca   : > { %v1861_v58 = vrot.slane %v1860_v56, 4  ;;  %v1870_v59 = vadd.f32 %v1869_v55, %v1868_v57 }
 0x5cc   : > { %v1862_v60 = vadd.f32 %v1861_v58, %v1860_v56  ;;  %v1871_v62 = vrot.slane %v1870_v59, 4 }
 0x5ce   : > { %v1863_v0 = vrot.slane %v1862_v60, 2  ;;  %v1872_v1 = vadd.f32 %v1871_v62, %v1870_v59 }
 0x5d0   : > { %v1864_v2 = vadd.f32 %v1863_v0, %v1862_v60  ;;  %v1873_v3 = vrot.slane %v1872_v1, 2 }
 0x5d2   : > { %v1865_v4 = vrot.slane %v1864_v2, 1  ;;  %v1874_v5 = vadd.f32 %v1873_v3, %v1872_v1 }
 0x5d4   : > { %v1866_v6 = vadd.f32 %v1865_v4, %v1864_v2  ;;  %v1875_v61 = vrot.slane %v1874_v5, 1 }
 0x5d6   : > { %v1867_v63 = vmul.f32 0.0625, %v1866_v6  ;;  %v1876_v7 = vadd.f32 %v1875_v61, %v1874_v5 }
 0x5d8   : > { %v1877_v8 = vmul.f32 0.0625, %v1876_v7  ;;  %v1878_v10 = vmul.f32 %v1867_v63, %v1867_v63  ;;  %v1883_v20 = vsub.f32 %v1856_v54, %v1867_v63  ;;  %v1884_v21 = vsub.f32 %v1857_v53, %v1867_v63 }
 0x5da   : > { %v1879_v12 = vsub.f32 %v1877_v8, %v1878_v10 }
 0x5dc   : > { %v1880_v13 = vadd.f32 1e-05, %v1879_v12 }
 0x5de   : > { %4889 = vrsqrt.f32 %v1880_v13 }
 0x5eb   : > { %v4890_v15 = vpop.eup %4889 }
 0x5ec   : > { %v1882_v18 = vmul.f32 %v4890_v15, %v1858_v14 }
 0x5ee   : > { %v1888_v22 = vrot.slane %v1882_v18, %v5449_v19 }
 0x5f0   : > { %v1889_v26 = vmul.f32 %v1888_v22, %v1883_v20  ;;  %v1890_v28 = vmul.f32 %v1888_v22, %v1884_v21 }
 0x5f2   : > { %v1897_v29 = vadd.f32 %v3792_v25, %v1889_v26  ;;  %v1898_v30 = vadd.f32 %v3792_v25, %v1890_v28 }
 0x5f4   : > { %v1899_v31 = vadd.f32 %v1897_v29, %v5320_v9  ;;  %v1900_v34 = vadd.f32 %v1898_v30, %v5323_v11  ;;  %v3838_v9 = vld [vmem:[%s6152_s6 + $0xe8] sm:$0xff]  ;;  %v3837_v11 = vld [vmem:[%s6152_s6 + $0xe0] sm:$0xff] }
 0x5f6   : > { %v5658_v35 = vmax.f32 %v1899_v31, 0.0  ;;  %v5660_v36 = vmax.f32 %v1900_v34, 0.0 }
 0x5f8   : > { %4593 = vmatprep.mubr.f32.mxu0 %v5658_v35  ;;  %4628 = vmatprep.mubr.f32.mxu1 %v5658_v35 }
 0x5f9   : > { %4594 = vmatmul.mubr.f32.vlgmr.msra.gmra.mxu0 %v5660_v36  ;;  %4629 = vmatmul.mubr.f32.vlgmr.msra.gmra.mxu1 %v5660_v36 }
 0x5fa   : > { %4639 = vmatpush3.msra.mxu1 %v3840_v23  ;;  %4670 = vmatprep.mubr.f32.mxu1 %v5658_v35  ;;  %v3826_v23 = vld [vmem:[%s6152_s6 + $0x88] sm:$0xff] }
 0x5fb   : > { %4640 = vmatprep.subr.mxu1 %v3839_v37  ;;  %4635 = vmatprep.mubr.msk.f32.mxu0 %vm1281_vm2, %v5426_v44  ;;  %v3834_v44 = vld [vmem:[%s6152_s6 + $0xc8] sm:$0xff] }
 0x5fc   : > { %4641 = vmatpush3.msra.mxu1 %v3839_v37 }
 0x5fd   : > { %4642 = vmatprep.subr.mxu1 %v3838_v9 }
 0x5fe   : > { %4643 = vmatpush3.msra.mxu1 %v3838_v9 }
 0x5ff   : > { %4644 = vmatprep.subr.mxu1 %v3837_v11 }
 0x600   : > { %4645 = vmatpush3.msra.mxu1 %v3837_v11 }
 0x601   : > { %4646 = vmatprep.subr.mxu1 %v3836_v38 }
 0x602   : > { %4647 = vmatpush3.msra.mxu1 %v3836_v38 }
 0x603   : > { %4648 = vmatprep.subr.mxu1 %v3835_v39 }
 0x604   : > { %4649 = vmatpush3.msra.mxu1 %v3835_v39 }
 0x605   : > { %4650 = vmatprep.subr.mxu1 %v3834_v44 }
 0x606   : > { %4651 = vmatpush3.msra.mxu1 %v3834_v44 }
 0x607   : > { %4652 = vmatprep.subr.mxu1 %v3833_v33 }
 0x608   : > { %4653 = vmatpush3.msra.mxu1 %v3833_v33 }
 0x609   : > { %4654 = vmatprep.subr.mxu1 %v3832_v40 }
 0x60a   : > { %4655 = vmatpush3.msra.mxu1 %v3832_v40 }
 0x60b   : > { %4656 = vmatprep.subr.mxu1 %v3831_v41 }
 0x60c   : > { %4657 = vmatpush3.msra.mxu1 %v3831_v41 }
 0x60d   : > { %4658 = vmatprep.subr.mxu1 %v3830_v42 }
 0x60e   : > { %4659 = vmatpush3.msra.mxu1 %v3830_v42 }
 0x60f   : > { %4660 = vmatprep.subr.mxu1 %v3829_v43 }
 0x610   : > { %4661 = vmatpush3.msra.mxu1 %v3829_v43 }
 0x611   : > { %4662 = vmatprep.subr.mxu1 %v3828_v45 }
 0x612   : > { %4663 = vmatpush3.msra.mxu1 %v3828_v45 }
 0x613   : > { %4664 = vmatprep.subr.mxu1 %v3827_v46 }
 0x614   : > { %4665 = vmatpush3.msra.mxu1 %v3827_v46 }
 0x615   : > { %4666 = vmatprep.subr.mxu1 %v3826_v23 }
 0x616   : > { %4667 = vmatpush3.msra.mxu1 %v3826_v23 }
 0x617   : > { %4668 = vmatprep.subr.mxu1 %v3825_v47 }
 0x618   : > { %4669 = vmatpush3.msra.mxu1 %v3825_v47 }
 0x619   : > { %4671 = vmatmul.mubr.f32.vlgmr.msra.gmra.mxu1 %v5660_v36 }
 0x6b9   : > { %v4630_v48 = vpop.f32.mrf.mxu1  ;;  %v5739_v53 = vpop.f32.mrf.mxu0 }
 0x6ba   : > { %4631 = vmatprep.subr.mxu0 %v4630_v48  ;;  %v2049_v56 = vsel %vm1160_vm3, %v5739_v53, 0.0  ;;  %v2059_v57 = vmul.f32 %v5739_v53, %v5739_v53 }
 0x6bb   : > { %v2159_v49 = vpop.f32.mrf.mxu1  ;;  %4632 = vmatpush3.msra.mxu0 %v4630_v48  ;;  %v5741_v24 = vpop.f32.mrf.mxu0 }
 0x6bc   : > { %4633 = vmatprep.subr.mxu0 %v2159_v49  ;;  %v2048_v54 = vsel %vm1160_vm3, %v5741_v24, 0.0  ;;  %v2058_v55 = vmul.f32 %v5741_v24, %v5741_v24  ;;  %v2061_v60 = vsel %vm1160_vm3, %v2059_v57, 0.0 }
 0x6bd   : > { %4634 = vmatpush3.msra.mxu0 %v2159_v49  ;;  %v2050_v58 = vadd.f32 %v2049_v56, %v2048_v54 }
 0x6be   : > { %4636 = vmatmul.mubr.msk.f32.vlgmr.msra.gmra.mxu0 %vm1281_vm2, %v5437_v16  ;;  %v3847_v16 = vld [vmem:[%s6154_s8 + $0x30] sm:$0xff]  ;;  %v2060_v59 = vsel %vm1160_vm3, %v2058_v55, 0.0 }
 0x6bf   : > { %4677 = vmatprep.mubr.msk.f32.mxu0 %vm1281_vm2, %v5442_v17  ;;  %v3846_v17 = vld [vmem:[%s6154_s8 + $0x28] sm:$0xff]  ;;  %v2051_v62 = vrot.slane %v2050_v58, 4  ;;  %v2062_v0 = vadd.f32 %v2061_v60, %v2060_v59  ;;  %v3858_v59 = vld [vmem:[%s6158_s12 + $0x1] sm:$0x1] }
 0x6c1   : > { %v2052_v1 = vadd.f32 %v2051_v62, %v2050_v58  ;;  %v2063_v2 = vrot.slane %v2062_v0, 4 }
 0x6c3   : > { %v2053_v3 = vrot.slane %v2052_v1, 2  ;;  %v2064_v4 = vadd.f32 %v2063_v2, %v2062_v0 }
 0x6c5   : > { %v2054_v5 = vadd.f32 %v2053_v3, %v2052_v1  ;;  %v2065_v6 = vrot.slane %v2064_v4, 2 }
 0x6c7   : > { %v2055_v61 = vrot.slane %v2054_v5, 1  ;;  %v2066_v63 = vadd.f32 %v2065_v6, %v2064_v4 }
 0x6c9   : > { %v2056_v7 = vadd.f32 %v2055_v61, %v2054_v5  ;;  %v2067_v8 = vrot.slane %v2066_v63, 1 }
 0x6cb   : > { %v5755_v12 = vmul.f32 0.0625, %v2056_v7  ;;  %v2068_v13 = vadd.f32 %v2067_v8, %v2066_v63  ;;  %v3855_v7 = vld [vmem:[%s6157_s11 + $0x1] ss:$0 sm:$0xff] }
 0x6cd   : > { %v2069_v26 = vmul.f32 0.0625, %v2068_v13  ;;  %v2070_v28 = vmul.f32 %v5755_v12, %v5755_v12  ;;  %v2075_v3 = vsub.f32 %v5741_v24, %v5755_v12 }
 0x6cf   : > { %v2071_v9 = vsub.f32 %v2069_v26, %v2070_v28 }
 0x6d1   : > { %v2072_v33 = vadd.f32 1e-05, %v2071_v9 }
 0x6d3   : > { %4891 = vrsqrt.f32 %v2072_v33 }
 0x6d9   : > { %v4672_v50 = vpop.f32.mrf.mxu1 }
 0x6da   : > { %4673 = vmatprep.subr.mxu0 %v4672_v50 }
 0x6db   : > { %v2358_v51 = vpop.f32.mrf.mxu1  ;;  %4674 = vmatpush3.msra.mxu0 %v4672_v50 }
 0x6dc   : > { %4675 = vmatprep.subr.mxu0 %v2358_v51 }
 0x6dd   : > { %4676 = vmatpush3.msra.mxu0 %v2358_v51  ;;  %v3853_v51 = vld [vmem:[%s6156_s10 + $0x1] sm:$0x1] }
 0x6de   : > { %4678 = vmatmul.mubr.msk.f32.vlgmr.msra.gmra.mxu0 %vm1281_vm2, %v5461_v27  ;;  %4680 = vmatprep.subr.mxu0 %v3848_v52  ;;  %v3845_v27 = vld [vmem:[%s6154_s8 + $0x20] sm:$0xff] }
 0x6df   : > { %4681 = vmatpush3.msra.mxu0 %v3848_v52 }
 0x6e0   : > { %4682 = vmatprep.subr.mxu0 %v3847_v16  ;;  %v4892_v50 = vpop.eup %4891 }
 0x6e1   : > { %4683 = vmatpush3.msra.mxu0 %v3847_v16  ;;  %v2074_v16 = vmul.f32 %v4892_v50, %v3853_v51 }
 0x6e2   : > { %4684 = vmatprep.subr.mxu0 %v3846_v17 }
 0x6e3   : > { %4685 = vmatpush3.msra.mxu0 %v3846_v17  ;;  %v2080_v58 = vrot.slane %v2074_v16, %v5449_v19 }
 0x6e4   : > { %4686 = vmatprep.subr.mxu0 %v3845_v27 }
 0x6e5   : > { %4687 = vmatpush3.msra.mxu0 %v3845_v27  ;;  %v2081_v61 = vmul.f32 %v2080_v58, %v2075_v3  ;;  %v3888_v3 = vld [vmem:[%s6150_s4 + $0x168] sm:$0xff] }
 0x6e6   : > { %4691 = vmatprep.subr.mxu0 %v5736_v32 }
 0x6e7   : > { %v2089_v26 = vadd.f32 %v3855_v7, %v2081_v61  ;;  %v3886_v61 = vld [vmem:[%s6150_s4 + $0x158] sm:$0xff] }
 0x6e9   : > { %v2091_v33 = vmax.f32 %v2089_v26, 0.0  ;;  %v3880_v26 = vld [vmem:[%s6150_s4 + $0x128] sm:$0xff] }
 0x77e   : > { %v5753_v10 = vpop.f32.mrf.mxu0 }
 0x77f   : > { %v2248_v14 = vsel %vm1160_vm3, %v5753_v10, 0.0  ;;  %v2258_v15 = vmul.f32 %v5753_v10, %v5753_v10 }
 0x780   : > { %v2234_v18 = vpop.f32.mrf.mxu0 }
 0x781   : > { %v2260_v20 = vsel %vm1160_vm3, %v2258_v15, 0.0  ;;  %v2247_v21 = vsel %vm1160_vm3, %v2234_v18, 0.0  ;;  %v2257_v22 = vmul.f32 %v2234_v18, %v2234_v18 }
 0x782   : > { %v2249_v25 = vadd.f32 %v2248_v14, %v2247_v21 }
 0x783   : > { %v2259_v29 = vsel %vm1160_vm3, %v2257_v22, 0.0 }
 0x784   : > { %v2250_v30 = vrot.slane %v2249_v25, 4  ;;  %v2261_v31 = vadd.f32 %v2260_v20, %v2259_v29  ;;  %v3860_v20 = vld [vmem:[%s6159_s13 + $0x1] ss:$0 sm:$0xff] }
 0x786   : > { %v2251_v34 = vadd.f32 %v2250_v30, %v2249_v25  ;;  %v2262_v37 = vrot.slane %v2261_v31, 4 }
 0x788   : > { %v2252_v11 = vrot.slane %v2251_v34, 2  ;;  %v2263_v38 = vadd.f32 %v2262_v37, %v2261_v31 }
 0x78a   : > { %v2253_v39 = vadd.f32 %v2252_v11, %v2251_v34  ;;  %v2264_v44 = vrot.slane %v2263_v38, 2 }
 0x78c   : > { %v2254_v40 = vrot.slane %v2253_v39, 1  ;;  %v2265_v41 = vadd.f32 %v2264_v44, %v2263_v38  ;;  %v3843_v44 = vld [vmem:[%s6153_s7 + $0x30] sm:$0xff] }
 0x78e   : > { %v2255_v42 = vadd.f32 %v2254_v40, %v2253_v39  ;;  %v2266_v43 = vrot.slane %v2265_v41, 1 }
 0x790   : > { %v2256_v45 = vmul.f32 0.0625, %v2255_v42  ;;  %v2267_v46 = vadd.f32 %v2266_v43, %v2265_v41  ;;  %v3841_v43 = vld [vmem:[%s6153_s7 + $0x20] sm:$0xff] }
 0x792   : > { %v2268_v23 = vmul.f32 0.0625, %v2267_v46  ;;  %v2269_v47 = vmul.f32 %v2256_v45, %v2256_v45  ;;  %v2274_v63 = vsub.f32 %v2234_v18, %v2256_v45  ;;  %v2275_v8 = vsub.f32 %v5753_v10, %v2256_v45 }
 0x793   : > { %v2076_v10 = vsub.f32 %v5739_v53, %v5755_v12  ;;  %v3842_v53 = vld [vmem:[%s6153_s7 + $0x28] sm:$0xff] }
 0x794   : > { %v2270_v48 = vsub.f32 %v2268_v23, %v2269_v47  ;;  %v3851_v23 = vld [vmem:[%s6155_s9 + $0x30] sm:$0xff]  ;;  %v3850_v47 = vld [vmem:[%s6155_s9 + $0x28] sm:$0xff] }
 0x795   : > { %v2082_v11 = vmul.f32 %v2080_v58, %v2076_v10  ;;  %v3893_v10 = vld [vmem:[%s6151_s5 + $0x110] sm:$0xff] }
 0x796   : > { %v2271_v49 = vadd.f32 1e-05, %v2270_v48  ;;  %v3849_v48 = vld [vmem:[%s6155_s9 + $0x20] sm:$0xff] }
 0x797   : > { %v2090_v12 = vadd.f32 %v3855_v7, %v2082_v11  ;;  %v3885_v7 = vld [vmem:[%s6150_s4 + $0x150] sm:$0xff]  ;;  %v3875_v11 = vld [vmem:[%s6150_s4 + $0x100] sm:$0xff] }
 0x798   : > { %4893 = vrsqrt.f32 %v2271_v49  ;;  %v3863_v49 = vld [vmem:[%s6160_s14 + $0x1] sm:$0x1] }
 0x799   : > { %v2092_v46 = vmax.f32 %v2090_v12, 0.0 }
 0x79e   : > { %v5769_v52 = vpop.f32.mrf.mxu0 }
 0x79f   : > { %v2457_v17 = vmul.f32 %v5769_v52, %v5769_v52  ;;  %v2447_v54 = vsel %vm1160_vm3, %v5769_v52, 0.0 }
 0x7a0   : > { %v5773_v27 = vpop.f32.mrf.mxu0 }
 0x7a1   : > { %v2446_v55 = vsel %vm1160_vm3, %v5773_v27, 0.0  ;;  %v2456_v56 = vmul.f32 %v5773_v27, %v5773_v27  ;;  %v2459_v60 = vsel %vm1160_vm3, %v2457_v17, 0.0 }
 0x7a2   : > { %v2448_v57 = vadd.f32 %v2447_v54, %v2446_v55  ;;  %v3865_v55 = vld [vmem:[%s6161_s15 + $0x1] ss:$0 sm:$0xff] }
 0x7a3   : > { %v2458_v62 = vsel %vm1160_vm3, %v2456_v56, 0.0 }
 0x7a4   : > { %v2449_v0 = vrot.slane %v2448_v57, 4  ;;  %v2460_v1 = vadd.f32 %v2459_v60, %v2458_v62 }
 0x7a5   : > { %v4894_v2 = vpop.eup %4893 }
 0x7a6   : > { %v2273_v4 = vmul.f32 %v4894_v2, %v3858_v59  ;;  %v2450_v5 = vadd.f32 %v2449_v0, %v2448_v57  ;;  %v2461_v6 = vrot.slane %v2460_v1, 4  ;;  %v3905_v0 = vld [vmem:[%s6151_s5 + $0x170] sm:$0xff]  ;;  %v3904_v2 = vld [vmem:[%s6151_s5 + $0x168] sm:$0xff] }
 0x7a8   : > { %v2279_v13 = vrot.slane %v2273_v4, %v5449_v19  ;;  %v2451_v14 = vrot.slane %v2450_v5, 2  ;;  %v2462_v15 = vadd.f32 %v2461_v6, %v2460_v1  ;;  %v3889_v1 = vld [vmem:[%s6150_s4 + $0x170] sm:$0xff]  ;;  %v3903_v4 = vld [vmem:[%s6151_s5 + $0x160] sm:$0xff]  ;;  %v3902_v6 = vld [vmem:[%s6151_s5 + $0x158] sm:$0xff] }
 0x7aa   : > { %v2280_v24 = vmul.f32 %v2279_v13, %v2274_v63  ;;  %v2281_v21 = vmul.f32 %v2279_v13, %v2275_v8  ;;  %v2452_v22 = vadd.f32 %v2451_v14, %v2450_v5  ;;  %v2463_v25 = vrot.slane %v2462_v15, 2  ;;  %v3887_v5 = vld [vmem:[%s6150_s4 + $0x160] sm:$0xff]  ;;  %v3901_v63 = vld [vmem:[%s6151_s5 + $0x150] sm:$0xff]  ;;  %v3900_v8 = vld [vmem:[%s6151_s5 + $0x148] sm:$0xff] }
 0x7ab   : > { %v3884_v13 = vld [vmem:[%s6150_s4 + $0x148] sm:$0xff]  ;;  %v3899_v14 = vld [vmem:[%s6151_s5 + $0x140] sm:$0xff] }
 0x7ac   : > { %v2288_v18 = vadd.f32 %v3860_v20, %v2280_v24  ;;  %v2289_v28 = vadd.f32 %v3860_v20, %v2281_v21  ;;  %v2453_v29 = vrot.slane %v2452_v22, 1  ;;  %v2464_v30 = vadd.f32 %v2463_v25, %v2462_v15  ;;  %v3883_v15 = vld [vmem:[%s6150_s4 + $0x140] sm:$0xff]  ;;  %v3898_v20 = vld [vmem:[%s6151_s5 + $0x138] sm:$0xff]  ;;  %v3897_v21 = vld [vmem:[%s6151_s5 + $0x130] sm:$0xff] }
 0x7ad   : > { %v3882_v24 = vld [vmem:[%s6150_s4 + $0x138] sm:$0xff]  ;;  %v3896_v25 = vld [vmem:[%s6151_s5 + $0x128] sm:$0xff] }
 0x7ae   : > { %v2291_v31 = vmax.f32 %v2289_v28, 0.0  ;;  %v2454_v34 = vadd.f32 %v2453_v29, %v2452_v22  ;;  %v2465_v37 = vrot.slane %v2464_v30, 1  ;;  %v2290_v9 = vmax.f32 %v2288_v18, 0.0  ;;  %v3881_v22 = vld [vmem:[%s6150_s4 + $0x130] sm:$0xff]  ;;  %v3895_v18 = vld [vmem:[%s6151_s5 + $0x120] sm:$0xff]  ;;  %v3894_v29 = vld [vmem:[%s6151_s5 + $0x118] sm:$0xff] }
 0x7af   : > { %v3879_v28 = vld [vmem:[%s6150_s4 + $0x120] sm:$0xff] }
 0x7b0   : > { %v2455_v38 = vmul.f32 0.0625, %v2454_v34  ;;  %v2466_v39 = vadd.f32 %v2465_v37, %v2464_v30  ;;  %4688 = vmatprep.mubr.msk.f32.mxu0 %vm1160_vm3, %v2290_v9  ;;  %v3878_v30 = vld [vmem:[%s6150_s4 + $0x118] sm:$0xff]  ;;  %v3892_v34 = vld [vmem:[%s6151_s5 + $0x108] sm:$0xff]  ;;  %v3891_v9 = vld [vmem:[%s6151_s5 + $0x100] sm:$0xff] }
 0x7b1   : > { %4689 = vmatmul.mubr.msk.f32.vlgmr.msra.gmra.mxu0 %vm1160_vm3, %v2291_v31  ;;  %v3877_v31 = vld [vmem:[%s6150_s4 + $0x110] sm:$0xff]  ;;  %v3876_v37 = vld [vmem:[%s6150_s4 + $0x108] sm:$0xff] }
 0x7b2   : > { %v2467_v40 = vmul.f32 0.0625, %v2466_v39  ;;  %v2468_v41 = vmul.f32 %v2455_v38, %v2455_v38  ;;  %4692 = vmatpush3.msra.mxu0 %v5736_v32  ;;  %4699 = vmatprep.mubr.msk.f32.mxu0 %vm1160_vm3, %v2091_v33  ;;  %v3852_v32 = vld [vmem:[%s6155_s9 + $0x38] sm:$0xff]  ;;  %v2473_v16 = vsub.f32 %v5773_v27, %v2455_v38  ;;  %v2474_v17 = vsub.f32 %v5769_v52, %v2455_v38 }
 0x7b3   : > { %4693 = vmatprep.subr.mxu0 %v3843_v44  ;;  %v3906_v52 = vld [vmem:[%s6151_s5 + $0x178] sm:$0xff] }
 0x7b4   : > { %v2469_v42 = vsub.f32 %v2467_v40, %v2468_v41  ;;  %4694 = vmatpush3.msra.mxu0 %v3843_v44  ;;  %4748 = vmatprep.subr.mxu1 %v3906_v52  ;;  %v3890_v27 = vld [vmem:[%s6150_s4 + $0x178] sm:$0xff] }
 0x7b5   : > { %4695 = vmatprep.subr.mxu0 %v3842_v53  ;;  %4749 = vmatpush3.msra.mxu1 %v3906_v52  ;;  %v3922_v38 = vld [vmem:[%s6152_s6 + $0x178] sm:$0xff] }
 0x7b6   : > { %v2470_v45 = vadd.f32 1e-05, %v2469_v42  ;;  %4696 = vmatpush3.msra.mxu0 %v3842_v53  ;;  %4750 = vmatprep.subr.mxu1 %v3905_v0 }
 0x7b7   : > { %4697 = vmatprep.subr.mxu0 %v3841_v43  ;;  %4751 = vmatpush3.msra.mxu1 %v3905_v0 }
 0x7b8   : > { %4895 = vrsqrt.f32 %v2470_v45  ;;  %4698 = vmatpush3.msra.mxu0 %v3841_v43  ;;  %4752 = vmatprep.subr.mxu1 %v3904_v2 }
 0x7b9   : > { %4700 = vmatmul.mubr.msk.f32.vlgmr.msra.gmra.mxu0 %vm1160_vm3, %v2092_v46  ;;  %4702 = vmatprep.subr.mxu0 %v3852_v32 }
 0x7ba   : > { %4703 = vmatpush3.msra.mxu0 %v3852_v32  ;;  %4753 = vmatpush3.msra.mxu1 %v3904_v2 }
 0x7bb   : > { %4704 = vmatprep.subr.mxu0 %v3851_v23  ;;  %4754 = vmatprep.subr.mxu1 %v3903_v4 }
 0x7bc   : > { %4705 = vmatpush3.msra.mxu0 %v3851_v23  ;;  %4755 = vmatpush3.msra.mxu1 %v3903_v4 }
 0x7bd   : > { %4706 = vmatprep.subr.mxu0 %v3850_v47  ;;  %4756 = vmatprep.subr.mxu1 %v3902_v6 }
 0x7be   : > { %4707 = vmatpush3.msra.mxu0 %v3850_v47  ;;  %4757 = vmatpush3.msra.mxu1 %v3902_v6 }
 0x7bf   : > { %4708 = vmatprep.subr.mxu0 %v3849_v48  ;;  %4758 = vmatprep.subr.mxu1 %v3901_v63 }
 0x7c0   : > { %4709 = vmatpush3.msra.mxu0 %v3849_v48  ;;  %4759 = vmatpush3.msra.mxu1 %v3901_v63 }
 0x7c1   : > { %4713 = vmatprep.subr.mxu0 %v3890_v27  ;;  %4760 = vmatprep.subr.mxu1 %v3900_v8 }
 0x7c2   : > { %4761 = vmatpush3.msra.mxu1 %v3900_v8 }
 0x7c3   : > { %4762 = vmatprep.subr.mxu1 %v3899_v14 }
 0x7c4   : > { %4763 = vmatpush3.msra.mxu1 %v3899_v14 }
 0x7c5   : > { %v4896_v50 = vpop.eup %4895  ;;  %4764 = vmatprep.subr.mxu1 %v3898_v20 }
 0x7c6   : > { %v2472_v51 = vmul.f32 %v4896_v50, %v3863_v49  ;;  %4765 = vmatpush3.msra.mxu1 %v3898_v20 }
 0x7c7   : > { %4766 = vmatprep.subr.mxu1 %v3897_v21 }
 0x7c8   : > { %v2478_v54 = vrot.slane %v2472_v51, %v5449_v19  ;;  %4767 = vmatpush3.msra.mxu1 %v3897_v21  ;;  %v3921_v21 = vld [vmem:[%s6152_s6 + $0x170] sm:$0xff] }
 0x7c9   : > { %4768 = vmatprep.subr.mxu1 %v3896_v25 }
 0x7ca   : > { %v2479_v56 = vmul.f32 %v2478_v54, %v2473_v16  ;;  %v2480_v57 = vmul.f32 %v2478_v54, %v2474_v17  ;;  %4769 = vmatpush3.msra.mxu1 %v3896_v25  ;;  %v3918_v25 = vld [vmem:[%s6152_s6 + $0x158] sm:$0xff] }
 0x7cb   : > { %4770 = vmatprep.subr.mxu1 %v3895_v18 }
 0x7cc   : > { %v2487_v58 = vadd.f32 %v3865_v55, %v2479_v56  ;;  %v2488_v59 = vadd.f32 %v3865_v55, %v2480_v57  ;;  %4771 = vmatpush3.msra.mxu1 %v3895_v18  ;;  %v3916_v18 = vld [vmem:[%s6152_s6 + $0x148] sm:$0xff] }
 0x7cd   : > { %4772 = vmatprep.subr.mxu1 %v3894_v29 }
 0x7ce   : > { %v2490_v60 = vmax.f32 %v2488_v59, 0.0  ;;  %v2489_v62 = vmax.f32 %v2487_v58, 0.0  ;;  %4773 = vmatpush3.msra.mxu1 %v3894_v29  ;;  %v3914_v29 = vld [vmem:[%s6152_s6 + $0x138] sm:$0xff] }
 0x7cf   : > { %4774 = vmatprep.subr.mxu1 %v3893_v10 }
 0x7d0   : > { %4710 = vmatprep.mubr.msk.f32.mxu0 %vm1160_vm3, %v2489_v62  ;;  %4775 = vmatpush3.msra.mxu1 %v3893_v10  ;;  %v3912_v10 = vld [vmem:[%s6152_s6 + $0x128] sm:$0xff] }
 0x7d1   : > { %4711 = vmatmul.mubr.msk.f32.vlgmr.msra.gmra.mxu0 %vm1160_vm3, %v2490_v60  ;;  %4776 = vmatprep.subr.mxu1 %v3892_v34 }
 0x7d2   : > { %4714 = vmatpush3.msra.mxu0 %v3890_v27  ;;  %4777 = vmatpush3.msra.mxu1 %v3892_v34  ;;  %v3910_v34 = vld [vmem:[%s6152_s6 + $0x118] sm:$0xff] }
 0x7d3   : > { %4715 = vmatprep.subr.mxu0 %v3889_v1  ;;  %4778 = vmatprep.subr.mxu1 %v3891_v9 }
 0x7d4   : > { %4716 = vmatpush3.msra.mxu0 %v3889_v1  ;;  %4779 = vmatpush3.msra.mxu1 %v3891_v9  ;;  %v3872_v1 = vld [vmem:[%s6162_s16 + $0x1] sm:$0x1]  ;;  %v3908_v9 = vld [vmem:[%s6152_s6 + $0x108] sm:$0xff] }
 0x7d5   : > { %4717 = vmatprep.subr.mxu0 %v3888_v3  ;;  %4790 = vmatprep.subr.mxu1 %v3922_v38 }
 0x7d6   : > { %4718 = vmatpush3.msra.mxu0 %v3888_v3 }
 0x7d7   : > { %4719 = vmatprep.subr.mxu0 %v3887_v5 }
 0x7d8   : > { %4720 = vmatpush3.msra.mxu0 %v3887_v5 }
 0x7d9   : > { %4721 = vmatprep.subr.mxu0 %v3886_v61 }
 0x7da   : > { %4722 = vmatpush3.msra.mxu0 %v3886_v61  ;;  %v3874_v61 = vld [vmem:[%s6163_s17 + $0x1] ss:$0 sm:$0xff] }
 0x7db   : > { %4723 = vmatprep.subr.mxu0 %v3885_v7 }
 0x7dc   : > { %4724 = vmatpush3.msra.mxu0 %v3885_v7 }
 0x7dd   : > { %4725 = vmatprep.subr.mxu0 %v3884_v13 }
 0x7de   : > { %4726 = vmatpush3.msra.mxu0 %v3884_v13 }
 0x7df   : > { %4727 = vmatprep.subr.mxu0 %v3883_v15 }
 0x7e0   : > { %4728 = vmatpush3.msra.mxu0 %v3883_v15 }
 0x7e1   : > { %4729 = vmatprep.subr.mxu0 %v3882_v24 }
 0x7e2   : > { %4730 = vmatpush3.msra.mxu0 %v3882_v24 }
 0x7e3   : > { %4731 = vmatprep.subr.mxu0 %v3881_v22 }
 0x7e4   : > { %4732 = vmatpush3.msra.mxu0 %v3881_v22  ;;  %v3919_v22 = vld [vmem:[%s6152_s6 + $0x160] sm:$0xff] }
 0x7e5   : > { %4733 = vmatprep.subr.mxu0 %v3880_v26 }
 0x7e6   : > { %4734 = vmatpush3.msra.mxu0 %v3880_v26  ;;  %v3917_v26 = vld [vmem:[%s6152_s6 + $0x150] sm:$0xff] }
 0x7e7   : > { %4735 = vmatprep.subr.mxu0 %v3879_v28 }
 0x7e8   : > { %4736 = vmatpush3.msra.mxu0 %v3879_v28  ;;  %v3915_v28 = vld [vmem:[%s6152_s6 + $0x140] sm:$0xff] }
 0x7e9   : > { %4737 = vmatprep.subr.mxu0 %v3878_v30 }
 0x7ea   : > { %4738 = vmatpush3.msra.mxu0 %v3878_v30  ;;  %v3913_v30 = vld [vmem:[%s6152_s6 + $0x130] sm:$0xff] }
 0x7eb   : > { %4739 = vmatprep.subr.mxu0 %v3877_v31 }
 0x7ec   : > { %4740 = vmatpush3.msra.mxu0 %v3877_v31  ;;  %v3911_v31 = vld [vmem:[%s6152_s6 + $0x120] sm:$0xff] }
 0x7ed   : > { %4741 = vmatprep.subr.mxu0 %v3876_v37 }
 0x7ee   : > { %4742 = vmatpush3.msra.mxu0 %v3876_v37  ;;  %v3909_v37 = vld [vmem:[%s6152_s6 + $0x110] sm:$0xff] }
 0x7ef   : > { %4743 = vmatprep.subr.mxu0 %v3875_v11 }
 0x7f0   : > { %4744 = vmatpush3.msra.mxu0 %v3875_v11  ;;  %v3907_v11 = vld [vmem:[%s6152_s6 + $0x100] sm:$0xff] }
 0x871   : > { %v4690_v39 = vpop.f32.mrf.mxu0 }
 0x873   : > { %v2563_v44 = vpop.f32.mrf.mxu0 }
 0x879   : > { %v4701_v33 = vpop.f32.mrf.mxu0 }
 0x87a   : > { %v2650_v41 = vadd.f32 %v4701_v33, %v4690_v39  ;;  %v4909_v33 = vld [vmem:[%s6149_s3] sm:$0xff] }
 0x87b   : > { %v2644_v40 = vpop.f32.mrf.mxu0 }
 0x87c   : > { %v2645_v12 = vadd.f32 %v2644_v40, %v2563_v44  ;;  %v4908_v44 = vld [vmem:[%s6171_s0 + $0x8] sm:$0xff] }
 0x891   : > { %v4712_v53 = vpop.f32.mrf.mxu0 }
 0x892   : > { %v2735_v42 = vadd.f32 %v4712_v53, %v2650_v41  ;;  %v4910_v53 = vld [vmem:[%s6149_s3 + $0x8] sm:$0xff] }
 0x893   : > { %v2725_v43 = vpop.f32.mrf.mxu0 }
 0x894   : > { %v2734_v45 = vadd.f32 %v2725_v43, %v2645_v12  ;;  %v2749_v32 = vmul.f32 %v2735_v42, %v2735_v42  ;;  %v3930_v12 = vld [vmem:[%s6154_s8 + $0x58] sm:$0xff]  ;;  %v3928_v43 = vld [vmem:[%s6154_s8 + $0x48] sm:$0xff] }
 0x896   : > { %v2740_v46 = vadd.f32 %v2735_v42, %v2734_v45  ;;  %v2748_v23 = vmul.f32 %v2734_v45, %v2734_v45 }
 0x898   : > { %v2741_v47 = vrot.slane %v2740_v46, 4  ;;  %v2750_v48 = vadd.f32 %v2749_v32, %v2748_v23  ;;  %v6030_v32 = vld [vmem:[%s6153_s7 + $0x58] sm:$0xff] }
 0x89a   : > { %v2742_v49 = vadd.f32 %v2741_v47, %v2740_v46  ;;  %v2751_v50 = vrot.slane %v2750_v48, 4 }
 0x89c   : > { %v2743_v51 = vrot.slane %v2742_v49, 2  ;;  %v2752_v16 = vadd.f32 %v2751_v50, %v2750_v48 }
 0x89e   : > { %v2744_v17 = vadd.f32 %v2743_v51, %v2742_v49  ;;  %v2753_v54 = vrot.slane %v2752_v16, 2 }
 0x8a0   : > { %v2745_v55 = vrot.slane %v2744_v17, 1  ;;  %v2754_v56 = vadd.f32 %v2753_v54, %v2752_v16 }
 0x8a2   : > { %v2746_v57 = vadd.f32 %v2745_v55, %v2744_v17  ;;  %v2755_v58 = vrot.slane %v2754_v56, 1 }
 0x8a4   : > { %v2747_v59 = vmul.f32 0.0625, %v2746_v57  ;;  %v2756_v60 = vadd.f32 %v2755_v58, %v2754_v56 }
 0x8a6   : > { %v2757_v62 = vmul.f32 0.0625, %v2756_v60  ;;  %v2758_v52 = vmul.f32 %v2747_v59, %v2747_v59  ;;  %v2763_v4 = vsub.f32 %v2734_v45, %v2747_v59  ;;  %v2764_v5 = vsub.f32 %v2735_v42, %v2747_v59  ;;  %v3929_v42 = vld [vmem:[%s6154_s8 + $0x50] sm:$0xff]  ;;  %v3927_v45 = vld [vmem:[%s6154_s8 + $0x40] sm:$0xff] }
 0x8a8   : > { %v2759_v27 = vsub.f32 %v2757_v62, %v2758_v52 }
 0x8aa   : > { %v2760_v0 = vadd.f32 1e-05, %v2759_v27 }
 0x8ac   : > { %4897 = vrsqrt.f32 %v2760_v0 }
 0x8b9   : > { %v4898_v2 = vpop.eup %4897 }
 0x8ba   : > { %v2762_v3 = vmul.f32 %v4898_v2, %v3872_v1 }
 0x8bc   : > { %v2768_v6 = vrot.slane %v2762_v3, %v5449_v19 }
 0x8be   : > { %v2769_v63 = vmul.f32 %v2768_v6, %v2763_v4  ;;  %v2770_v7 = vmul.f32 %v2768_v6, %v2764_v5 }
 0x8c0   : > { %v2777_v8 = vadd.f32 %v3874_v61, %v2769_v63  ;;  %v2778_v13 = vadd.f32 %v3874_v61, %v2770_v7 }
 0x8c2   : > { %v2779_v14 = vadd.f32 %v2777_v8, %v5658_v35  ;;  %v2780_v15 = vadd.f32 %v2778_v13, %v5660_v36  ;;  %v3920_v35 = vld [vmem:[%s6152_s6 + $0x168] sm:$0xff]  ;;  %v4907_v36 = vld [vmem:[%s6171_s0] sm:$0xff] }
 0x8c4   : > { %v5944_v20 = vmax.f32 %v2779_v14, 0.0  ;;  %v5946_v24 = vmax.f32 %v2780_v15, 0.0 }
 0x8c6   : > { %4745 = vmatprep.mubr.f32.mxu0 %v5944_v20  ;;  %4780 = vmatprep.mubr.f32.mxu1 %v5944_v20 }
 0x8c7   : > { %4746 = vmatmul.mubr.f32.vlgmr.msra.gmra.mxu0 %v5946_v24  ;;  %4781 = vmatmul.mubr.f32.vlgmr.msra.gmra.mxu1 %v5946_v24 }
 0x8c8   : > { %4791 = vmatpush3.msra.mxu1 %v3922_v38  ;;  %4822 = vmatprep.mubr.f32.mxu1 %v5944_v20 }
 0x8c9   : > { %4792 = vmatprep.subr.mxu1 %v3921_v21  ;;  %4787 = vmatprep.mubr.msk.f32.mxu0 %vm1281_vm2, %v4907_v36 }
 0x8ca   : > { %4793 = vmatpush3.msra.mxu1 %v3921_v21 }
 0x8cb   : > { %4794 = vmatprep.subr.mxu1 %v3920_v35 }
 0x8cc   : > { %4795 = vmatpush3.msra.mxu1 %v3920_v35 }
 0x8cd   : > { %4796 = vmatprep.subr.mxu1 %v3919_v22 }
 0x8ce   : > { %4797 = vmatpush3.msra.mxu1 %v3919_v22 }
 0x8cf   : > { %4798 = vmatprep.subr.mxu1 %v3918_v25 }
 0x8d0   : > { %4799 = vmatpush3.msra.mxu1 %v3918_v25 }
 0x8d1   : > { %4800 = vmatprep.subr.mxu1 %v3917_v26 }
 0x8d2   : > { %4801 = vmatpush3.msra.mxu1 %v3917_v26 }
 0x8d3   : > { %4802 = vmatprep.subr.mxu1 %v3916_v18 }
 0x8d4   : > { %4803 = vmatpush3.msra.mxu1 %v3916_v18 }
 0x8d5   : > { %4804 = vmatprep.subr.mxu1 %v3915_v28 }
 0x8d6   : > { %4805 = vmatpush3.msra.mxu1 %v3915_v28 }
 0x8d7   : > { %4806 = vmatprep.subr.mxu1 %v3914_v29 }
 0x8d8   : > { %4807 = vmatpush3.msra.mxu1 %v3914_v29 }
 0x8d9   : > { %4808 = vmatprep.subr.mxu1 %v3913_v30 }
 0x8da   : > { %4809 = vmatpush3.msra.mxu1 %v3913_v30 }
 0x8db   : > { %4810 = vmatprep.subr.mxu1 %v3912_v10 }
 0x8dc   : > { %4811 = vmatpush3.msra.mxu1 %v3912_v10 }
 0x8dd   : > { %4812 = vmatprep.subr.mxu1 %v3911_v31 }
 0x8de   : > { %4813 = vmatpush3.msra.mxu1 %v3911_v31 }
 0x8df   : > { %4814 = vmatprep.subr.mxu1 %v3910_v34 }
 0x8e0   : > { %4815 = vmatpush3.msra.mxu1 %v3910_v34 }
 0x8e1   : > { %4816 = vmatprep.subr.mxu1 %v3909_v37 }
 0x8e2   : > { %4817 = vmatpush3.msra.mxu1 %v3909_v37 }
 0x8e3   : > { %4818 = vmatprep.subr.mxu1 %v3908_v9 }
 0x8e4   : > { %4819 = vmatpush3.msra.mxu1 %v3908_v9 }
 0x8e5   : > { %4820 = vmatprep.subr.mxu1 %v3907_v11 }
 0x8e6   : > { %4821 = vmatpush3.msra.mxu1 %v3907_v11 }
 0x8e7   : > { %4823 = vmatmul.mubr.f32.vlgmr.msra.gmra.mxu1 %v5946_v24 }
 0x987   : > { %v4782_v38 = vpop.f32.mrf.mxu1  ;;  %v6033_v46 = vpop.f32.mrf.mxu0 }
 0x988   : > { %4783 = vmatprep.subr.mxu0 %v4782_v38  ;;  %v2929_v49 = vsel %vm1160_vm3, %v6033_v46, 0.0  ;;  %v2939_v50 = vmul.f32 %v6033_v46, %v6033_v46 }
 0x989   : > { %v3039_v39 = vpop.f32.mrf.mxu1  ;;  %4784 = vmatpush3.msra.mxu0 %v4782_v38  ;;  %v6035_v23 = vpop.f32.mrf.mxu0 }
 0x98a   : > { %4785 = vmatprep.subr.mxu0 %v3039_v39  ;;  %v2928_v47 = vsel %vm1160_vm3, %v6035_v23, 0.0  ;;  %v2938_v48 = vmul.f32 %v6035_v23, %v6035_v23  ;;  %v2941_v17 = vsel %vm1160_vm3, %v2939_v50, 0.0 }
 0x98b   : > { %4786 = vmatpush3.msra.mxu0 %v3039_v39  ;;  %v2930_v51 = vadd.f32 %v2929_v49, %v2928_v47 }
 0x98c   : > { %4788 = vmatmul.mubr.msk.f32.vlgmr.msra.gmra.mxu0 %vm1281_vm2, %v4908_v44  ;;  %v2940_v16 = vsel %vm1160_vm3, %v2938_v48, 0.0 }
 0x98d   : > { %4829 = vmatprep.mubr.msk.f32.mxu0 %vm1281_vm2, %v4909_v33  ;;  %v2931_v54 = vrot.slane %v2930_v51, 4  ;;  %v2942_v55 = vadd.f32 %v2941_v17, %v2940_v16  ;;  %v3940_v16 = vld [vmem:[%s6158_s12 + $0x2] sm:$0x1] }
 0x98f   : > { %v2932_v56 = vadd.f32 %v2931_v54, %v2930_v51  ;;  %v2943_v57 = vrot.slane %v2942_v55, 4 }
 0x991   : > { %v2933_v58 = vrot.slane %v2932_v56, 2  ;;  %v2944_v59 = vadd.f32 %v2943_v57, %v2942_v55 }
 0x993   : > { %v2934_v60 = vadd.f32 %v2933_v58, %v2932_v56  ;;  %v2945_v62 = vrot.slane %v2944_v59, 2 }
 0x995   : > { %v2935_v52 = vrot.slane %v2934_v60, 1  ;;  %v2946_v27 = vadd.f32 %v2945_v62, %v2944_v59 }
 0x997   : > { %v2936_v0 = vadd.f32 %v2935_v52, %v2934_v60  ;;  %v2947_v1 = vrot.slane %v2946_v27, 1 }
 0x999   : > { %v6049_v3 = vmul.f32 0.0625, %v2936_v0  ;;  %v2948_v4 = vadd.f32 %v2947_v1, %v2946_v27  ;;  %v3937_v0 = vld [vmem:[%s6157_s11 + $0x2] ss:$0 sm:$0xff] }
 0x99b   : > { %v2949_v14 = vmul.f32 0.0625, %v2948_v4  ;;  %v2950_v15 = vmul.f32 %v6049_v3, %v6049_v3  ;;  %v2955_v58 = vsub.f32 %v6035_v23, %v6049_v3 }
 0x99d   : > { %v2951_v26 = vsub.f32 %v2949_v14, %v2950_v15 }
 0x99f   : > { %v2952_v10 = vadd.f32 1e-05, %v2951_v26 }
 0x9a1   : > { %4899 = vrsqrt.f32 %v2952_v10 }
 0x9a7   : > { %v4824_v40 = vpop.f32.mrf.mxu1 }
 0x9a8   : > { %4825 = vmatprep.subr.mxu0 %v4824_v40 }
 0x9a9   : > { %v3238_v41 = vpop.f32.mrf.mxu1  ;;  %4826 = vmatpush3.msra.mxu0 %v4824_v40 }
 0x9aa   : > { %4827 = vmatprep.subr.mxu0 %v3238_v41 }
 0x9ab   : > { %4828 = vmatpush3.msra.mxu0 %v3238_v41 }
 0x9ac   : > { %4830 = vmatmul.mubr.msk.f32.vlgmr.msra.gmra.mxu0 %vm1281_vm2, %v4910_v53  ;;  %4832 = vmatprep.subr.mxu0 %v3930_v12  ;;  %v3935_v53 = vld [vmem:[%s6156_s10 + $0x2] sm:$0x1] }
 0x9ad   : > { %4833 = vmatpush3.msra.mxu0 %v3930_v12 }
 0x9ae   : > { %4834 = vmatprep.subr.mxu0 %v3929_v42  ;;  %v4900_v41 = vpop.eup %4899 }
 0x9af   : > { %4835 = vmatpush3.msra.mxu0 %v3929_v42  ;;  %v2954_v42 = vmul.f32 %v4900_v41, %v3935_v53 }
 0x9b0   : > { %4836 = vmatprep.subr.mxu0 %v3928_v43 }
 0x9b1   : > { %4837 = vmatpush3.msra.mxu0 %v3928_v43  ;;  %v2960_v51 = vrot.slane %v2954_v42, %v5449_v19 }
 0x9b2   : > { %4838 = vmatprep.subr.mxu0 %v3927_v45 }
 0x9b3   : > { %4839 = vmatpush3.msra.mxu0 %v3927_v45  ;;  %v2961_v52 = vmul.f32 %v2960_v51, %v2955_v58 }
 0x9b4   : > { %4843 = vmatprep.subr.mxu0 %v6030_v32 }
 0x9b5   : > { %v2969_v14 = vadd.f32 %v3937_v0, %v2961_v52 }
 0x9b7   : > { %v2971_v10 = vmax.f32 %v2969_v14, 0.0 }
 0xa4c   : > { %v6047_v2 = vpop.f32.mrf.mxu0 }
 0xa4d   : > { %v3128_v5 = vsel %vm1160_vm3, %v6047_v2, 0.0  ;;  %v3138_v6 = vmul.f32 %v6047_v2, %v6047_v2 }
 0xa4e   : > { %v3114_v61 = vpop.f32.mrf.mxu0 }
 0xa4f   : > { %v3140_v63 = vsel %vm1160_vm3, %v3138_v6, 0.0  ;;  %v3127_v7 = vsel %vm1160_vm3, %v3114_v61, 0.0  ;;  %v3137_v8 = vmul.f32 %v3114_v61, %v3114_v61 }
 0xa50   : > { %v3129_v13 = vadd.f32 %v3128_v5, %v3127_v7 }
 0xa51   : > { %v3139_v21 = vsel %vm1160_vm3, %v3137_v8, 0.0 }
 0xa52   : > { %v3130_v35 = vrot.slane %v3129_v13, 4  ;;  %v3141_v36 = vadd.f32 %v3140_v63, %v3139_v21  ;;  %v3942_v63 = vld [vmem:[%s6159_s13 + $0x2] ss:$0 sm:$0xff] }
 0xa54   : > { %v3131_v22 = vadd.f32 %v3130_v35, %v3129_v13  ;;  %v3142_v25 = vrot.slane %v3141_v36, 4 }
 0xa56   : > { %v3132_v18 = vrot.slane %v3131_v22, 2  ;;  %v3143_v28 = vadd.f32 %v3142_v25, %v3141_v36 }
 0xa58   : > { %v3133_v29 = vadd.f32 %v3132_v18, %v3131_v22  ;;  %v3144_v30 = vrot.slane %v3143_v28, 2 }
 0xa5a   : > { %v3134_v31 = vrot.slane %v3133_v29, 1  ;;  %v3145_v34 = vadd.f32 %v3144_v30, %v3143_v28  ;;  %v3925_v30 = vld [vmem:[%s6153_s7 + $0x50] sm:$0xff] }
 0xa5c   : > { %v3135_v37 = vadd.f32 %v3134_v31, %v3133_v29  ;;  %v3146_v9 = vrot.slane %v3145_v34, 1 }
 0xa5e   : > { %v3136_v11 = vmul.f32 0.0625, %v3135_v37  ;;  %v3147_v38 = vadd.f32 %v3146_v9, %v3145_v34  ;;  %v3923_v9 = vld [vmem:[%s6153_s7 + $0x40] sm:$0xff] }
 0xa60   : > { %v3148_v39 = vmul.f32 0.0625, %v3147_v38  ;;  %v3149_v44 = vmul.f32 %v3136_v11, %v3136_v11  ;;  %v3154_v27 = vsub.f32 %v3114_v61, %v3136_v11  ;;  %v3155_v1 = vsub.f32 %v6047_v2, %v3136_v11 }
 0xa61   : > { %v2956_v2 = vsub.f32 %v6033_v46, %v6049_v3  ;;  %v3924_v46 = vld [vmem:[%s6153_s7 + $0x48] sm:$0xff] }
 0xa62   : > { %v3150_v33 = vsub.f32 %v3148_v39, %v3149_v44  ;;  %v3933_v39 = vld [vmem:[%s6155_s9 + $0x50] sm:$0xff]  ;;  %v3932_v44 = vld [vmem:[%s6155_s9 + $0x48] sm:$0xff] }
 0xa63   : > { %v2962_v18 = vmul.f32 %v2960_v51, %v2956_v2 }
 0xa64   : > { %v3151_v40 = vadd.f32 1e-05, %v3150_v33  ;;  %v3931_v33 = vld [vmem:[%s6155_s9 + $0x40] sm:$0xff] }
 0xa65   : > { %v2970_v3 = vadd.f32 %v3937_v0, %v2962_v18  ;;  %v3954_v18 = vld [vmem:[%s6162_s16 + $0x2] sm:$0x1] }
 0xa66   : > { %4901 = vrsqrt.f32 %v3151_v40  ;;  %v3945_v40 = vld [vmem:[%s6160_s14 + $0x2] sm:$0x1] }
 0xa67   : > { %v2972_v38 = vmax.f32 %v2970_v3, 0.0 }
 0xa6c   : > { %v6063_v12 = vpop.f32.mrf.mxu0 }
 0xa6d   : > { %v3337_v43 = vmul.f32 %v6063_v12, %v6063_v12  ;;  %v3327_v47 = vsel %vm1160_vm3, %v6063_v12, 0.0 }
 0xa6e   : > { %v6067_v45 = vpop.f32.mrf.mxu0 }
 0xa6f   : > { %v3326_v48 = vsel %vm1160_vm3, %v6067_v45, 0.0  ;;  %v3336_v49 = vmul.f32 %v6067_v45, %v6067_v45  ;;  %v3339_v17 = vsel %vm1160_vm3, %v3337_v43, 0.0 }
 0xa70   : > { %v3328_v50 = vadd.f32 %v3327_v47, %v3326_v48  ;;  %v3947_v48 = vld [vmem:[%s6161_s15 + $0x2] ss:$0 sm:$0xff] }
 0xa71   : > { %v3338_v54 = vsel %vm1160_vm3, %v3336_v49, 0.0 }
 0xa72   : > { %v3329_v55 = vrot.slane %v3328_v50, 4  ;;  %v3340_v56 = vadd.f32 %v3339_v17, %v3338_v54 }
 0xa73   : > { %v4902_v57 = vpop.eup %4901 }
 0xa74   : > { %v3153_v59 = vmul.f32 %v4902_v57, %v3940_v16  ;;  %v3330_v60 = vadd.f32 %v3329_v55, %v3328_v50  ;;  %v3341_v62 = vrot.slane %v3340_v56, 4 }
 0xa76   : > { %v3159_v4 = vrot.slane %v3153_v59, %v5449_v19  ;;  %v3331_v5 = vrot.slane %v3330_v60, 2  ;;  %v3342_v6 = vadd.f32 %v3341_v62, %v3340_v56 }
 0xa78   : > { %v3160_v23 = vmul.f32 %v3159_v4, %v3154_v27  ;;  %v3161_v7 = vmul.f32 %v3159_v4, %v3155_v1  ;;  %v3332_v8 = vadd.f32 %v3331_v5, %v3330_v60  ;;  %v3343_v13 = vrot.slane %v3342_v6, 2 }
 0xa7a   : > { %v3168_v61 = vadd.f32 %v3942_v63, %v3160_v23  ;;  %v3169_v15 = vadd.f32 %v3942_v63, %v3161_v7  ;;  %v3333_v21 = vrot.slane %v3332_v8, 1  ;;  %v3344_v35 = vadd.f32 %v3343_v13, %v3342_v6 }
 0xa7c   : > { %v3171_v36 = vmax.f32 %v3169_v15, 0.0  ;;  %v3334_v22 = vadd.f32 %v3333_v21, %v3332_v8  ;;  %v3345_v25 = vrot.slane %v3344_v35, 1  ;;  %v3170_v26 = vmax.f32 %v3168_v61, 0.0 }
 0xa7e   : > { %v3335_v28 = vmul.f32 0.0625, %v3334_v22  ;;  %v3346_v29 = vadd.f32 %v3345_v25, %v3344_v35  ;;  %4840 = vmatprep.mubr.msk.f32.mxu0 %vm1160_vm3, %v3170_v26 }
 0xa7f   : > { %4841 = vmatmul.mubr.msk.f32.vlgmr.msra.gmra.mxu0 %vm1160_vm3, %v3171_v36 }
 0xa80   : > { %v3347_v31 = vmul.f32 0.0625, %v3346_v29  ;;  %v3348_v34 = vmul.f32 %v3335_v28, %v3335_v28  ;;  %4844 = vmatpush3.msra.mxu0 %v6030_v32  ;;  %4851 = vmatprep.mubr.msk.f32.mxu0 %vm1160_vm3, %v2971_v10  ;;  %v3934_v32 = vld [vmem:[%s6155_s9 + $0x58] sm:$0xff]  ;;  %v3353_v42 = vsub.f32 %v6067_v45, %v3335_v28  ;;  %v3354_v43 = vsub.f32 %v6063_v12, %v3335_v28 }
 0xa81   : > { %4845 = vmatprep.subr.mxu0 %v3925_v30 }
 0xa82   : > { %v3349_v37 = vsub.f32 %v3347_v31, %v3348_v34  ;;  %4846 = vmatpush3.msra.mxu0 %v3925_v30  ;;  %v3956_v34 = vld [vmem:[%s6163_s17 + $0x2] ss:$0 sm:$0xff] }
 0xa83   : > { %4847 = vmatprep.subr.mxu0 %v3924_v46 }
 0xa84   : > { %v3350_v11 = vadd.f32 1e-05, %v3349_v37  ;;  %4848 = vmatpush3.msra.mxu0 %v3924_v46 }
 0xa85   : > { %4849 = vmatprep.subr.mxu0 %v3923_v9 }
 0xa86   : > { %4903 = vrsqrt.f32 %v3350_v11  ;;  %4850 = vmatpush3.msra.mxu0 %v3923_v9 }
 0xa87   : > { %4852 = vmatmul.mubr.msk.f32.vlgmr.msra.gmra.mxu0 %vm1160_vm3, %v2972_v38  ;;  %4854 = vmatprep.subr.mxu0 %v3934_v32 }
 0xa88   : > { %4855 = vmatpush3.msra.mxu0 %v3934_v32 }
 0xa89   : > { %4856 = vmatprep.subr.mxu0 %v3933_v39 }
 0xa8a   : > { %4857 = vmatpush3.msra.mxu0 %v3933_v39 }
 0xa8b   : > { %4858 = vmatprep.subr.mxu0 %v3932_v44 }
 0xa8c   : > { %4859 = vmatpush3.msra.mxu0 %v3932_v44 }
 0xa8d   : > { %4860 = vmatprep.subr.mxu0 %v3931_v33 }
 0xa8e   : > { %4861 = vmatpush3.msra.mxu0 %v3931_v33 }
 0xa93   : > { %v4904_v41 = vpop.eup %4903 }
 0xa94   : > { %v3352_v53 = vmul.f32 %v4904_v41, %v3945_v40 }
 0xa96   : > { %v3358_v47 = vrot.slane %v3352_v53, %v5449_v19 }
 0xa98   : > { %v3359_v49 = vmul.f32 %v3358_v47, %v3353_v42  ;;  %v3360_v50 = vmul.f32 %v3358_v47, %v3354_v43 }
 0xa9a   : > { %v3367_v51 = vadd.f32 %v3947_v48, %v3359_v49  ;;  %v3368_v16 = vadd.f32 %v3947_v48, %v3360_v50 }
 0xa9c   : > { %v3370_v17 = vmax.f32 %v3368_v16, 0.0  ;;  %v3369_v54 = vmax.f32 %v3367_v51, 0.0 }
 0xa9e   : > { %4862 = vmatprep.mubr.msk.f32.mxu0 %vm1160_vm3, %v3369_v54 }
 0xa9f   : > { %4863 = vmatmul.mubr.msk.f32.vlgmr.msra.gmra.mxu0 %vm1160_vm3, %v3370_v17 }
 0xb3f   : > { %v4842_v55 = vpop.f32.mrf.mxu0 }
 0xb41   : > { %v3443_v45 = vpop.f32.mrf.mxu0 }
 0xb47   : > { %v4853_v56 = vpop.f32.mrf.mxu0 }
 0xb48   : > { %v3530_v57 = vadd.f32 %v4853_v56, %v4842_v55 }
 0xb49   : > { %v3524_v12 = vpop.f32.mrf.mxu0 }
 0xb4a   : > { %v3525_v59 = vadd.f32 %v3524_v12, %v3443_v45 }
 0xb5f   : > { %v4864_v58 = vpop.f32.mrf.mxu0 }
 0xb60   : > { %v3615_v60 = vadd.f32 %v4864_v58, %v3530_v57 }
 0xb61   : > { %v3605_v62 = vpop.f32.mrf.mxu0 }
 0xb62   : > { %v3614_v52 = vadd.f32 %v3605_v62, %v3525_v59  ;;  %v3629_v27 = vmul.f32 %v3615_v60, %v3615_v60 }
 0xb64   : > { %v3620_v0 = vadd.f32 %v3615_v60, %v3614_v52  ;;  %v3628_v1 = vmul.f32 %v3614_v52, %v3614_v52 }
 0xb66   : > { %v3621_v4 = vrot.slane %v3620_v0, 4  ;;  %v3630_v5 = vadd.f32 %v3629_v27, %v3628_v1 }
 0xb68   : > { %v3622_v6 = vadd.f32 %v3621_v4, %v3620_v0  ;;  %v3631_v63 = vrot.slane %v3630_v5, 4 }
 0xb6a   : > { %v3623_v23 = vrot.slane %v3622_v6, 2  ;;  %v3632_v7 = vadd.f32 %v3631_v63, %v3630_v5 }
 0xb6c   : > { %v3624_v8 = vadd.f32 %v3623_v23, %v3622_v6  ;;  %v3633_v13 = vrot.slane %v3632_v7, 2 }
 0xb6e   : > { %v3625_v14 = vrot.slane %v3624_v8, 1  ;;  %v3634_v61 = vadd.f32 %v3633_v13, %v3632_v7 }
 0xb70   : > { %v3626_v15 = vadd.f32 %v3625_v14, %v3624_v8  ;;  %v3635_v21 = vrot.slane %v3634_v61, 1 }
 0xb72   : > { %v3627_v35 = vmul.f32 0.0625, %v3626_v15  ;;  %v3636_v2 = vadd.f32 %v3635_v21, %v3634_v61 }
 0xb74   : > { %v3637_v36 = vmul.f32 0.0625, %v3636_v2  ;;  %v3638_v22 = vmul.f32 %v3627_v35, %v3627_v35  ;;  %v3643_v30 = vsub.f32 %v3614_v52, %v3627_v35  ;;  %v3644_v10 = vsub.f32 %v3615_v60, %v3627_v35 }
 0xb76   : > { %v3639_v25 = vsub.f32 %v3637_v36, %v3638_v22 }
 0xb78   : > { %v3640_v26 = vadd.f32 1e-05, %v3639_v25 }
 0xb7a   : > { %4905 = vrsqrt.f32 %v3640_v26 }
 0xb87   : > { %v4906_v28 = vpop.eup %4905 }
 0xb88   : > { %v3642_v29 = vmul.f32 %v4906_v28, %v3954_v18 }
 0xb8a   : > { %v3648_v31 = vrot.slane %v3642_v29, %v5449_v19 }
 0xb8c   : > { %v3649_v46 = vmul.f32 %v3648_v31, %v3643_v30  ;;  %v3650_v3 = vmul.f32 %v3648_v31, %v3644_v10 }
 0xb8e   : > { %v3657_v37 = vadd.f32 %v3956_v34, %v3649_v46  ;;  %v3658_v9 = vadd.f32 %v3956_v34, %v3650_v3 }
 0xb90   : > { %v3659_v11 = vadd.f32 %v3657_v37, %v5944_v20  ;;  %v3660_v32 = vadd.f32 %v3658_v9, %v5946_v24 }
 0xb92   : > { %v3661_v38 = vmax.f32 %v3659_v11, 0.0  ;;  %v3662_v39 = vmax.f32 %v3660_v32, 0.0 }
 0xb94   : > { %3663 = vst [vmem:[%s575_s2] sm:$0xff] %v3661_v38  ;;  %3664 = vst [vmem:[%s575_s2 + $0x8] sm:$0xff] %v3662_v39 }
 0xb95 PF: > { %s28_s27 = sadd.s32 1, %s4917_s27  }
 0xb96   : > { %p25_p4 = scmp.ge.s32.totalorder %s28_s27, 4  }
 0xb98   :  { %27 = sbr.rel (!%p25_p4) target bundleno = 4 (0x4), region = 151 }

</bundles_post_ra>
